<compile_context>
chip_gen: v5e
topology: v5e:2x2
jax: 0.10.0
libtpu: 0.0.40
codegen_flags: <defaults>
</compile_context>

<pallas_src>
import functools

import jax
import jax.numpy as jnp
from jax import lax
from jax.experimental import pallas as pl
from jax.experimental.pallas import tpu as pltpu


_DN = (((1,), (1,)), ((), ()))  # contract dim1(x) with dim1(w)  ==  x @ w.T


def _elu(y):
    # ELU(alpha=1); clamp the unselected branch to avoid exp overflow.
    return jnp.where(y > 0, y, jnp.exp(jnp.minimum(y, 0.0)) - 1.0)


def _full(shape):
    nd = len(shape)
    return pl.BlockSpec(shape, lambda i, _nd=nd: (0,) * _nd)


# --------------------------- fused per-layer kernel ---------------------------

def _layer_kernel(adj_ref, views_ref, gat_w_ref, asrc_ref, adst_ref,
                  lin_w_ref, res_w_ref, o_ref, *, n):
    """One meta-path layer for all three views.

    views_ref: (3N, D) = [h0; h1; h2]   (pro_x == h[lay] in the reference)
    output   : (3N, H) = [x0; x1; x2]
      x0 = GAT(adj, h0) + 0.2*res(h0)
      x1 = GAT(adj, h1) + 0.2*res(h1) + 0.2*res(h2)
      x2 = relu(lin(h2))
    """
    adj = adj_ref[...]                                            # (N, N)
    hv = views_ref[...]                                           # (3N, D)

    # batched residual projection (shared weight over the 3 views)
    res_all = 0.2 * lax.dot_general(hv, res_w_ref[...], _DN,
                                    preferred_element_type=jnp.float32)   # (3N, H)
    res0 = res_all[0 * n:1 * n]
    res1 = res_all[1 * n:2 * n]
    res2 = res_all[2 * n:3 * n]

    # x2 = relu(lin(h2))
    x2 = jnp.maximum(
        lax.dot_general(hv[2 * n:3 * n], lin_w_ref[...], _DN,
                        preferred_element_type=jnp.float32), 0.0)

    # GAT on views 0 and 1: tanh(W h) batched over both views.
    feat01 = hv[0:2 * n]                                          # (2N, D)
    x01 = jnp.tanh(lax.dot_general(feat01, gat_w_ref[...], _DN,
                                   preferred_element_type=jnp.float32))   # (2N, H)
    s_src01 = jnp.sum(asrc_ref[...] * x01, axis=1, keepdims=True)         # (2N, 1)
    mask = adj > 0

    gat_out = []
    for v in range(2):                      # static unroll over the 2 views
        featv = feat01[v * n:(v + 1) * n]                         # (N, D)
        xv = x01[v * n:(v + 1) * n]                               # (N, H)
        s_src = s_src01[v * n:(v + 1) * n]                        # (N, 1)
        # dst scores laid out as a row directly (no transpose): (1,H)x(N,H)->(1,N)
        s_dst_row = lax.dot_general(adst_ref[...], xv, _DN,
                                    preferred_element_type=jnp.float32)   # (1, N)
        logits = s_src + s_dst_row                                # (N, N)
        logits = jnp.where(logits > 0, logits, 0.05 * logits)     # LeakyReLU(0.05)
        logits = jnp.where(mask, logits, -9e25)                   # adjacency mask
        m = jnp.max(logits, axis=-1, keepdims=True)
        p = jnp.exp(logits - m)
        inv = pl.reciprocal(jnp.sum(p, axis=-1, keepdims=True), approx=True)
        attn = p * inv                                            # row softmax
        gat_out.append(jnp.dot(attn, featv, preferred_element_type=jnp.float32))

    o_ref[0 * n:1 * n, :] = gat_out[0] + res0
    o_ref[1 * n:2 * n, :] = gat_out[1] + res1 + res2
    o_ref[2 * n:3 * n, :] = x2


def pallas_layer(adj, views, p, n):
    d = views.shape[1]
    h = p["gat_w"].shape[0]
    return pl.pallas_call(
        functools.partial(_layer_kernel, n=n),
        grid=(1,),
        in_specs=[_full((n, n)), _full((3 * n, d)), _full((h, d)),
                  _full(p["att_src"].shape), _full(p["att_dst"].shape),
                  _full((h, d)), _full((h, d))],
        out_specs=_full((3 * n, h)),
        out_shape=jax.ShapeDtypeStruct((3 * n, h), jnp.float32),
        compiler_params=pltpu.CompilerParams(
            dimension_semantics=("arbitrary",),
            vmem_limit_bytes=32 * 1024 * 1024),
    )(adj, views, p["gat_w"], p["att_src"], p["att_dst"], p["lin_w"], p["res_w"])


# -------------------- fused h_mlp (concat + linear + ELU) ---------------------

def _hmlp_kernel(v0_ref, v1_ref, wa_ref, wb_ref, o_ref):
    # elu( [v0 | v1] @ W.T )  with W = [Wa | Wb]  ==  elu(v0@Wa.T + v1@Wb.T)
    y = (lax.dot_general(v0_ref[...], wa_ref[...], _DN,
                         preferred_element_type=jnp.float32)
         + lax.dot_general(v1_ref[...], wb_ref[...], _DN,
                           preferred_element_type=jnp.float32))
    o_ref[...] = _elu(y)


def pallas_hmlp(v0, v1, wa, wb):
    m = v0.shape[0]
    h = wa.shape[0]
    return pl.pallas_call(
        _hmlp_kernel,
        grid=(1,),
        in_specs=[_full(v0.shape), _full(v1.shape), _full(wa.shape), _full(wb.shape)],
        out_specs=_full((m, h)),
        out_shape=jax.ShapeDtypeStruct((m, h), jnp.float32),
    )(v0, v1, wa, wb)


# ------------------- fused 2-layer contrastive projection --------------------

def _proj_kernel(z_ref, w1_ref, b1_ref, w2_ref, b2_ref, o_ref):
    y = lax.dot_general(z_ref[...], w1_ref[...], _DN,
                        preferred_element_type=jnp.float32) + b1_ref[...]
    y = _elu(y)
    o_ref[...] = (lax.dot_general(y, w2_ref[...], _DN,
                                  preferred_element_type=jnp.float32)
                  + b2_ref[...])


def pallas_proj(z, pp):
    m = z.shape[0]
    h = pp["w1"].shape[0]
    return pl.pallas_call(
        _proj_kernel,
        grid=(1,),
        in_specs=[_full(z.shape), _full(pp["w1"].shape), _full(pp["b1"].shape),
                  _full(pp["w2"].shape), _full(pp["b2"].shape)],
        out_specs=_full((m, h)),
        out_shape=jax.ShapeDtypeStruct((m, h), jnp.float32),
    )(z, pp["w1"], pp["b1"], pp["w2"], pp["b2"])


# --------------- all three contrastive losses in one pallas_call --------------

def _contrast_kernel(z1_ids_ref, z2_ids_ref, z1_ref, z2_ref, pos_ref, post_ref,
                     mp_ref, sc_ref, *, inv_tau):
    del z1_ids_ref, z2_ids_ref            # only used by the index_maps
    z1 = z1_ref[0]                                                # (N, H)
    z2 = z2_ref[0]                                                # (N, H)
    pos = pos_ref[...]                                            # (N, N)
    pos_t = post_ref[...]                                         # (N, N)

    # cosine similarity (row-normalize then matmul)
    z1u = z1 * lax.rsqrt(jnp.sum(z1 * z1, axis=-1, keepdims=True))
    z2u = z2 * lax.rsqrt(jnp.sum(z2 * z2, axis=-1, keepdims=True))
    cos = lax.dot_general(z1u, z2u, _DN,
                          preferred_element_type=jnp.float32)     # (N, N)
    sim = jnp.exp(cos * inv_tau)

    # mp -> sc direction: row-normalized sim
    rs = jnp.sum(sim, axis=1, keepdims=True)                      # (N, 1)
    num_mp = (jnp.sum(sim * pos, axis=-1, keepdims=True)
              * pl.reciprocal(rs + 1e-8, approx=True))
    lori_mp = jnp.mean(jnp.log(num_mp), keepdims=True)            # (1, 1)

    # sc -> mp direction: row-normalized sim.T, expressed via column reductions
    cs = jnp.sum(sim, axis=0, keepdims=True)                      # (1, N)
    num_sc = jnp.sum(sim * pos_t, axis=0, keepdims=True)          # (1, N)
    lori_sc = jnp.mean(
        jnp.log(num_sc * pl.reciprocal(cs + 1e-8, approx=True)), keepdims=True)

    mp_ref[...] = jnp.broadcast_to(lori_mp, (1, 1, 128))          # lane-dense
    sc_ref[...] = jnp.broadcast_to(lori_sc, (1, 1, 128))


def pallas_contrast3(z_stack, pos, pos_t, tau):
    """z_stack: (5, N, H) = [pm0, pm1, pm2, px1, px2].  Returns (lori_mp, lori_sc),
    each of shape (3,) for the pairs (pm0,pm1), (pm0,pm2), (px1,px2)."""
    _, n, h = z_stack.shape
    z1_ids = jnp.array([0, 0, 3], jnp.int32)
    z2_ids = jnp.array([1, 2, 4], jnp.int32)
    grid_spec = pltpu.PrefetchScalarGridSpec(
        num_scalar_prefetch=2,
        grid=(3,),
        in_specs=[
            pl.BlockSpec((1, n, h), lambda i, a, b: (a[i], 0, 0)),   # z1 view
            pl.BlockSpec((1, n, h), lambda i, a, b: (b[i], 0, 0)),   # z2 view
            pl.BlockSpec((n, n), lambda i, a, b: (0, 0)),            # pos (resident)
            pl.BlockSpec((n, n), lambda i, a, b: (0, 0)),            # pos.T (resident)
        ],
        out_specs=[
            pl.BlockSpec((1, 1, 128), lambda i, a, b: (i, 0, 0)),
            pl.BlockSpec((1, 1, 128), lambda i, a, b: (i, 0, 0)),
        ],
    )
    out_mp, out_sc = pl.pallas_call(
        functools.partial(_contrast_kernel, inv_tau=1.0 / tau),
        grid_spec=grid_spec,
        out_shape=[jax.ShapeDtypeStruct((3, 1, 128), jnp.float32),
                   jax.ShapeDtypeStruct((3, 1, 128), jnp.float32)],
        compiler_params=pltpu.CompilerParams(
            dimension_semantics=("parallel",),
            vmem_limit_bytes=32 * 1024 * 1024),
    )(z1_ids, z2_ids, z_stack, z_stack, pos, pos_t)
    return out_mp[:, 0, 0], out_sc[:, 0, 0]


# --------------- fused HAN semantic attention (MLP + softmax + mix) -----------

def _han_kernel(r_ref, w1_ref, b1_ref, w2_ref, o_ref, *, n):
    r = r_ref[...]                                                # (3N, H)
    t = jnp.tanh(lax.dot_general(r, w1_ref[...], _DN,
                                 preferred_element_type=jnp.float32)
                 + b1_ref[...])
    s = jnp.sum(t * w2_ref[...], axis=1, keepdims=True)           # (3N, 1)
    s0 = jnp.mean(s[0 * n:1 * n], keepdims=True)                  # (1, 1)
    s1 = jnp.mean(s[1 * n:2 * n], keepdims=True)
    s2 = jnp.mean(s[2 * n:3 * n], keepdims=True)
    m = jnp.maximum(jnp.maximum(s0, s1), s2)
    e0 = jnp.exp(s0 - m)
    e1 = jnp.exp(s1 - m)
    e2 = jnp.exp(s2 - m)
    inv = 1.0 / (e0 + e1 + e2)
    o_ref[...] = ((e0 * inv) * r[0 * n:1 * n]
                  + (e1 * inv) * r[1 * n:2 * n]
                  + (e2 * inv) * r[2 * n:3 * n])


def pallas_han(result_all, att, n):
    m, h = result_all.shape
    return pl.pallas_call(
        functools.partial(_han_kernel, n=n),
        grid=(1,),
        in_specs=[_full((m, h)), _full(att["w1"].shape), _full(att["b1"].shape),
                  _full(att["w2"].shape)],
        out_specs=_full((n, h)),
        out_shape=jax.ShapeDtypeStruct((n, h), jnp.float32),
    )(result_all, att["w1"], att["b1"], att["w2"])


# ------------------------------ parameter setup -------------------------------

def xavier_normal(key, shape, gain=1.414):
    fan_out, fan_in = shape
    std = gain * (2.0 / (fan_in + fan_out)) ** 0.5
    return std * jax.random.normal(key, shape, dtype=jnp.float32)


def init_params(key, layer_num, in_dim, hidden_dim):
    # NOTE: the torch module only type-checks when in_dim == hidden_dim and
    # layer_num == 1 (GAT output / residual add / h_mlp concat width).
    ks = iter(jax.random.split(key, 64))
    layers = []
    for _ in range(layer_num):
        layers.append(dict(
            gat_w=xavier_normal(next(ks), (hidden_dim, in_dim)),
            att_src=xavier_normal(next(ks), (1, in_dim)),
            att_dst=xavier_normal(next(ks), (1, in_dim)),
            lin_w=xavier_normal(next(ks), (hidden_dim, in_dim)),
            res_w=xavier_normal(next(ks), (hidden_dim, in_dim)),
        ))

    def proj_params():
        return dict(
            w1=xavier_normal(next(ks), (hidden_dim, hidden_dim)),
            b1=0.01 * jax.random.normal(next(ks), (1, hidden_dim), jnp.float32),
            w2=xavier_normal(next(ks), (hidden_dim, hidden_dim)),
            b2=0.01 * jax.random.normal(next(ks), (1, hidden_dim), jnp.float32),
        )

    return dict(
        layers=layers,
        h_mlp_w=xavier_normal(next(ks), (hidden_dim, in_dim * (layer_num + 1))),
        min_proj=proj_params(),
        max_proj=proj_params(),
        att=dict(
            w1=xavier_normal(next(ks), (hidden_dim, hidden_dim)),
            b1=0.01 * jax.random.normal(next(ks), (1, hidden_dim), jnp.float32),
            w2=xavier_normal(next(ks), (1, hidden_dim)),
        ),
    )


# -------------------------------- forward pass --------------------------------

def forward(params, adj, features, pos, pos_outer, key,
            edge_drop=0.1, tau=0.8, lam=0.5):
    del pos  # unused by the reference forward as well
    n, d = features.shape
    k_noise, k_drop = jax.random.split(key)

    # features_aug = features + F.normalize(N(0, 0.01), dim=1)
    noise = 0.01 * jax.random.normal(k_noise, features.shape, jnp.float32)
    noise = noise / jnp.maximum(
        jnp.linalg.norm(noise, axis=1, keepdims=True), 1e-12)
    features_aug = features + noise

    # new_adj = F.dropout(adj, edge_drop)  (training mode)
    keep = jax.random.bernoulli(k_drop, 1.0 - edge_drop, adj.shape)
    new_adj = jnp.where(keep, adj / (1.0 - edge_drop), 0.0).astype(jnp.float32)

    # views stacked view-major: (3N, D) = [h_k[0]; h_k[1]; h_k[2]]
    views0 = jnp.concatenate([features, features_aug, features], axis=0)
    h_list = [views0]
    v = views0
    for p in params["layers"]:
        v = pallas_layer(new_adj, v, p, n)          # one fused call per layer
        h_list.append(v)

    # result_k = elu(h_mlp(cat([h[0][k], h[1][k]], 1))) — all 3 views at once
    wa = params["h_mlp_w"][:, :d]
    wb = params["h_mlp_w"][:, d:]
    result_all = pallas_hmlp(h_list[0], h_list[1], wa, wb)        # (3N, H)
    hdim = result_all.shape[1]

    # contrastive projections: min over all 3 views, max over views 1,2
    pm = pallas_proj(result_all, params["min_proj"])              # (3N, H)
    px = pallas_proj(result_all[n:], params["max_proj"])          # (2N, H)
    z_stack = jnp.concatenate([pm, px], axis=0).reshape(5, n, hdim)

    pos_t = pos_outer.T                                           # computed once
    lori_mp, lori_sc = pallas_contrast3(z_stack, pos_outer, pos_t, tau)
    loss_1 = lam * (-lori_mp[0]) + (1.0 - lam) * (-lori_sc[0])
    loss_2 = lam * (-lori_mp[1]) + (1.0 - lam) * (-lori_sc[1])
    loss_3 = (lori_mp[2] + lori_sc[2]) / 2.0

    # HAN semantic attention over the 3 views (fully fused)
    gene_output = pallas_han(result_all, params["att"], n)        # (N, H)

    return gene_output, 0.5 * loss_1 + 0.5 * loss_2, loss_3, 0.0


# ----------------------------------- main --------------------------------------

if __name__ == "__main__":
    # The reference module only type-checks when in_dim == hidden_dim and
    # layer_num == 1; mirror that.
    N = 64
    IN_DIM = HIDDEN_DIM = 32
    LAYER_NUM = 1

    root = jax.random.PRNGKey(0)
    k_par, k_feat, k_adj, k_pos, k_fwd = jax.random.split(root, 5)

    params = init_params(k_par, LAYER_NUM, IN_DIM, HIDDEN_DIM)

    features = jax.random.normal(k_feat, (N, IN_DIM), jnp.float32)
    adj = (jax.random.bernoulli(k_adj, 0.3, (N, N)).astype(jnp.float32)
           + jnp.eye(N, dtype=jnp.float32))
    adj = jnp.minimum(adj, 1.0)
    pos_outer = jnp.maximum(
        jax.random.bernoulli(k_pos, 0.1, (N, N)).astype(jnp.float32),
        jnp.eye(N, dtype=jnp.float32))
    pos = pos_outer  # third forward arg is unused by the reference module

    fwd = jax.jit(functools.partial(forward, edge_drop=0.1, tau=0.8, lam=0.5))
    gene_output, loss_min, loss_max, zero = fwd(
        params, adj, features, pos, pos_outer, k_fwd)

    jax.block_until_ready((gene_output, loss_min, loss_max))
    assert gene_output.shape == (N, HIDDEN_DIM)
    assert bool(jnp.isfinite(gene_output).all())
    assert bool(jnp.isfinite(loss_min)) and bool(jnp.isfinite(loss_max))
    print("KERNEL_OK")
</pallas_src>

<mosaic_0001>
module attributes {stable_mosaic.version = 11 : i64} {
  func.func @_hmlp_kernel(%arg0: i32, %arg1: memref<192x32xf32, #tpu.memory_space<vmem>>, %arg2: memref<192x32xf32, #tpu.memory_space<vmem>>, %arg3: memref<32x32xf32, #tpu.memory_space<vmem>>, %arg4: memref<32x32xf32, #tpu.memory_space<vmem>>, %arg5: memref<192x32xf32, #tpu.memory_space<vmem>>) attributes {dimension_semantics = [#tpu.dimension_semantics<arbitrary>], iteration_bounds = array<i64: 1>, scalar_prefetch = 0 : i64, scratch_operands = 0 : i64, tpu.core_type = #tpu.core_type<tc>, window_params = [{pipeline_mode = #tpu.pipeline_mode<synchronous>, transform_indices = @transform_0, window_bounds = array<i64: 192, 32>}, {pipeline_mode = #tpu.pipeline_mode<synchronous>, transform_indices = @transform_1, window_bounds = array<i64: 192, 32>}, {pipeline_mode = #tpu.pipeline_mode<synchronous>, transform_indices = @transform_2, window_bounds = array<i64: 32, 32>}, {pipeline_mode = #tpu.pipeline_mode<synchronous>, transform_indices = @transform_3, window_bounds = array<i64: 32, 32>}, {pipeline_mode = #tpu.pipeline_mode<synchronous>, transform_indices = @transform_4, window_bounds = array<i64: 192, 32>}]} {
    %c0 = arith.constant 0 : index
    %c0_0 = arith.constant 0 : index
    %0 = vector.load %arg1[%c0, %c0_0] : memref<192x32xf32, #tpu.memory_space<vmem>>, vector<192x32xf32>
    %c0_1 = arith.constant 0 : index
    %c0_2 = arith.constant 0 : index
    %1 = vector.load %arg3[%c0_1, %c0_2] : memref<32x32xf32, #tpu.memory_space<vmem>>, vector<32x32xf32>
    %cst = arith.constant dense<0.000000e+00> : vector<192x32xf32>
    %2 = tpu.matmul %0, %1, %cst {dimension_numbers = #tpu.dot_dimension_numbers<[1], [1], [0], [0], [0, 0, 1, 0], [], []>} : vector<192x32xf32>, vector<32x32xf32>, vector<192x32xf32> -> vector<192x32xf32>
    %c0_3 = arith.constant 0 : index
    %c0_4 = arith.constant 0 : index
    %3 = vector.load %arg2[%c0_3, %c0_4] : memref<192x32xf32, #tpu.memory_space<vmem>>, vector<192x32xf32>
    %c0_5 = arith.constant 0 : index
    %c0_6 = arith.constant 0 : index
    %4 = vector.load %arg4[%c0_5, %c0_6] : memref<32x32xf32, #tpu.memory_space<vmem>>, vector<32x32xf32>
    %cst_7 = arith.constant dense<0.000000e+00> : vector<192x32xf32>
    %5 = tpu.matmul %3, %4, %cst_7 {dimension_numbers = #tpu.dot_dimension_numbers<[1], [1], [0], [0], [0, 0, 1, 0], [], []>} : vector<192x32xf32>, vector<32x32xf32>, vector<192x32xf32> -> vector<192x32xf32>
    %6 = arith.addf %2, %5 : vector<192x32xf32>
    %cst_8 = arith.constant 0.000000e+00 : f32
    %7 = vector.broadcast %cst_8 : f32 to vector<192x32xf32>
    %8 = arith.cmpf ogt, %6, %7 : vector<192x32xf32>
    %cst_9 = arith.constant 0.000000e+00 : f32
    %9 = vector.broadcast %cst_9 : f32 to vector<192x32xf32>
    %10 = arith.minimumf %6, %9 : vector<192x32xf32>
    %11 = math.exp %10 : vector<192x32xf32>
    %cst_10 = arith.constant 1.000000e+00 : f32
    %12 = vector.broadcast %cst_10 : f32 to vector<192x32xf32>
    %13 = arith.subf %11, %12 : vector<192x32xf32>
    %14 = arith.select %8, %6, %13 : vector<192x32xi1>, vector<192x32xf32>
    %c0_11 = arith.constant 0 : index
    %c0_12 = arith.constant 0 : index
    %15 = vector.load %arg5[%c0_11, %c0_12] : memref<192x32xf32, #tpu.memory_space<vmem>>, vector<192x32xf32>
    tpu.vector_store %arg5[%c0_11, %c0_12], %14 {strides = array<i32>} : memref<192x32xf32, #tpu.memory_space<vmem>>, vector<192x32xf32>,
    return
  }
  func.func @transform_0(%arg0: i32) -> (i32, i32) {
    %c0_i32 = arith.constant 0 : i32
    %c0_i32_0 = arith.constant 0 : i32
    %c0_i32_1 = arith.constant 0 : i32
    return %c0_i32, %c0_i32_0 : i32, i32
  }
  func.func @transform_1(%arg0: i32) -> (i32, i32) {
    %c0_i32 = arith.constant 0 : i32
    %c0_i32_0 = arith.constant 0 : i32
    %c0_i32_1 = arith.constant 0 : i32
    return %c0_i32, %c0_i32_0 : i32, i32
  }
  func.func @transform_2(%arg0: i32) -> (i32, i32) {
    %c0_i32 = arith.constant 0 : i32
    %c0_i32_0 = arith.constant 0 : i32
    %c0_i32_1 = arith.constant 0 : i32
    return %c0_i32, %c0_i32_0 : i32, i32
  }
  func.func @transform_3(%arg0: i32) -> (i32, i32) {
    %c0_i32 = arith.constant 0 : i32
    %c0_i32_0 = arith.constant 0 : i32
    %c0_i32_1 = arith.constant 0 : i32
    return %c0_i32, %c0_i32_0 : i32, i32
  }
  func.func @transform_4(%arg0: i32) -> (i32, i32) {
    %c0_i32 = arith.constant 0 : i32
    %c0_i32_0 = arith.constant 0 : i32
    %c0_i32_1 = arith.constant 0 : i32
    return %c0_i32, %c0_i32_0 : i32, i32
  }
}

module attributes {stable_mosaic.version = 11 : i64} {
  func.func @_layer_kernel(%arg0: i32, %arg1: memref<64x64xf32, #tpu.memory_space<vmem>>, %arg2: memref<192x32xf32, #tpu.memory_space<vmem>>, %arg3: memref<32x32xf32, #tpu.memory_space<vmem>>, %arg4: memref<1x32xf32, #tpu.memory_space<vmem>>, %arg5: memref<1x32xf32, #tpu.memory_space<vmem>>, %arg6: memref<32x32xf32, #tpu.memory_space<vmem>>, %arg7: memref<32x32xf32, #tpu.memory_space<vmem>>, %arg8: memref<192x32xf32, #tpu.memory_space<vmem>>) attributes {dimension_semantics = [#tpu.dimension_semantics<arbitrary>], iteration_bounds = array<i64: 1>, scalar_prefetch = 0 : i64, scratch_operands = 0 : i64, tpu.core_type = #tpu.core_type<tc>, window_params = [{pipeline_mode = #tpu.pipeline_mode<synchronous>, transform_indices = @transform_0, window_bounds = array<i64: 64, 64>}, {pipeline_mode = #tpu.pipeline_mode<synchronous>, transform_indices = @transform_1, window_bounds = array<i64: 192, 32>}, {pipeline_mode = #tpu.pipeline_mode<synchronous>, transform_indices = @transform_2, window_bounds = array<i64: 32, 32>}, {pipeline_mode = #tpu.pipeline_mode<synchronous>, transform_indices = @transform_3, window_bounds = array<i64: 1, 32>}, {pipeline_mode = #tpu.pipeline_mode<synchronous>, transform_indices = @transform_4, window_bounds = array<i64: 1, 32>}, {pipeline_mode = #tpu.pipeline_mode<synchronous>, transform_indices = @transform_5, window_bounds = array<i64: 32, 32>}, {pipeline_mode = #tpu.pipeline_mode<synchronous>, transform_indices = @transform_6, window_bounds = array<i64: 32, 32>}, {pipeline_mode = #tpu.pipeline_mode<synchronous>, transform_indices = @transform_7, window_bounds = array<i64: 192, 32>}]} {
    %c0 = arith.constant 0 : index
    %c0_0 = arith.constant 0 : index
    %0 = vector.load %arg1[%c0, %c0_0] : memref<64x64xf32, #tpu.memory_space<vmem>>, vector<64x64xf32>
    %c0_1 = arith.constant 0 : index
    %c0_2 = arith.constant 0 : index
    %1 = vector.load %arg2[%c0_1, %c0_2] : memref<192x32xf32, #tpu.memory_space<vmem>>, vector<192x32xf32>
    %c0_3 = arith.constant 0 : index
    %c0_4 = arith.constant 0 : index
    %2 = vector.load %arg7[%c0_3, %c0_4] : memref<32x32xf32, #tpu.memory_space<vmem>>, vector<32x32xf32>
    %cst = arith.constant dense<0.000000e+00> : vector<192x32xf32>
    %3 = tpu.matmul %1, %2, %cst {dimension_numbers = #tpu.dot_dimension_numbers<[1], [1], [0], [0], [0, 0, 1, 0], [], []>} : vector<192x32xf32>, vector<32x32xf32>, vector<192x32xf32> -> vector<192x32xf32>
    %cst_5 = arith.constant 2.000000e-01 : f32
    %4 = vector.broadcast %cst_5 : f32 to vector<192x32xf32>
    %5 = arith.mulf %4, %3 : vector<192x32xf32>
    %6 = vector.extract_strided_slice %5 {offsets = [0, 0], sizes = [64, 32], strides = [1, 1]} : vector<192x32xf32> to vector<64x32xf32>
    %7 = vector.extract_strided_slice %5 {offsets = [64, 0], sizes = [64, 32], strides = [1, 1]} : vector<192x32xf32> to vector<64x32xf32>
    %8 = vector.extract_strided_slice %5 {offsets = [128, 0], sizes = [64, 32], strides = [1, 1]} : vector<192x32xf32> to vector<64x32xf32>
    %9 = vector.extract_strided_slice %1 {offsets = [128, 0], sizes = [64, 32], strides = [1, 1]} : vector<192x32xf32> to vector<64x32xf32>
    %c0_6 = arith.constant 0 : index
    %c0_7 = arith.constant 0 : index
    %10 = vector.load %arg6[%c0_6, %c0_7] : memref<32x32xf32, #tpu.memory_space<vmem>>, vector<32x32xf32>
    %cst_8 = arith.constant dense<0.000000e+00> : vector<64x32xf32>
    %11 = tpu.matmul %9, %10, %cst_8 {dimension_numbers = #tpu.dot_dimension_numbers<[1], [1], [0], [0], [0, 0, 1, 0], [], []>} : vector<64x32xf32>, vector<32x32xf32>, vector<64x32xf32> -> vector<64x32xf32>
    %cst_9 = arith.constant 0.000000e+00 : f32
    %12 = vector.broadcast %cst_9 : f32 to vector<64x32xf32>
    %13 = arith.maximumf %11, %12 : vector<64x32xf32>
    %14 = vector.extract_strided_slice %1 {offsets = [0, 0], sizes = [128, 32], strides = [1, 1]} : vector<192x32xf32> to vector<128x32xf32>
    %c0_10 = arith.constant 0 : index
    %c0_11 = arith.constant 0 : index
    %15 = vector.load %arg3[%c0_10, %c0_11] : memref<32x32xf32, #tpu.memory_space<vmem>>, vector<32x32xf32>
    %cst_12 = arith.constant dense<0.000000e+00> : vector<128x32xf32>
    %16 = tpu.matmul %14, %15, %cst_12 {dimension_numbers = #tpu.dot_dimension_numbers<[1], [1], [0], [0], [0, 0, 1, 0], [], []>} : vector<128x32xf32>, vector<32x32xf32>, vector<128x32xf32> -> vector<128x32xf32>
    %17 = math.tanh %16 : vector<128x32xf32>
    %c0_13 = arith.constant 0 : index
    %c0_14 = arith.constant 0 : index
    %18 = vector.load %arg4[%c0_13, %c0_14] : memref<1x32xf32, #tpu.memory_space<vmem>>, vector<1x32xf32>
    %19 = vector.broadcast %18 : vector<1x32xf32> to vector<128x32xf32>
    %20 = arith.mulf %19, %17 : vector<128x32xf32>
    %cst_15 = arith.constant dense<0.000000e+00> : vector<128xf32>
    %21 = vector.multi_reduction <add>, %20, %cst_15 [1] : vector<128x32xf32> to vector<128xf32>
    %22 = vector.shape_cast %21 : vector<128xf32> to vector<128x1xf32>
    %cst_16 = arith.constant 0.000000e+00 : f32
    %23 = vector.broadcast %cst_16 : f32 to vector<64x64xf32>
    %24 = arith.cmpf ogt, %0, %23 : vector<64x64xf32>
    %25 = vector.extract_strided_slice %14 {offsets = [0, 0], sizes = [64, 32], strides = [1, 1]} : vector<128x32xf32> to vector<64x32xf32>
    %26 = vector.extract_strided_slice %17 {offsets = [0, 0], sizes = [64, 32], strides = [1, 1]} : vector<128x32xf32> to vector<64x32xf32>
    %27 = vector.extract_strided_slice %22 {offsets = [0, 0], sizes = [64, 1], strides = [1, 1]} : vector<128x1xf32> to vector<64x1xf32>
    %c0_17 = arith.constant 0 : index
    %c0_18 = arith.constant 0 : index
    %28 = vector.load %arg5[%c0_17, %c0_18] : memref<1x32xf32, #tpu.memory_space<vmem>>, vector<1x32xf32>
    %cst_19 = arith.constant dense<0.000000e+00> : vector<1x64xf32>
    %29 = tpu.matmul %28, %26, %cst_19 {dimension_numbers = #tpu.dot_dimension_numbers<[1], [1], [0], [0], [0, 0, 1, 0], [], []>} : vector<1x32xf32>, vector<64x32xf32>, vector<1x64xf32> -> vector<1x64xf32>
    %30 = vector.broadcast %27 : vector<64x1xf32> to vector<64x64xf32>
    %31 = vector.broadcast %29 : vector<1x64xf32> to vector<64x64xf32>
    %32 = arith.addf %30, %31 : vector<64x64xf32>
    %cst_20 = arith.constant 0.000000e+00 : f32
    %33 = vector.broadcast %cst_20 : f32 to vector<64x64xf32>
    %34 = arith.cmpf ogt, %32, %33 : vector<64x64xf32>
    %cst_21 = arith.constant 5.000000e-02 : f32
    %35 = vector.broadcast %cst_21 : f32 to vector<64x64xf32>
    %36 = arith.mulf %35, %32 : vector<64x64xf32>
    %37 = arith.select %34, %32, %36 : vector<64x64xi1>, vector<64x64xf32>
    %cst_22 = arith.constant -9.000000e+25 : f32
    %38 = vector.broadcast %cst_22 : f32 to vector<64x64xf32>
    %39 = arith.select %24, %37, %38 : vector<64x64xi1>, vector<64x64xf32>
    %cst_23 = arith.constant dense<0xFF800000> : vector<64xf32>
    %40 = vector.multi_reduction <maximumf>, %39, %cst_23 [1] : vector<64x64xf32> to vector<64xf32>
    %41 = vector.shape_cast %40 : vector<64xf32> to vector<64x1xf32>
    %42 = vector.broadcast %41 : vector<64x1xf32> to vector<64x64xf32>
    %43 = arith.subf %39, %42 : vector<64x64xf32>
    %44 = math.exp %43 : vector<64x64xf32>
    %cst_24 = arith.constant dense<0.000000e+00> : vector<64xf32>
    %45 = vector.multi_reduction <add>, %44, %cst_24 [1] : vector<64x64xf32> to vector<64xf32>
    %46 = vector.shape_cast %45 : vector<64xf32> to vector<64x1xf32>
    %47 = tpu.reciprocal %46 {approx = true} : vector<64x1xf32> -> vector<64x1xf32>
    %48 = vector.broadcast %47 : vector<64x1xf32> to vector<64x64xf32>
    %49 = arith.mulf %44, %48 : vector<64x64xf32>
    %cst_25 = arith.constant dense<0.000000e+00> : vector<64x32xf32>
    %50 = tpu.matmul %49, %25, %cst_25 {dimension_numbers = #tpu.dot_dimension_numbers<[1], [0], [0], [1], [0, 0, 1, 1], [], []>} : vector<64x64xf32>, vector<64x32xf32>, vector<64x32xf32> -> vector<64x32xf32>
    %51 = vector.extract_strided_slice %14 {offsets = [64, 0], sizes = [64, 32], strides = [1, 1]} : vector<128x32xf32> to vector<64x32xf32>
    %52 = vector.extract_strided_slice %17 {offsets = [64, 0], sizes = [64, 32], strides = [1, 1]} : vector<128x32xf32> to vector<64x32xf32>
    %53 = vector.extract_strided_slice %22 {offsets = [64, 0], sizes = [64, 1], strides = [1, 1]} : vector<128x1xf32> to vector<64x1xf32>
    %c0_26 = arith.constant 0 : index
    %c0_27 = arith.constant 0 : index
    %54 = vector.load %arg5[%c0_26, %c0_27] : memref<1x32xf32, #tpu.memory_space<vmem>>, vector<1x32xf32>
    %cst_28 = arith.constant dense<0.000000e+00> : vector<1x64xf32>
    %55 = tpu.matmul %54, %52, %cst_28 {dimension_numbers = #tpu.dot_dimension_numbers<[1], [1], [0], [0], [0, 0, 1, 0], [], []>} : vector<1x32xf32>, vector<64x32xf32>, vector<1x64xf32> -> vector<1x64xf32>
    %56 = vector.broadcast %53 : vector<64x1xf32> to vector<64x64xf32>
    %57 = vector.broadcast %55 : vector<1x64xf32> to vector<64x64xf32>
    %58 = arith.addf %56, %57 : vector<64x64xf32>
    %cst_29 = arith.constant 0.000000e+00 : f32
    %59 = vector.broadcast %cst_29 : f32 to vector<64x64xf32>
    %60 = arith.cmpf ogt, %58, %59 : vector<64x64xf32>
    %cst_30 = arith.constant 5.000000e-02 : f32
    %61 = vector.broadcast %cst_30 : f32 to vector<64x64xf32>
    %62 = arith.mulf %61, %58 : vector<64x64xf32>
    %63 = arith.select %60, %58, %62 : vector<64x64xi1>, vector<64x64xf32>
    %cst_31 = arith.constant -9.000000e+25 : f32
    %64 = vector.broadcast %cst_31 : f32 to vector<64x64xf32>
    %65 = arith.select %24, %63, %64 : vector<64x64xi1>, vector<64x64xf32>
    %cst_32 = arith.constant dense<0xFF800000> : vector<64xf32>
    %66 = vector.multi_reduction <maximumf>, %65, %cst_32 [1] : vector<64x64xf32> to vector<64xf32>
    %67 = vector.shape_cast %66 : vector<64xf32> to vector<64x1xf32>
    %68 = vector.broadcast %67 : vector<64x1xf32> to vector<64x64xf32>
    %69 = arith.subf %65, %68 : vector<64x64xf32>
    %70 = math.exp %69 : vector<64x64xf32>
    %cst_33 = arith.constant dense<0.000000e+00> : vector<64xf32>
    %71 = vector.multi_reduction <add>, %70, %cst_33 [1] : vector<64x64xf32> to vector<64xf32>
    %72 = vector.shape_cast %71 : vector<64xf32> to vector<64x1xf32>
    %73 = tpu.reciprocal %72 {approx = true} : vector<64x1xf32> -> vector<64x1xf32>
    %74 = vector.broadcast %73 : vector<64x1xf32> to vector<64x64xf32>
    %75 = arith.mulf %70, %74 : vector<64x64xf32>
    %cst_34 = arith.constant dense<0.000000e+00> : vector<64x32xf32>
    %76 = tpu.matmul %75, %51, %cst_34 {dimension_numbers = #tpu.dot_dimension_numbers<[1], [0], [0], [1], [0, 0, 1, 1], [], []>} : vector<64x64xf32>, vector<64x32xf32>, vector<64x32xf32> -> vector<64x32xf32>
    %77 = arith.addf %50, %6 : vector<64x32xf32>
    %c0_35 = arith.constant 0 : index
    %c0_36 = arith.constant 0 : index
    %78 = vector.load %arg8[%c0_35, %c0_36] : memref<192x32xf32, #tpu.memory_space<vmem>>, vector<64x32xf32>
    tpu.vector_store %arg8[%c0_35, %c0_36], %77 {strides = array<i32>} : memref<192x32xf32, #tpu.memory_space<vmem>>, vector<64x32xf32>,
    %79 = arith.addf %76, %7 : vector<64x32xf32>
    %80 = arith.addf %79, %8 : vector<64x32xf32>
    %c64 = arith.constant 64 : index
    %c0_37 = arith.constant 0 : index
    %81 = vector.load %arg8[%c64, %c0_37] : memref<192x32xf32, #tpu.memory_space<vmem>>, vector<64x32xf32>
    tpu.vector_store %arg8[%c64, %c0_37], %80 {strides = array<i32>} : memref<192x32xf32, #tpu.memory_space<vmem>>, vector<64x32xf32>,
    %c128 = arith.constant 128 : index
    %c0_38 = arith.constant 0 : index
    %82 = vector.load %arg8[%c128, %c0_38] : memref<192x32xf32, #tpu.memory_space<vmem>>, vector<64x32xf32>
    tpu.vector_store %arg8[%c128, %c0_38], %13 {strides = array<i32>} : memref<192x32xf32, #tpu.memory_space<vmem>>, vector<64x32xf32>,
    return
  }
  func.func @transform_0(%arg0: i32) -> (i32, i32) {
    %c0_i32 = arith.constant 0 : i32
    %c0_i32_0 = arith.constant 0 : i32
    %c0_i32_1 = arith.constant 0 : i32
    return %c0_i32, %c0_i32_0 : i32, i32
  }
  func.func @transform_1(%arg0: i32) -> (i32, i32) {
    %c0_i32 = arith.constant 0 : i32
    %c0_i32_0 = arith.constant 0 : i32
    %c0_i32_1 = arith.constant 0 : i32
    return %c0_i32, %c0_i32_0 : i32, i32
  }
  func.func @transform_2(%arg0: i32) -> (i32, i32) {
    %c0_i32 = arith.constant 0 : i32
    %c0_i32_0 = arith.constant 0 : i32
    %c0_i32_1 = arith.constant 0 : i32
    return %c0_i32, %c0_i32_0 : i32, i32
  }
  func.func @transform_3(%arg0: i32) -> (i32, i32) {
    %c0_i32 = arith.constant 0 : i32
    %c0_i32_0 = arith.constant 0 : i32
    %c0_i32_1 = arith.constant 0 : i32
    return %c0_i32, %c0_i32_0 : i32, i32
  }
  func.func @transform_4(%arg0: i32) -> (i32, i32) {
    %c0_i32 = arith.constant 0 : i32
    %c0_i32_0 = arith.constant 0 : i32
    %c0_i32_1 = arith.constant 0 : i32
    return %c0_i32, %c0_i32_0 : i32, i32
  }
  func.func @transform_5(%arg0: i32) -> (i32, i32) {
    %c0_i32 = arith.constant 0 : i32
    %c0_i32_0 = arith.constant 0 : i32
    %c0_i32_1 = arith.constant 0 : i32
    return %c0_i32, %c0_i32_0 : i32, i32
  }
  func.func @transform_6(%arg0: i32) -> (i32, i32) {
    %c0_i32 = arith.constant 0 : i32
    %c0_i32_0 = arith.constant 0 : i32
    %c0_i32_1 = arith.constant 0 : i32
    return %c0_i32, %c0_i32_0 : i32, i32
  }
  func.func @transform_7(%arg0: i32) -> (i32, i32) {
    %c0_i32 = arith.constant 0 : i32
    %c0_i32_0 = arith.constant 0 : i32
    %c0_i32_1 = arith.constant 0 : i32
    return %c0_i32, %c0_i32_0 : i32, i32
  }
}

module attributes {stable_mosaic.version = 11 : i64} {
  func.func @_han_kernel(%arg0: i32, %arg1: memref<192x32xf32, #tpu.memory_space<vmem>>, %arg2: memref<32x32xf32, #tpu.memory_space<vmem>>, %arg3: memref<1x32xf32, #tpu.memory_space<vmem>>, %arg4: memref<1x32xf32, #tpu.memory_space<vmem>>, %arg5: memref<64x32xf32, #tpu.memory_space<vmem>>) attributes {dimension_semantics = [#tpu.dimension_semantics<arbitrary>], iteration_bounds = array<i64: 1>, scalar_prefetch = 0 : i64, scratch_operands = 0 : i64, tpu.core_type = #tpu.core_type<tc>, window_params = [{pipeline_mode = #tpu.pipeline_mode<synchronous>, transform_indices = @transform_0, window_bounds = array<i64: 192, 32>}, {pipeline_mode = #tpu.pipeline_mode<synchronous>, transform_indices = @transform_1, window_bounds = array<i64: 32, 32>}, {pipeline_mode = #tpu.pipeline_mode<synchronous>, transform_indices = @transform_2, window_bounds = array<i64: 1, 32>}, {pipeline_mode = #tpu.pipeline_mode<synchronous>, transform_indices = @transform_3, window_bounds = array<i64: 1, 32>}, {pipeline_mode = #tpu.pipeline_mode<synchronous>, transform_indices = @transform_4, window_bounds = array<i64: 64, 32>}]} {
    %c0 = arith.constant 0 : index
    %c0_0 = arith.constant 0 : index
    %0 = vector.load %arg1[%c0, %c0_0] : memref<192x32xf32, #tpu.memory_space<vmem>>, vector<192x32xf32>
    %c0_1 = arith.constant 0 : index
    %c0_2 = arith.constant 0 : index
    %1 = vector.load %arg2[%c0_1, %c0_2] : memref<32x32xf32, #tpu.memory_space<vmem>>, vector<32x32xf32>
    %cst = arith.constant dense<0.000000e+00> : vector<192x32xf32>
    %2 = tpu.matmul %0, %1, %cst {dimension_numbers = #tpu.dot_dimension_numbers<[1], [1], [0], [0], [0, 0, 1, 0], [], []>} : vector<192x32xf32>, vector<32x32xf32>, vector<192x32xf32> -> vector<192x32xf32>
    %c0_3 = arith.constant 0 : index
    %c0_4 = arith.constant 0 : index
    %3 = vector.load %arg3[%c0_3, %c0_4] : memref<1x32xf32, #tpu.memory_space<vmem>>, vector<1x32xf32>
    %4 = vector.broadcast %3 : vector<1x32xf32> to vector<192x32xf32>
    %5 = arith.addf %2, %4 : vector<192x32xf32>
    %6 = math.tanh %5 : vector<192x32xf32>
    %c0_5 = arith.constant 0 : index
    %c0_6 = arith.constant 0 : index
    %7 = vector.load %arg4[%c0_5, %c0_6] : memref<1x32xf32, #tpu.memory_space<vmem>>, vector<1x32xf32>
    %8 = vector.broadcast %7 : vector<1x32xf32> to vector<192x32xf32>
    %9 = arith.mulf %6, %8 : vector<192x32xf32>
    %cst_7 = arith.constant dense<0.000000e+00> : vector<192xf32>
    %10 = vector.multi_reduction <add>, %9, %cst_7 [1] : vector<192x32xf32> to vector<192xf32>
    %11 = vector.shape_cast %10 : vector<192xf32> to vector<192x1xf32>
    %12 = vector.extract_strided_slice %11 {offsets = [0, 0], sizes = [64, 1], strides = [1, 1]} : vector<192x1xf32> to vector<64x1xf32>
    %13 = vector.shape_cast %12 : vector<64x1xf32> to vector<1x64x1xf32>
    %cst_8 = arith.constant dense<0.000000e+00> : vector<1xf32>
    %14 = vector.multi_reduction <add>, %13, %cst_8 [1, 2] : vector<1x64x1xf32> to vector<1xf32>
    %15 = vector.shape_cast %14 : vector<1xf32> to vector<1x1x1xf32>
    %16 = vector.extract %15[0, 0, 0] : f32 from vector<1x1x1xf32>
    %17 = vector.broadcast %16 : f32 to vector<1x1xf32>
    %cst_9 = arith.constant 6.400000e+01 : f32
    %18 = vector.broadcast %cst_9 : f32 to vector<1x1xf32>
    %19 = arith.divf %17, %18 : vector<1x1xf32>
    %20 = vector.extract_strided_slice %11 {offsets = [64, 0], sizes = [64, 1], strides = [1, 1]} : vector<192x1xf32> to vector<64x1xf32>
    %21 = vector.shape_cast %20 : vector<64x1xf32> to vector<1x64x1xf32>
    %cst_10 = arith.constant dense<0.000000e+00> : vector<1xf32>
    %22 = vector.multi_reduction <add>, %21, %cst_10 [1, 2] : vector<1x64x1xf32> to vector<1xf32>
    %23 = vector.shape_cast %22 : vector<1xf32> to vector<1x1x1xf32>
    %24 = vector.extract %23[0, 0, 0] : f32 from vector<1x1x1xf32>
    %25 = vector.broadcast %24 : f32 to vector<1x1xf32>
    %cst_11 = arith.constant 6.400000e+01 : f32
    %26 = vector.broadcast %cst_11 : f32 to vector<1x1xf32>
    %27 = arith.divf %25, %26 : vector<1x1xf32>
    %28 = vector.extract_strided_slice %11 {offsets = [128, 0], sizes = [64, 1], strides = [1, 1]} : vector<192x1xf32> to vector<64x1xf32>
    %29 = vector.shape_cast %28 : vector<64x1xf32> to vector<1x64x1xf32>
    %cst_12 = arith.constant dense<0.000000e+00> : vector<1xf32>
    %30 = vector.multi_reduction <add>, %29, %cst_12 [1, 2] : vector<1x64x1xf32> to vector<1xf32>
    %31 = vector.shape_cast %30 : vector<1xf32> to vector<1x1x1xf32>
    %32 = vector.extract %31[0, 0, 0] : f32 from vector<1x1x1xf32>
    %33 = vector.broadcast %32 : f32 to vector<1x1xf32>
    %cst_13 = arith.constant 6.400000e+01 : f32
    %34 = vector.broadcast %cst_13 : f32 to vector<1x1xf32>
    %35 = arith.divf %33, %34 : vector<1x1xf32>
    %36 = arith.maximumf %19, %27 : vector<1x1xf32>
    %37 = arith.maximumf %36, %35 : vector<1x1xf32>
    %38 = arith.subf %19, %37 : vector<1x1xf32>
    %39 = math.exp %38 : vector<1x1xf32>
    %40 = arith.subf %27, %37 : vector<1x1xf32>
    %41 = math.exp %40 : vector<1x1xf32>
    %42 = arith.subf %35, %37 : vector<1x1xf32>
    %43 = math.exp %42 : vector<1x1xf32>
    %44 = arith.addf %39, %41 : vector<1x1xf32>
    %45 = arith.addf %44, %43 : vector<1x1xf32>
    %cst_14 = arith.constant 1.000000e+00 : f32
    %46 = vector.broadcast %cst_14 : f32 to vector<1x1xf32>
    %47 = arith.divf %46, %45 : vector<1x1xf32>
    %48 = arith.mulf %39, %47 : vector<1x1xf32>
    %49 = vector.extract_strided_slice %0 {offsets = [0, 0], sizes = [64, 32], strides = [1, 1]} : vector<192x32xf32> to vector<64x32xf32>
    %50 = vector.broadcast %48 : vector<1x1xf32> to vector<64x32xf32>
    %51 = arith.mulf %50, %49 : vector<64x32xf32>
    %52 = arith.mulf %41, %47 : vector<1x1xf32>
    %53 = vector.extract_strided_slice %0 {offsets = [64, 0], sizes = [64, 32], strides = [1, 1]} : vector<192x32xf32> to vector<64x32xf32>
    %54 = vector.broadcast %52 : vector<1x1xf32> to vector<64x32xf32>
    %55 = arith.mulf %54, %53 : vector<64x32xf32>
    %56 = arith.addf %51, %55 : vector<64x32xf32>
    %57 = arith.mulf %43, %47 : vector<1x1xf32>
    %58 = vector.extract_strided_slice %0 {offsets = [128, 0], sizes = [64, 32], strides = [1, 1]} : vector<192x32xf32> to vector<64x32xf32>
    %59 = vector.broadcast %57 : vector<1x1xf32> to vector<64x32xf32>
    %60 = arith.mulf %59, %58 : vector<64x32xf32>
    %61 = arith.addf %56, %60 : vector<64x32xf32>
    %c0_15 = arith.constant 0 : index
    %c0_16 = arith.constant 0 : index
    %62 = vector.load %arg5[%c0_15, %c0_16] : memref<64x32xf32, #tpu.memory_space<vmem>>, vector<64x32xf32>
    tpu.vector_store %arg5[%c0_15, %c0_16], %61 {strides = array<i32>} : memref<64x32xf32, #tpu.memory_space<vmem>>, vector<64x32xf32>,
    return
  }
  func.func @transform_0(%arg0: i32) -> (i32, i32) {
    %c0_i32 = arith.constant 0 : i32
    %c0_i32_0 = arith.constant 0 : i32
    %c0_i32_1 = arith.constant 0 : i32
    return %c0_i32, %c0_i32_0 : i32, i32
  }
  func.func @transform_1(%arg0: i32) -> (i32, i32) {
    %c0_i32 = arith.constant 0 : i32
    %c0_i32_0 = arith.constant 0 : i32
    %c0_i32_1 = arith.constant 0 : i32
    return %c0_i32, %c0_i32_0 : i32, i32
  }
  func.func @transform_2(%arg0: i32) -> (i32, i32) {
    %c0_i32 = arith.constant 0 : i32
    %c0_i32_0 = arith.constant 0 : i32
    %c0_i32_1 = arith.constant 0 : i32
    return %c0_i32, %c0_i32_0 : i32, i32
  }
  func.func @transform_3(%arg0: i32) -> (i32, i32) {
    %c0_i32 = arith.constant 0 : i32
    %c0_i32_0 = arith.constant 0 : i32
    %c0_i32_1 = arith.constant 0 : i32
    return %c0_i32, %c0_i32_0 : i32, i32
  }
  func.func @transform_4(%arg0: i32) -> (i32, i32) {
    %c0_i32 = arith.constant 0 : i32
    %c0_i32_0 = arith.constant 0 : i32
    %c0_i32_1 = arith.constant 0 : i32
    return %c0_i32, %c0_i32_0 : i32, i32
  }
}

module attributes {stable_mosaic.version = 11 : i64} {
  func.func @_proj_kernel(%arg0: i32, %arg1: memref<128x32xf32, #tpu.memory_space<vmem>>, %arg2: memref<32x32xf32, #tpu.memory_space<vmem>>, %arg3: memref<1x32xf32, #tpu.memory_space<vmem>>, %arg4: memref<32x32xf32, #tpu.memory_space<vmem>>, %arg5: memref<1x32xf32, #tpu.memory_space<vmem>>, %arg6: memref<128x32xf32, #tpu.memory_space<vmem>>) attributes {dimension_semantics = [#tpu.dimension_semantics<arbitrary>], iteration_bounds = array<i64: 1>, scalar_prefetch = 0 : i64, scratch_operands = 0 : i64, tpu.core_type = #tpu.core_type<tc>, window_params = [{pipeline_mode = #tpu.pipeline_mode<synchronous>, transform_indices = @transform_0, window_bounds = array<i64: 128, 32>}, {pipeline_mode = #tpu.pipeline_mode<synchronous>, transform_indices = @transform_1, window_bounds = array<i64: 32, 32>}, {pipeline_mode = #tpu.pipeline_mode<synchronous>, transform_indices = @transform_2, window_bounds = array<i64: 1, 32>}, {pipeline_mode = #tpu.pipeline_mode<synchronous>, transform_indices = @transform_3, window_bounds = array<i64: 32, 32>}, {pipeline_mode = #tpu.pipeline_mode<synchronous>, transform_indices = @transform_4, window_bounds = array<i64: 1, 32>}, {pipeline_mode = #tpu.pipeline_mode<synchronous>, transform_indices = @transform_5, window_bounds = array<i64: 128, 32>}]} {
    %c0 = arith.constant 0 : index
    %c0_0 = arith.constant 0 : index
    %0 = vector.load %arg1[%c0, %c0_0] : memref<128x32xf32, #tpu.memory_space<vmem>>, vector<128x32xf32>
    %c0_1 = arith.constant 0 : index
    %c0_2 = arith.constant 0 : index
    %1 = vector.load %arg2[%c0_1, %c0_2] : memref<32x32xf32, #tpu.memory_space<vmem>>, vector<32x32xf32>
    %cst = arith.constant dense<0.000000e+00> : vector<128x32xf32>
    %2 = tpu.matmul %0, %1, %cst {dimension_numbers = #tpu.dot_dimension_numbers<[1], [1], [0], [0], [0, 0, 1, 0], [], []>} : vector<128x32xf32>, vector<32x32xf32>, vector<128x32xf32> -> vector<128x32xf32>
    %c0_3 = arith.constant 0 : index
    %c0_4 = arith.constant 0 : index
    %3 = vector.load %arg3[%c0_3, %c0_4] : memref<1x32xf32, #tpu.memory_space<vmem>>, vector<1x32xf32>
    %4 = vector.broadcast %3 : vector<1x32xf32> to vector<128x32xf32>
    %5 = arith.addf %2, %4 : vector<128x32xf32>
    %cst_5 = arith.constant 0.000000e+00 : f32
    %6 = vector.broadcast %cst_5 : f32 to vector<128x32xf32>
    %7 = arith.cmpf ogt, %5, %6 : vector<128x32xf32>
    %cst_6 = arith.constant 0.000000e+00 : f32
    %8 = vector.broadcast %cst_6 : f32 to vector<128x32xf32>
    %9 = arith.minimumf %5, %8 : vector<128x32xf32>
    %10 = math.exp %9 : vector<128x32xf32>
    %cst_7 = arith.constant 1.000000e+00 : f32
    %11 = vector.broadcast %cst_7 : f32 to vector<128x32xf32>
    %12 = arith.subf %10, %11 : vector<128x32xf32>
    %13 = arith.select %7, %5, %12 : vector<128x32xi1>, vector<128x32xf32>
    %c0_8 = arith.constant 0 : index
    %c0_9 = arith.constant 0 : index
    %14 = vector.load %arg4[%c0_8, %c0_9] : memref<32x32xf32, #tpu.memory_space<vmem>>, vector<32x32xf32>
    %cst_10 = arith.constant dense<0.000000e+00> : vector<128x32xf32>
    %15 = tpu.matmul %13, %14, %cst_10 {dimension_numbers = #tpu.dot_dimension_numbers<[1], [1], [0], [0], [0, 0, 1, 0], [], []>} : vector<128x32xf32>, vector<32x32xf32>, vector<128x32xf32> -> vector<128x32xf32>
    %c0_11 = arith.constant 0 : index
    %c0_12 = arith.constant 0 : index
    %16 = vector.load %arg5[%c0_11, %c0_12] : memref<1x32xf32, #tpu.memory_space<vmem>>, vector<1x32xf32>
    %17 = vector.broadcast %16 : vector<1x32xf32> to vector<128x32xf32>
    %18 = arith.addf %15, %17 : vector<128x32xf32>
    %c0_13 = arith.constant 0 : index
    %c0_14 = arith.constant 0 : index
    %19 = vector.load %arg6[%c0_13, %c0_14] : memref<128x32xf32, #tpu.memory_space<vmem>>, vector<128x32xf32>
    tpu.vector_store %arg6[%c0_13, %c0_14], %18 {strides = array<i32>} : memref<128x32xf32, #tpu.memory_space<vmem>>, vector<128x32xf32>,
    return
  }
  func.func @transform_0(%arg0: i32) -> (i32, i32) {
    %c0_i32 = arith.constant 0 : i32
    %c0_i32_0 = arith.constant 0 : i32
    %c0_i32_1 = arith.constant 0 : i32
    return %c0_i32, %c0_i32_0 : i32, i32
  }
  func.func @transform_1(%arg0: i32) -> (i32, i32) {
    %c0_i32 = arith.constant 0 : i32
    %c0_i32_0 = arith.constant 0 : i32
    %c0_i32_1 = arith.constant 0 : i32
    return %c0_i32, %c0_i32_0 : i32, i32
  }
  func.func @transform_2(%arg0: i32) -> (i32, i32) {
    %c0_i32 = arith.constant 0 : i32
    %c0_i32_0 = arith.constant 0 : i32
    %c0_i32_1 = arith.constant 0 : i32
    return %c0_i32, %c0_i32_0 : i32, i32
  }
  func.func @transform_3(%arg0: i32) -> (i32, i32) {
    %c0_i32 = arith.constant 0 : i32
    %c0_i32_0 = arith.constant 0 : i32
    %c0_i32_1 = arith.constant 0 : i32
    return %c0_i32, %c0_i32_0 : i32, i32
  }
  func.func @transform_4(%arg0: i32) -> (i32, i32) {
    %c0_i32 = arith.constant 0 : i32
    %c0_i32_0 = arith.constant 0 : i32
    %c0_i32_1 = arith.constant 0 : i32
    return %c0_i32, %c0_i32_0 : i32, i32
  }
  func.func @transform_5(%arg0: i32) -> (i32, i32) {
    %c0_i32 = arith.constant 0 : i32
    %c0_i32_0 = arith.constant 0 : i32
    %c0_i32_1 = arith.constant 0 : i32
    return %c0_i32, %c0_i32_0 : i32, i32
  }
}

module attributes {stable_mosaic.version = 11 : i64} {
  func.func @_proj_kernel(%arg0: i32, %arg1: memref<192x32xf32, #tpu.memory_space<vmem>>, %arg2: memref<32x32xf32, #tpu.memory_space<vmem>>, %arg3: memref<1x32xf32, #tpu.memory_space<vmem>>, %arg4: memref<32x32xf32, #tpu.memory_space<vmem>>, %arg5: memref<1x32xf32, #tpu.memory_space<vmem>>, %arg6: memref<192x32xf32, #tpu.memory_space<vmem>>) attributes {dimension_semantics = [#tpu.dimension_semantics<arbitrary>], iteration_bounds = array<i64: 1>, scalar_prefetch = 0 : i64, scratch_operands = 0 : i64, tpu.core_type = #tpu.core_type<tc>, window_params = [{pipeline_mode = #tpu.pipeline_mode<synchronous>, transform_indices = @transform_0, window_bounds = array<i64: 192, 32>}, {pipeline_mode = #tpu.pipeline_mode<synchronous>, transform_indices = @transform_1, window_bounds = array<i64: 32, 32>}, {pipeline_mode = #tpu.pipeline_mode<synchronous>, transform_indices = @transform_2, window_bounds = array<i64: 1, 32>}, {pipeline_mode = #tpu.pipeline_mode<synchronous>, transform_indices = @transform_3, window_bounds = array<i64: 32, 32>}, {pipeline_mode = #tpu.pipeline_mode<synchronous>, transform_indices = @transform_4, window_bounds = array<i64: 1, 32>}, {pipeline_mode = #tpu.pipeline_mode<synchronous>, transform_indices = @transform_5, window_bounds = array<i64: 192, 32>}]} {
    %c0 = arith.constant 0 : index
    %c0_0 = arith.constant 0 : index
    %0 = vector.load %arg1[%c0, %c0_0] : memref<192x32xf32, #tpu.memory_space<vmem>>, vector<192x32xf32>
    %c0_1 = arith.constant 0 : index
    %c0_2 = arith.constant 0 : index
    %1 = vector.load %arg2[%c0_1, %c0_2] : memref<32x32xf32, #tpu.memory_space<vmem>>, vector<32x32xf32>
    %cst = arith.constant dense<0.000000e+00> : vector<192x32xf32>
    %2 = tpu.matmul %0, %1, %cst {dimension_numbers = #tpu.dot_dimension_numbers<[1], [1], [0], [0], [0, 0, 1, 0], [], []>} : vector<192x32xf32>, vector<32x32xf32>, vector<192x32xf32> -> vector<192x32xf32>
    %c0_3 = arith.constant 0 : index
    %c0_4 = arith.constant 0 : index
    %3 = vector.load %arg3[%c0_3, %c0_4] : memref<1x32xf32, #tpu.memory_space<vmem>>, vector<1x32xf32>
    %4 = vector.broadcast %3 : vector<1x32xf32> to vector<192x32xf32>
    %5 = arith.addf %2, %4 : vector<192x32xf32>
    %cst_5 = arith.constant 0.000000e+00 : f32
    %6 = vector.broadcast %cst_5 : f32 to vector<192x32xf32>
    %7 = arith.cmpf ogt, %5, %6 : vector<192x32xf32>
    %cst_6 = arith.constant 0.000000e+00 : f32
    %8 = vector.broadcast %cst_6 : f32 to vector<192x32xf32>
    %9 = arith.minimumf %5, %8 : vector<192x32xf32>
    %10 = math.exp %9 : vector<192x32xf32>
    %cst_7 = arith.constant 1.000000e+00 : f32
    %11 = vector.broadcast %cst_7 : f32 to vector<192x32xf32>
    %12 = arith.subf %10, %11 : vector<192x32xf32>
    %13 = arith.select %7, %5, %12 : vector<192x32xi1>, vector<192x32xf32>
    %c0_8 = arith.constant 0 : index
    %c0_9 = arith.constant 0 : index
    %14 = vector.load %arg4[%c0_8, %c0_9] : memref<32x32xf32, #tpu.memory_space<vmem>>, vector<32x32xf32>
    %cst_10 = arith.constant dense<0.000000e+00> : vector<192x32xf32>
    %15 = tpu.matmul %13, %14, %cst_10 {dimension_numbers = #tpu.dot_dimension_numbers<[1], [1], [0], [0], [0, 0, 1, 0], [], []>} : vector<192x32xf32>, vector<32x32xf32>, vector<192x32xf32> -> vector<192x32xf32>
    %c0_11 = arith.constant 0 : index
    %c0_12 = arith.constant 0 : index
    %16 = vector.load %arg5[%c0_11, %c0_12] : memref<1x32xf32, #tpu.memory_space<vmem>>, vector<1x32xf32>
    %17 = vector.broadcast %16 : vector<1x32xf32> to vector<192x32xf32>
    %18 = arith.addf %15, %17 : vector<192x32xf32>
    %c0_13 = arith.constant 0 : index
    %c0_14 = arith.constant 0 : index
    %19 = vector.load %arg6[%c0_13, %c0_14] : memref<192x32xf32, #tpu.memory_space<vmem>>, vector<192x32xf32>
    tpu.vector_store %arg6[%c0_13, %c0_14], %18 {strides = array<i32>} : memref<192x32xf32, #tpu.memory_space<vmem>>, vector<192x32xf32>,
    return
  }
  func.func @transform_0(%arg0: i32) -> (i32, i32) {
    %c0_i32 = arith.constant 0 : i32
    %c0_i32_0 = arith.constant 0 : i32
    %c0_i32_1 = arith.constant 0 : i32
    return %c0_i32, %c0_i32_0 : i32, i32
  }
  func.func @transform_1(%arg0: i32) -> (i32, i32) {
    %c0_i32 = arith.constant 0 : i32
    %c0_i32_0 = arith.constant 0 : i32
    %c0_i32_1 = arith.constant 0 : i32
    return %c0_i32, %c0_i32_0 : i32, i32
  }
  func.func @transform_2(%arg0: i32) -> (i32, i32) {
    %c0_i32 = arith.constant 0 : i32
    %c0_i32_0 = arith.constant 0 : i32
    %c0_i32_1 = arith.constant 0 : i32
    return %c0_i32, %c0_i32_0 : i32, i32
  }
  func.func @transform_3(%arg0: i32) -> (i32, i32) {
    %c0_i32 = arith.constant 0 : i32
    %c0_i32_0 = arith.constant 0 : i32
    %c0_i32_1 = arith.constant 0 : i32
    return %c0_i32, %c0_i32_0 : i32, i32
  }
  func.func @transform_4(%arg0: i32) -> (i32, i32) {
    %c0_i32 = arith.constant 0 : i32
    %c0_i32_0 = arith.constant 0 : i32
    %c0_i32_1 = arith.constant 0 : i32
    return %c0_i32, %c0_i32_0 : i32, i32
  }
  func.func @transform_5(%arg0: i32) -> (i32, i32) {
    %c0_i32 = arith.constant 0 : i32
    %c0_i32_0 = arith.constant 0 : i32
    %c0_i32_1 = arith.constant 0 : i32
    return %c0_i32, %c0_i32_0 : i32, i32
  }
}

module attributes {stable_mosaic.version = 11 : i64} {
  func.func @_contrast_kernel(%arg0: i32, %arg1: memref<3xi32, #tpu.memory_space<smem>>, %arg2: memref<3xi32, #tpu.memory_space<smem>>, %arg3: memref<1x64x32xf32, #tpu.memory_space<vmem>>, %arg4: memref<1x64x32xf32, #tpu.memory_space<vmem>>, %arg5: memref<64x64xf32, #tpu.memory_space<vmem>>, %arg6: memref<64x64xf32, #tpu.memory_space<vmem>>, %arg7: memref<1x1x128xf32, #tpu.memory_space<vmem>>, %arg8: memref<1x1x128xf32, #tpu.memory_space<vmem>>) attributes {dimension_semantics = [#tpu.dimension_semantics<parallel>], iteration_bounds = array<i64: 3>, scalar_prefetch = 2 : i64, scratch_operands = 0 : i64, tpu.core_type = #tpu.core_type<tc>, window_params = [{transform_indices = @transform_0, window_bounds = array<i64: 1, 64, 32>}, {transform_indices = @transform_1, window_bounds = array<i64: 1, 64, 32>}, {pipeline_mode = #tpu.pipeline_mode<synchronous>, transform_indices = @transform_2, window_bounds = array<i64: 64, 64>}, {pipeline_mode = #tpu.pipeline_mode<synchronous>, transform_indices = @transform_3, window_bounds = array<i64: 64, 64>}, {transform_indices = @transform_4, window_bounds = array<i64: 1, 1, 128>}, {transform_indices = @transform_5, window_bounds = array<i64: 1, 1, 128>}]} {
    %c0 = arith.constant 0 : index
    %c0_0 = arith.constant 0 : index
    %c0_1 = arith.constant 0 : index
    %0 = vector.load %arg3[%c0, %c0_0, %c0_1] : memref<1x64x32xf32, #tpu.memory_space<vmem>>, vector<1x64x32xf32>
    %1 = vector.shape_cast %0 : vector<1x64x32xf32> to vector<64x32xf32>
    %c0_2 = arith.constant 0 : index
    %c0_3 = arith.constant 0 : index
    %c0_4 = arith.constant 0 : index
    %2 = vector.load %arg4[%c0_2, %c0_3, %c0_4] : memref<1x64x32xf32, #tpu.memory_space<vmem>>, vector<1x64x32xf32>
    %3 = vector.shape_cast %2 : vector<1x64x32xf32> to vector<64x32xf32>
    %c0_5 = arith.constant 0 : index
    %c0_6 = arith.constant 0 : index
    %4 = vector.load %arg5[%c0_5, %c0_6] : memref<64x64xf32, #tpu.memory_space<vmem>>, vector<64x64xf32>
    %c0_7 = arith.constant 0 : index
    %c0_8 = arith.constant 0 : index
    %5 = vector.load %arg6[%c0_7, %c0_8] : memref<64x64xf32, #tpu.memory_space<vmem>>, vector<64x64xf32>
    %6 = arith.mulf %1, %1 : vector<64x32xf32>
    %cst = arith.constant dense<0.000000e+00> : vector<64xf32>
    %7 = vector.multi_reduction <add>, %6, %cst [1] : vector<64x32xf32> to vector<64xf32>
    %8 = vector.shape_cast %7 : vector<64xf32> to vector<64x1xf32>
    %9 = math.rsqrt %8 : vector<64x1xf32>
    %10 = vector.broadcast %9 : vector<64x1xf32> to vector<64x32xf32>
    %11 = arith.mulf %1, %10 : vector<64x32xf32>
    %12 = arith.mulf %3, %3 : vector<64x32xf32>
    %cst_9 = arith.constant dense<0.000000e+00> : vector<64xf32>
    %13 = vector.multi_reduction <add>, %12, %cst_9 [1] : vector<64x32xf32> to vector<64xf32>
    %14 = vector.shape_cast %13 : vector<64xf32> to vector<64x1xf32>
    %15 = math.rsqrt %14 : vector<64x1xf32>
    %16 = vector.broadcast %15 : vector<64x1xf32> to vector<64x32xf32>
    %17 = arith.mulf %3, %16 : vector<64x32xf32>
    %cst_10 = arith.constant dense<0.000000e+00> : vector<64x64xf32>
    %18 = tpu.matmul %11, %17, %cst_10 {dimension_numbers = #tpu.dot_dimension_numbers<[1], [1], [0], [0], [0, 0, 1, 0], [], []>} : vector<64x32xf32>, vector<64x32xf32>, vector<64x64xf32> -> vector<64x64xf32>
    %cst_11 = arith.constant 1.250000e+00 : f32
    %19 = vector.broadcast %cst_11 : f32 to vector<64x64xf32>
    %20 = arith.mulf %18, %19 : vector<64x64xf32>
    %21 = math.exp %20 : vector<64x64xf32>
    %cst_12 = arith.constant dense<0.000000e+00> : vector<64xf32>
    %22 = vector.multi_reduction <add>, %21, %cst_12 [1] : vector<64x64xf32> to vector<64xf32>
    %23 = vector.shape_cast %22 : vector<64xf32> to vector<64x1xf32>
    %24 = arith.mulf %21, %4 : vector<64x64xf32>
    %cst_13 = arith.constant dense<0.000000e+00> : vector<64xf32>
    %25 = vector.multi_reduction <add>, %24, %cst_13 [1] : vector<64x64xf32> to vector<64xf32>
    %26 = vector.shape_cast %25 : vector<64xf32> to vector<64x1xf32>
    %cst_14 = arith.constant 9.99999993E-9 : f32
    %27 = vector.broadcast %cst_14 : f32 to vector<64x1xf32>
    %28 = arith.addf %23, %27 : vector<64x1xf32>
    %29 = tpu.reciprocal %28 {approx = true} : vector<64x1xf32> -> vector<64x1xf32>
    %30 = arith.mulf %26, %29 : vector<64x1xf32>
    %31 = math.log %30 : vector<64x1xf32>
    %32 = vector.shape_cast %31 : vector<64x1xf32> to vector<1x64x1xf32>
    %cst_15 = arith.constant dense<0.000000e+00> : vector<1xf32>
    %33 = vector.multi_reduction <add>, %32, %cst_15 [1, 2] : vector<1x64x1xf32> to vector<1xf32>
    %34 = vector.shape_cast %33 : vector<1xf32> to vector<1x1x1xf32>
    %35 = vector.extract %34[0, 0, 0] : f32 from vector<1x1x1xf32>
    %36 = vector.broadcast %35 : f32 to vector<1x1xf32>
    %cst_16 = arith.constant 6.400000e+01 : f32
    %37 = vector.broadcast %cst_16 : f32 to vector<1x1xf32>
    %38 = arith.divf %36, %37 : vector<1x1xf32>
    %cst_17 = arith.constant dense<0.000000e+00> : vector<64xf32>
    %39 = vector.multi_reduction <add>, %21, %cst_17 [0] : vector<64x64xf32> to vector<64xf32>
    %40 = vector.shape_cast %39 : vector<64xf32> to vector<1x64xf32>
    %41 = arith.mulf %21, %5 : vector<64x64xf32>
    %cst_18 = arith.constant dense<0.000000e+00> : vector<64xf32>
    %42 = vector.multi_reduction <add>, %41, %cst_18 [0] : vector<64x64xf32> to vector<64xf32>
    %43 = vector.shape_cast %42 : vector<64xf32> to vector<1x64xf32>
    %cst_19 = arith.constant 9.99999993E-9 : f32
    %44 = vector.broadcast %cst_19 : f32 to vector<1x64xf32>
    %45 = arith.addf %40, %44 : vector<1x64xf32>
    %46 = tpu.reciprocal %45 {approx = true} : vector<1x64xf32> -> vector<1x64xf32>
    %47 = arith.mulf %43, %46 : vector<1x64xf32>
    %48 = math.log %47 : vector<1x64xf32>
    %49 = vector.shape_cast %48 : vector<1x64xf32> to vector<1x1x64xf32>
    %cst_20 = arith.constant dense<0.000000e+00> : vector<1xf32>
    %50 = vector.multi_reduction <add>, %49, %cst_20 [1, 2] : vector<1x1x64xf32> to vector<1xf32>
    %51 = vector.shape_cast %50 : vector<1xf32> to vector<1x1x1xf32>
    %52 = vector.extract %51[0, 0, 0] : f32 from vector<1x1x1xf32>
    %53 = vector.broadcast %52 : f32 to vector<1x1xf32>
    %cst_21 = arith.constant 6.400000e+01 : f32
    %54 = vector.broadcast %cst_21 : f32 to vector<1x1xf32>
    %55 = arith.divf %53, %54 : vector<1x1xf32>
    %56 = vector.shape_cast %38 : vector<1x1xf32> to vector<1x1x1xf32>
    %57 = vector.broadcast %56 : vector<1x1x1xf32> to vector<1x1x128xf32>
    %c0_22 = arith.constant 0 : index
    %c0_23 = arith.constant 0 : index
    %c0_24 = arith.constant 0 : index
    %58 = vector.load %arg7[%c0_22, %c0_23, %c0_24] : memref<1x1x128xf32, #tpu.memory_space<vmem>>, vector<1x1x128xf32>
    tpu.vector_store %arg7[%c0_22, %c0_23, %c0_24], %57 {strides = array<i32>} : memref<1x1x128xf32, #tpu.memory_space<vmem>>, vector<1x1x128xf32>,
    %59 = vector.shape_cast %55 : vector<1x1xf32> to vector<1x1x1xf32>
    %60 = vector.broadcast %59 : vector<1x1x1xf32> to vector<1x1x128xf32>
    %c0_25 = arith.constant 0 : index
    %c0_26 = arith.constant 0 : index
    %c0_27 = arith.constant 0 : index
    %61 = vector.load %arg8[%c0_25, %c0_26, %c0_27] : memref<1x1x128xf32, #tpu.memory_space<vmem>>, vector<1x1x128xf32>
    tpu.vector_store %arg8[%c0_25, %c0_26, %c0_27], %60 {strides = array<i32>} : memref<1x1x128xf32, #tpu.memory_space<vmem>>, vector<1x1x128xf32>,
    return
  }
  func.func @transform_0(%arg0: i32, %arg1: memref<3xi32, #tpu.memory_space<smem>>, %arg2: memref<3xi32, #tpu.memory_space<smem>>) -> (i32, i32, i32) {
    %0 = arith.index_cast %arg0 : i32 to index
    %1 = memref.load %arg1[%0] : memref<3xi32, #tpu.memory_space<smem>>
    %c0_i32 = arith.constant 0 : i32
    %c0_i32_0 = arith.constant 0 : i32
    %c0_i32_1 = arith.constant 0 : i32
    return %1, %c0_i32, %c0_i32_0 : i32, i32, i32
  }
  func.func @transform_1(%arg0: i32, %arg1: memref<3xi32, #tpu.memory_space<smem>>, %arg2: memref<3xi32, #tpu.memory_space<smem>>) -> (i32, i32, i32) {
    %0 = arith.index_cast %arg0 : i32 to index
    %1 = memref.load %arg2[%0] : memref<3xi32, #tpu.memory_space<smem>>
    %c0_i32 = arith.constant 0 : i32
    %c0_i32_0 = arith.constant 0 : i32
    %c0_i32_1 = arith.constant 0 : i32
    return %1, %c0_i32, %c0_i32_0 : i32, i32, i32
  }
  func.func @transform_2(%arg0: i32, %arg1: memref<3xi32, #tpu.memory_space<smem>>, %arg2: memref<3xi32, #tpu.memory_space<smem>>) -> (i32, i32) {
    %c0_i32 = arith.constant 0 : i32
    %c0_i32_0 = arith.constant 0 : i32
    %c0_i32_1 = arith.constant 0 : i32
    return %c0_i32, %c0_i32_0 : i32, i32
  }
  func.func @transform_3(%arg0: i32, %arg1: memref<3xi32, #tpu.memory_space<smem>>, %arg2: memref<3xi32, #tpu.memory_space<smem>>) -> (i32, i32) {
    %c0_i32 = arith.constant 0 : i32
    %c0_i32_0 = arith.constant 0 : i32
    %c0_i32_1 = arith.constant 0 : i32
    return %c0_i32, %c0_i32_0 : i32, i32
  }
  func.func @transform_4(%arg0: i32, %arg1: memref<3xi32, #tpu.memory_space<smem>>, %arg2: memref<3xi32, #tpu.memory_space<smem>>) -> (i32, i32, i32) {
    %c0_i32 = arith.constant 0 : i32
    %c0_i32_0 = arith.constant 0 : i32
    %c0_i32_1 = arith.constant 0 : i32
    return %arg0, %c0_i32, %c0_i32_0 : i32, i32, i32
  }
  func.func @transform_5(%arg0: i32, %arg1: memref<3xi32, #tpu.memory_space<smem>>, %arg2: memref<3xi32, #tpu.memory_space<smem>>) -> (i32, i32, i32) {
    %c0_i32 = arith.constant 0 : i32
    %c0_i32_0 = arith.constant 0 : i32
    %c0_i32_1 = arith.constant 0 : i32
    return %arg0, %c0_i32, %c0_i32_0 : i32, i32, i32
  }
}

</mosaic_0001>

<bundles_post_ra>
// kernel: forward.9
= control target key start
LH: loop header
LB: loop body
LE: loop exit
PB: predicated region body
PF: predicated region fallthrough
CT: control target
= control target key end

     0   :  { %vm73_vm0 = vcmask 261120   ;;  %s1081_s3 = inlined_call_operand.vmem [shape: f32[32,32], index: 3, kind: input, shape index: {}]   ;;  %s1082_s2 = inlined_call_operand.vmem [shape: f32[32,32], index: 2, kind: input, shape index: {}]   ;;  %s1083_s1 = inlined_call_operand.vmem [shape: f32[192,32], index: 1, kind: input, shape index: {}]   ;;  %s1084_s0 = inlined_call_operand.vmem [shape: f32[192,32], index: 0, kind: input, shape index: {}]   ;;  %s1085_s4 = inlined_call_operand.vmem [shape: f32[192,32], index: 4, kind: output, shape index: {}]  }
   0x1   :  { %v72_v0 = vld [vmem:[%s1081_s3 + $0x18] sm:$0xff]  ;;  %v71_v2 = vld [vmem:[%s1081_s3 + $0x10] sm:$0xff]  ;;  %v70_v4 = vld [vmem:[%s1081_s3 + $0x8] sm:$0xff] }
   0x2   :  { %v44_v1 = vld [vmem:[%s1082_s2 + $0x18] sm:$0xff]  ;;  %592 = vmatpush.xpose.msk.msra.mxu0 %vm73_vm0, %v72_v0  ;;  %672 = vmatpush.xpose.msk.msra.mxu2 %vm73_vm0, %v72_v0  ;;  %v43_v3 = vld [vmem:[%s1082_s2 + $0x10] sm:$0xff]  ;;  %v42_v5 = vld [vmem:[%s1082_s2 + $0x8] sm:$0xff] }
   0x3   :  { %620 = vmatpush.xpose.msk.msra.mxu1 %vm73_vm0, %v44_v1  ;;  %676 = vmatpush.xpose.msk.msra.mxu3 %vm73_vm0, %v44_v1  ;;  %v69_v6 = vld [vmem:[%s1081_s3] sm:$0xff]  ;;  %v46_v12 = vld [vmem:[%s1083_s1 + $0x8] sm:$0xff]  ;;  %v47_v16 = vld [vmem:[%s1083_s1 + $0x10] sm:$0xff] }
   0x4   :  { %v41_v7 = vld [vmem:[%s1082_s2] sm:$0xff]  ;;  %v58_v13 = vld [vmem:[%s1083_s1 + $0x68] sm:$0xff]  ;;  %v59_v17 = vld [vmem:[%s1083_s1 + $0x70] sm:$0xff] }
   0x5   :  { %v45_v8 = vld [vmem:[%s1083_s1] sm:$0xff]  ;;  %v18_v14 = vld [vmem:[%s1084_s0 + $0x8] sm:$0xff]  ;;  %v19_v18 = vld [vmem:[%s1084_s0 + $0x10] sm:$0xff] }
   0x6   :  { %593 = vmatpush.xpose.msk.msra.mxu0 %vm73_vm0, %v71_v2  ;;  %673 = vmatpush.xpose.msk.msra.mxu2 %vm73_vm0, %v71_v2  ;;  %v57_v9 = vld [vmem:[%s1083_s1 + $0x60] sm:$0xff]  ;;  %v30_v15 = vld [vmem:[%s1084_s0 + $0x68] sm:$0xff]  ;;  %v31_v19 = vld [vmem:[%s1084_s0 + $0x70] sm:$0xff] }
   0x7   :  { %621 = vmatpush.xpose.msk.msra.mxu1 %vm73_vm0, %v43_v3  ;;  %677 = vmatpush.xpose.msk.msra.mxu3 %vm73_vm0, %v43_v3  ;;  %v17_v10 = vld [vmem:[%s1084_s0] sm:$0xff]  ;;  %v48_v20 = vld [vmem:[%s1083_s1 + $0x18] sm:$0xff]  ;;  %v50_v28 = vld [vmem:[%s1083_s1 + $0x28] sm:$0xff] }
   0x8   :  { %v29_v11 = vld [vmem:[%s1084_s0 + $0x60] sm:$0xff]  ;;  %v60_v21 = vld [vmem:[%s1083_s1 + $0x78] sm:$0xff]  ;;  %v62_v29 = vld [vmem:[%s1083_s1 + $0x88] sm:$0xff] }
   0x9   :  { %v20_v22 = vld [vmem:[%s1084_s0 + $0x18] sm:$0xff]  ;;  %v49_v24 = vld [vmem:[%s1083_s1 + $0x20] sm:$0xff]  ;;  %v22_v30 = vld [vmem:[%s1084_s0 + $0x28] sm:$0xff] }
   0xa   :  { %594 = vmatpush.xpose.msk.msra.mxu0 %vm73_vm0, %v70_v4  ;;  %674 = vmatpush.xpose.msk.msra.mxu2 %vm73_vm0, %v70_v4  ;;  %v32_v23 = vld [vmem:[%s1084_s0 + $0x78] sm:$0xff]  ;;  %v61_v25 = vld [vmem:[%s1083_s1 + $0x80] sm:$0xff]  ;;  %v34_v31 = vld [vmem:[%s1084_s0 + $0x88] sm:$0xff] }
   0xb   :  { %622 = vmatpush.xpose.msk.msra.mxu1 %vm73_vm0, %v42_v5  ;;  %678 = vmatpush.xpose.msk.msra.mxu3 %vm73_vm0, %v42_v5  ;;  %v21_v26 = vld [vmem:[%s1084_s0 + $0x20] sm:$0xff]  ;;  %v51_v32 = vld [vmem:[%s1083_s1 + $0x30] sm:$0xff]  ;;  %v52_v36 = vld [vmem:[%s1083_s1 + $0x38] sm:$0xff] }
   0xc   :  { %v33_v27 = vld [vmem:[%s1084_s0 + $0x80] sm:$0xff]  ;;  %v63_v33 = vld [vmem:[%s1083_s1 + $0x90] sm:$0xff]  ;;  %v64_v37 = vld [vmem:[%s1083_s1 + $0x98] sm:$0xff] }
   0xd   :  { %v23_v34 = vld [vmem:[%s1084_s0 + $0x30] sm:$0xff]  ;;  %v24_v38 = vld [vmem:[%s1084_s0 + $0x38] sm:$0xff]  ;;  %v53_v40 = vld [vmem:[%s1083_s1 + $0x40] sm:$0xff] }
   0xe   :  { %595 = vmatpush.xpose.msk.msra.mxu0 %vm73_vm0, %v69_v6  ;;  %675 = vmatpush.xpose.msk.msra.mxu2 %vm73_vm0, %v69_v6  ;;  %v35_v35 = vld [vmem:[%s1084_s0 + $0x90] sm:$0xff]  ;;  %v36_v39 = vld [vmem:[%s1084_s0 + $0x98] sm:$0xff]  ;;  %v65_v41 = vld [vmem:[%s1083_s1 + $0xa0] sm:$0xff] }
   0xf   :  { %623 = vmatpush.xpose.msk.msra.mxu1 %vm73_vm0, %v41_v7  ;;  %679 = vmatpush.xpose.msk.msra.mxu3 %vm73_vm0, %v41_v7  ;;  %v25_v42 = vld [vmem:[%s1084_s0 + $0x40] sm:$0xff]  ;;  %v54_v44 = vld [vmem:[%s1083_s1 + $0x48] sm:$0xff]  ;;  %v55_v48 = vld [vmem:[%s1083_s1 + $0x50] sm:$0xff] }
  0x10   :  { %v37_v43 = vld [vmem:[%s1084_s0 + $0xa0] sm:$0xff]  ;;  %v66_v45 = vld [vmem:[%s1083_s1 + $0xa8] sm:$0xff]  ;;  %v67_v49 = vld [vmem:[%s1083_s1 + $0xb0] sm:$0xff] }
  0x11   :  { %596 = vmatmul.msk.f32.vlgmr.msra.gmra.mxu0 %vm73_vm0, %v45_v8  ;;  %608 = vmatmul.msk.f32.vlgmr.msra.gmra.mxu2 %vm73_vm0, %v57_v9  ;;  %v26_v46 = vld [vmem:[%s1084_s0 + $0x48] sm:$0xff]  ;;  %v27_v50 = vld [vmem:[%s1084_s0 + $0x50] sm:$0xff]  ;;  %v56_v52 = vld [vmem:[%s1083_s1 + $0x58] sm:$0xff] }
  0x12   :  { %624 = vmatmul.msk.f32.vlgmr.msra.gmra.mxu1 %vm73_vm0, %v17_v10  ;;  %636 = vmatmul.msk.f32.vlgmr.msra.gmra.mxu3 %vm73_vm0, %v29_v11  ;;  %v38_v47 = vld [vmem:[%s1084_s0 + $0xa8] sm:$0xff]  ;;  %v39_v51 = vld [vmem:[%s1084_s0 + $0xb0] sm:$0xff]  ;;  %v68_v53 = vld [vmem:[%s1083_s1 + $0xb8] sm:$0xff] }
  0x13   :  { %v28_v54 = vld [vmem:[%s1084_s0 + $0x58] sm:$0xff] }
  0x14   :  { %v40_v55 = vld [vmem:[%s1084_s0 + $0xb8] sm:$0xff] }
  0x19   :  { %597 = vmatmul.msk.f32.gmra.mxu0 %vm73_vm0, %v46_v12  ;;  %609 = vmatmul.msk.f32.gmra.mxu2 %vm73_vm0, %v58_v13 }
  0x1a   :  { %625 = vmatmul.msk.f32.gmra.mxu1 %vm73_vm0, %v18_v14  ;;  %637 = vmatmul.msk.f32.gmra.mxu3 %vm73_vm0, %v30_v15 }
  0x21   :  { %598 = vmatmul.msk.f32.gmra.mxu0 %vm73_vm0, %v47_v16  ;;  %610 = vmatmul.msk.f32.gmra.mxu2 %vm73_vm0, %v59_v17 }
  0x22   :  { %626 = vmatmul.msk.f32.gmra.mxu1 %vm73_vm0, %v19_v18  ;;  %638 = vmatmul.msk.f32.gmra.mxu3 %vm73_vm0, %v31_v19 }
  0x29   :  { %599 = vmatmul.msk.f32.gmra.mxu0 %vm73_vm0, %v48_v20  ;;  %611 = vmatmul.msk.f32.gmra.mxu2 %vm73_vm0, %v60_v21 }
  0x2a   :  { %627 = vmatmul.msk.f32.gmra.mxu1 %vm73_vm0, %v20_v22  ;;  %639 = vmatmul.msk.f32.gmra.mxu3 %vm73_vm0, %v32_v23 }
  0x31   :  { %600 = vmatmul.msk.f32.gmra.mxu0 %vm73_vm0, %v49_v24  ;;  %612 = vmatmul.msk.f32.gmra.mxu2 %vm73_vm0, %v61_v25 }
  0x32   :  { %628 = vmatmul.msk.f32.gmra.mxu1 %vm73_vm0, %v21_v26  ;;  %640 = vmatmul.msk.f32.gmra.mxu3 %vm73_vm0, %v33_v27 }
  0x39   :  { %601 = vmatmul.msk.f32.gmra.mxu0 %vm73_vm0, %v50_v28  ;;  %613 = vmatmul.msk.f32.gmra.mxu2 %vm73_vm0, %v62_v29 }
  0x3a   :  { %629 = vmatmul.msk.f32.gmra.mxu1 %vm73_vm0, %v22_v30  ;;  %641 = vmatmul.msk.f32.gmra.mxu3 %vm73_vm0, %v34_v31 }
  0x41   :  { %602 = vmatmul.msk.f32.gmra.mxu0 %vm73_vm0, %v51_v32  ;;  %614 = vmatmul.msk.f32.gmra.mxu2 %vm73_vm0, %v63_v33 }
  0x42   :  { %630 = vmatmul.msk.f32.gmra.mxu1 %vm73_vm0, %v23_v34  ;;  %642 = vmatmul.msk.f32.gmra.mxu3 %vm73_vm0, %v35_v35 }
  0x49   :  { %603 = vmatmul.msk.f32.gmra.mxu0 %vm73_vm0, %v52_v36  ;;  %615 = vmatmul.msk.f32.gmra.mxu2 %vm73_vm0, %v64_v37 }
  0x4a   :  { %631 = vmatmul.msk.f32.gmra.mxu1 %vm73_vm0, %v24_v38  ;;  %643 = vmatmul.msk.f32.gmra.mxu3 %vm73_vm0, %v36_v39 }
  0x51   :  { %604 = vmatmul.msk.f32.gmra.mxu0 %vm73_vm0, %v53_v40  ;;  %616 = vmatmul.msk.f32.gmra.mxu2 %vm73_vm0, %v65_v41 }
  0x52   :  { %632 = vmatmul.msk.f32.gmra.mxu1 %vm73_vm0, %v25_v42  ;;  %644 = vmatmul.msk.f32.gmra.mxu3 %vm73_vm0, %v37_v43 }
  0x59   :  { %605 = vmatmul.msk.f32.gmra.mxu0 %vm73_vm0, %v54_v44  ;;  %617 = vmatmul.msk.f32.gmra.mxu2 %vm73_vm0, %v66_v45 }
  0x5a   :  { %633 = vmatmul.msk.f32.gmra.mxu1 %vm73_vm0, %v26_v46  ;;  %645 = vmatmul.msk.f32.gmra.mxu3 %vm73_vm0, %v38_v47 }
  0x61   :  { %606 = vmatmul.msk.f32.gmra.mxu0 %vm73_vm0, %v55_v48  ;;  %618 = vmatmul.msk.f32.gmra.mxu2 %vm73_vm0, %v67_v49 }
  0x62   :  { %634 = vmatmul.msk.f32.gmra.mxu1 %vm73_vm0, %v27_v50  ;;  %646 = vmatmul.msk.f32.gmra.mxu3 %vm73_vm0, %v39_v51 }
  0x69   :  { %607 = vmatmul.msk.f32.gmra.mxu0 %vm73_vm0, %v56_v52  ;;  %619 = vmatmul.msk.f32.gmra.mxu2 %vm73_vm0, %v68_v53 }
  0x6a   :  { %635 = vmatmul.msk.f32.gmra.mxu1 %vm73_vm0, %v28_v54  ;;  %647 = vmatmul.msk.f32.gmra.mxu3 %vm73_vm0, %v40_v55 }
  0x8e   :  { %v175_v56 = vpop.f32.mrf.mxu0 }
  0x8f   :  { %v348_v57 = vpop.f32.mrf.mxu1 }
  0x90   :  { %v349_v58 = vadd.f32 %v348_v57, %v175_v56 }
  0x92   :  { %v444_v59 = vmin.f32 %v349_v58, 0.0  ;;  %vm420_vm1 = vcmp.gt.f32.partialorder %v349_v58, 0.0 }
  0x94   :  { %v468_v60 = vmul.f32 1.442695, %v444_v59  ;;  %v211_v61 = vpop.f32.mrf.mxu2 }
  0x95   :  { %v384_v62 = vpop.f32.mrf.mxu3 }
  0x96   :  { %680 = vpow2.f32 %v468_v60  ;;  %v385_v63 = vadd.f32 %v384_v62, %v211_v61  ;;  %v178_v0 = vpop.f32.mrf.mxu0 }
  0x97   :  { %v351_v1 = vpop.f32.mrf.mxu1 }
  0x98   :  { %v456_v2 = vmin.f32 %v385_v63, 0.0  ;;  %v352_v3 = vadd.f32 %v351_v1, %v178_v0  ;;  %vm432_vm2 = vcmp.gt.f32.partialorder %v385_v63, 0.0 }
  0x9a   :  { %v492_v4 = vmul.f32 1.442695, %v456_v2  ;;  %v445_v5 = vmin.f32 %v352_v3, 0.0  ;;  %vm421_vm3 = vcmp.gt.f32.partialorder %v352_v3, 0.0 }
  0x9c   :  { %v681_v6 = vpop.eup %680  ;;  %682 = vpow2.f32 %v492_v4  ;;  %v470_v7 = vmul.f32 1.442695, %v445_v5  ;;  %v214_v8 = vpop.f32.mrf.mxu2 }
  0x9d   :  { %v648_v9 = vadd.f32 -1.0, %v681_v6  ;;  %v387_v10 = vpop.f32.mrf.mxu3 }
  0x9e   :  { %684 = vpow2.f32 %v470_v7  ;;  %v388_v11 = vadd.f32 %v387_v10, %v214_v8  ;;  %v181_v12 = vpop.f32.mrf.mxu0 }
  0x9f   :  { %v540_v13 = vsel %vm420_vm1, %v349_v58, %v648_v9  ;;  %v354_v14 = vpop.f32.mrf.mxu1 }
  0xa0   :  { %564 = vst.msk [vmem:[%s1085_s4] sm:$0xff] %vm73_vm0, %v540_v13  ;;  %v457_v15 = vmin.f32 %v388_v11, 0.0  ;;  %v355_v16 = vadd.f32 %v354_v14, %v181_v12  ;;  %vm433_vm4 = vcmp.gt.f32.partialorder %v388_v11, 0.0 }
  0xa2   :  { %v683_v17 = vpop.eup %682  ;;  %v494_v18 = vmul.f32 1.442695, %v457_v15  ;;  %v446_v19 = vmin.f32 %v355_v16, 0.0  ;;  %vm422_vm5 = vcmp.gt.f32.partialorder %v355_v16, 0.0 }
  0xa3   :  { %v660_v20 = vadd.f32 -1.0, %v683_v17 }
  0xa4   :  { %v685_v21 = vpop.eup %684  ;;  %686 = vpow2.f32 %v494_v18  ;;  %v472_v22 = vmul.f32 1.442695, %v446_v19  ;;  %v217_v23 = vpop.f32.mrf.mxu2 }
  0xa5   :  { %v552_v24 = vsel %vm432_vm2, %v385_v63, %v660_v20  ;;  %v649_v25 = vadd.f32 -1.0, %v685_v21  ;;  %v390_v26 = vpop.f32.mrf.mxu3 }
  0xa6   :  { %576 = vst.msk [vmem:[%s1085_s4 + $0x60] sm:$0xff] %vm73_vm0, %v552_v24  ;;  %688 = vpow2.f32 %v472_v22  ;;  %v391_v27 = vadd.f32 %v390_v26, %v217_v23  ;;  %v184_v28 = vpop.f32.mrf.mxu0 }
  0xa7   :  { %v541_v29 = vsel %vm421_vm3, %v352_v3, %v649_v25  ;;  %v357_v30 = vpop.f32.mrf.mxu1 }
  0xa8   :  { %565 = vst.msk [vmem:[%s1085_s4 + $0x8] sm:$0xff] %vm73_vm0, %v541_v29  ;;  %v458_v31 = vmin.f32 %v391_v27, 0.0  ;;  %v358_v32 = vadd.f32 %v357_v30, %v184_v28  ;;  %vm434_vm6 = vcmp.gt.f32.partialorder %v391_v27, 0.0 }
  0xaa   :  { %v687_v33 = vpop.eup %686  ;;  %v496_v34 = vmul.f32 1.442695, %v458_v31  ;;  %v447_v35 = vmin.f32 %v358_v32, 0.0  ;;  %vm423_vm7 = vcmp.gt.f32.partialorder %v358_v32, 0.0 }
  0xab   :  { %v661_v36 = vadd.f32 -1.0, %v687_v33 }
  0xac   :  { %v689_v37 = vpop.eup %688  ;;  %690 = vpow2.f32 %v496_v34  ;;  %v474_v38 = vmul.f32 1.442695, %v447_v35  ;;  %v220_v39 = vpop.f32.mrf.mxu2 }
  0xad   :  { %v553_v40 = vsel %vm433_vm4, %v388_v11, %v661_v36  ;;  %v650_v41 = vadd.f32 -1.0, %v689_v37  ;;  %v393_v42 = vpop.f32.mrf.mxu3 }
  0xae   :  { %577 = vst.msk [vmem:[%s1085_s4 + $0x68] sm:$0xff] %vm73_vm0, %v553_v40  ;;  %692 = vpow2.f32 %v474_v38  ;;  %v394_v43 = vadd.f32 %v393_v42, %v220_v39  ;;  %v187_v44 = vpop.f32.mrf.mxu0 }
  0xaf   :  { %v542_v45 = vsel %vm422_vm5, %v355_v16, %v650_v41  ;;  %v360_v46 = vpop.f32.mrf.mxu1 }
  0xb0   :  { %566 = vst.msk [vmem:[%s1085_s4 + $0x10] sm:$0xff] %vm73_vm0, %v542_v45  ;;  %v459_v47 = vmin.f32 %v394_v43, 0.0  ;;  %v361_v48 = vadd.f32 %v360_v46, %v187_v44  ;;  %vm435_vm8 = vcmp.gt.f32.partialorder %v394_v43, 0.0 }
  0xb2   :  { %v691_v49 = vpop.eup %690  ;;  %v498_v50 = vmul.f32 1.442695, %v459_v47  ;;  %v448_v51 = vmin.f32 %v361_v48, 0.0  ;;  %vm424_vm9 = vcmp.gt.f32.partialorder %v361_v48, 0.0 }
  0xb3   :  { %v662_v52 = vadd.f32 -1.0, %v691_v49 }
  0xb4   :  { %v693_v53 = vpop.eup %692  ;;  %694 = vpow2.f32 %v498_v50  ;;  %v476_v54 = vmul.f32 1.442695, %v448_v51  ;;  %v223_v55 = vpop.f32.mrf.mxu2 }
  0xb5   :  { %v554_v56 = vsel %vm434_vm6, %v391_v27, %v662_v52  ;;  %v651_v57 = vadd.f32 -1.0, %v693_v53  ;;  %v396_v58 = vpop.f32.mrf.mxu3 }
  0xb6   :  { %578 = vst.msk [vmem:[%s1085_s4 + $0x70] sm:$0xff] %vm73_vm0, %v554_v56  ;;  %696 = vpow2.f32 %v476_v54  ;;  %v397_v59 = vadd.f32 %v396_v58, %v223_v55  ;;  %v190_v60 = vpop.f32.mrf.mxu0 }
  0xb7   :  { %v543_v61 = vsel %vm423_vm7, %v358_v32, %v651_v57  ;;  %v363_v62 = vpop.f32.mrf.mxu1 }
  0xb8   :  { %567 = vst.msk [vmem:[%s1085_s4 + $0x18] sm:$0xff] %vm73_vm0, %v543_v61  ;;  %v460_v63 = vmin.f32 %v397_v59, 0.0  ;;  %v364_v0 = vadd.f32 %v363_v62, %v190_v60  ;;  %vm436_vm10 = vcmp.gt.f32.partialorder %v397_v59, 0.0 }
  0xba   :  { %v695_v1 = vpop.eup %694  ;;  %v500_v2 = vmul.f32 1.442695, %v460_v63  ;;  %v449_v3 = vmin.f32 %v364_v0, 0.0  ;;  %vm425_vm11 = vcmp.gt.f32.partialorder %v364_v0, 0.0 }
  0xbb   :  { %v663_v4 = vadd.f32 -1.0, %v695_v1 }
  0xbc   :  { %v697_v5 = vpop.eup %696  ;;  %698 = vpow2.f32 %v500_v2  ;;  %v478_v6 = vmul.f32 1.442695, %v449_v3  ;;  %v226_v7 = vpop.f32.mrf.mxu2 }
  0xbd   :  { %v555_v8 = vsel %vm435_vm8, %v394_v43, %v663_v4  ;;  %v652_v9 = vadd.f32 -1.0, %v697_v5  ;;  %v399_v10 = vpop.f32.mrf.mxu3 }
  0xbe   :  { %579 = vst.msk [vmem:[%s1085_s4 + $0x78] sm:$0xff] %vm73_vm0, %v555_v8  ;;  %700 = vpow2.f32 %v478_v6  ;;  %v400_v11 = vadd.f32 %v399_v10, %v226_v7  ;;  %v193_v12 = vpop.f32.mrf.mxu0 }
  0xbf   :  { %v544_v13 = vsel %vm424_vm9, %v361_v48, %v652_v9  ;;  %v366_v14 = vpop.f32.mrf.mxu1 }
  0xc0   :  { %568 = vst.msk [vmem:[%s1085_s4 + $0x20] sm:$0xff] %vm73_vm0, %v544_v13  ;;  %v461_v15 = vmin.f32 %v400_v11, 0.0  ;;  %v367_v16 = vadd.f32 %v366_v14, %v193_v12  ;;  %vm437_vm12 = vcmp.gt.f32.partialorder %v400_v11, 0.0 }
  0xc2   :  { %v699_v17 = vpop.eup %698  ;;  %v502_v18 = vmul.f32 1.442695, %v461_v15  ;;  %v450_v19 = vmin.f32 %v367_v16, 0.0  ;;  %vm426_vm13 = vcmp.gt.f32.partialorder %v367_v16, 0.0 }
  0xc3   :  { %v664_v20 = vadd.f32 -1.0, %v699_v17 }
  0xc4   :  { %v701_v21 = vpop.eup %700  ;;  %702 = vpow2.f32 %v502_v18  ;;  %v480_v22 = vmul.f32 1.442695, %v450_v19  ;;  %v229_v23 = vpop.f32.mrf.mxu2 }
  0xc5   :  { %v556_v24 = vsel %vm436_vm10, %v397_v59, %v664_v20  ;;  %v653_v25 = vadd.f32 -1.0, %v701_v21  ;;  %v402_v26 = vpop.f32.mrf.mxu3 }
  0xc6   :  { %580 = vst.msk [vmem:[%s1085_s4 + $0x80] sm:$0xff] %vm73_vm0, %v556_v24  ;;  %704 = vpow2.f32 %v480_v22  ;;  %v403_v27 = vadd.f32 %v402_v26, %v229_v23  ;;  %v196_v28 = vpop.f32.mrf.mxu0 }
  0xc7   :  { %v545_v29 = vsel %vm425_vm11, %v364_v0, %v653_v25  ;;  %v369_v30 = vpop.f32.mrf.mxu1 }
  0xc8   :  { %569 = vst.msk [vmem:[%s1085_s4 + $0x28] sm:$0xff] %vm73_vm0, %v545_v29  ;;  %v462_v31 = vmin.f32 %v403_v27, 0.0  ;;  %v370_v32 = vadd.f32 %v369_v30, %v196_v28  ;;  %vm438_vm14 = vcmp.gt.f32.partialorder %v403_v27, 0.0 }
  0xca   :  { %v703_v33 = vpop.eup %702  ;;  %v504_v34 = vmul.f32 1.442695, %v462_v31  ;;  %v451_v35 = vmin.f32 %v370_v32, 0.0  ;;  %vm427_vm15 = vcmp.gt.f32.partialorder %v370_v32, 0.0 }
  0xcb   :  { %v665_v36 = vadd.f32 -1.0, %v703_v33 }
  0xcc   :  { %v705_v37 = vpop.eup %704  ;;  %706 = vpow2.f32 %v504_v34  ;;  %v482_v38 = vmul.f32 1.442695, %v451_v35  ;;  %v232_v39 = vpop.f32.mrf.mxu2 }
  0xcd   :  { %v557_v40 = vsel %vm437_vm12, %v400_v11, %v665_v36  ;;  %v654_v41 = vadd.f32 -1.0, %v705_v37  ;;  %v405_v42 = vpop.f32.mrf.mxu3 }
  0xce   :  { %581 = vst.msk [vmem:[%s1085_s4 + $0x88] sm:$0xff] %vm73_vm0, %v557_v40  ;;  %708 = vpow2.f32 %v482_v38  ;;  %v406_v43 = vadd.f32 %v405_v42, %v232_v39  ;;  %v199_v44 = vpop.f32.mrf.mxu0 }
  0xcf   :  { %v546_v45 = vsel %vm426_vm13, %v367_v16, %v654_v41  ;;  %v372_v46 = vpop.f32.mrf.mxu1 }
  0xd0   :  { %570 = vst.msk [vmem:[%s1085_s4 + $0x30] sm:$0xff] %vm73_vm0, %v546_v45  ;;  %v463_v47 = vmin.f32 %v406_v43, 0.0  ;;  %v373_v48 = vadd.f32 %v372_v46, %v199_v44  ;;  %vm439_vm1 = vcmp.gt.f32.partialorder %v406_v43, 0.0 }
  0xd2   :  { %v707_v49 = vpop.eup %706  ;;  %v506_v50 = vmul.f32 1.442695, %v463_v47  ;;  %v452_v51 = vmin.f32 %v373_v48, 0.0  ;;  %vm428_vm2 = vcmp.gt.f32.partialorder %v373_v48, 0.0 }
  0xd3   :  { %v666_v52 = vadd.f32 -1.0, %v707_v49 }
  0xd4   :  { %v709_v53 = vpop.eup %708  ;;  %710 = vpow2.f32 %v506_v50  ;;  %v484_v54 = vmul.f32 1.442695, %v452_v51  ;;  %v235_v55 = vpop.f32.mrf.mxu2 }
  0xd5   :  { %v558_v56 = vsel %vm438_vm14, %v403_v27, %v666_v52  ;;  %v655_v57 = vadd.f32 -1.0, %v709_v53  ;;  %v408_v58 = vpop.f32.mrf.mxu3 }
  0xd6   :  { %582 = vst.msk [vmem:[%s1085_s4 + $0x90] sm:$0xff] %vm73_vm0, %v558_v56  ;;  %712 = vpow2.f32 %v484_v54  ;;  %v409_v59 = vadd.f32 %v408_v58, %v235_v55  ;;  %v202_v60 = vpop.f32.mrf.mxu0 }
  0xd7   :  { %v547_v61 = vsel %vm427_vm15, %v370_v32, %v655_v57  ;;  %v375_v62 = vpop.f32.mrf.mxu1 }
  0xd8   :  { %571 = vst.msk [vmem:[%s1085_s4 + $0x38] sm:$0xff] %vm73_vm0, %v547_v61  ;;  %v464_v63 = vmin.f32 %v409_v59, 0.0  ;;  %v376_v0 = vadd.f32 %v375_v62, %v202_v60  ;;  %vm440_vm3 = vcmp.gt.f32.partialorder %v409_v59, 0.0 }
  0xda   :  { %v711_v1 = vpop.eup %710  ;;  %v508_v2 = vmul.f32 1.442695, %v464_v63  ;;  %v453_v3 = vmin.f32 %v376_v0, 0.0  ;;  %vm429_vm4 = vcmp.gt.f32.partialorder %v376_v0, 0.0 }
  0xdb   :  { %v667_v4 = vadd.f32 -1.0, %v711_v1 }
  0xdc   :  { %v713_v5 = vpop.eup %712  ;;  %714 = vpow2.f32 %v508_v2  ;;  %v486_v6 = vmul.f32 1.442695, %v453_v3  ;;  %v238_v7 = vpop.f32.mrf.mxu2 }
  0xdd   :  { %v559_v8 = vsel %vm439_vm1, %v406_v43, %v667_v4  ;;  %v656_v9 = vadd.f32 -1.0, %v713_v5  ;;  %v411_v10 = vpop.f32.mrf.mxu3 }
  0xde   :  { %583 = vst.msk [vmem:[%s1085_s4 + $0x98] sm:$0xff] %vm73_vm0, %v559_v8  ;;  %716 = vpow2.f32 %v486_v6  ;;  %v412_v11 = vadd.f32 %v411_v10, %v238_v7  ;;  %v205_v12 = vpop.f32.mrf.mxu0 }
  0xdf   :  { %v548_v13 = vsel %vm428_vm2, %v373_v48, %v656_v9  ;;  %v378_v14 = vpop.f32.mrf.mxu1 }
  0xe0   :  { %572 = vst.msk [vmem:[%s1085_s4 + $0x40] sm:$0xff] %vm73_vm0, %v548_v13  ;;  %v465_v15 = vmin.f32 %v412_v11, 0.0  ;;  %v379_v16 = vadd.f32 %v378_v14, %v205_v12  ;;  %vm441_vm5 = vcmp.gt.f32.partialorder %v412_v11, 0.0 }
  0xe2   :  { %v715_v17 = vpop.eup %714  ;;  %v510_v18 = vmul.f32 1.442695, %v465_v15  ;;  %v454_v19 = vmin.f32 %v379_v16, 0.0  ;;  %vm430_vm6 = vcmp.gt.f32.partialorder %v379_v16, 0.0 }
  0xe3   :  { %v668_v20 = vadd.f32 -1.0, %v715_v17 }
  0xe4   :  { %v717_v21 = vpop.eup %716  ;;  %718 = vpow2.f32 %v510_v18  ;;  %v488_v22 = vmul.f32 1.442695, %v454_v19  ;;  %v241_v23 = vpop.f32.mrf.mxu2 }
  0xe5   :  { %v560_v24 = vsel %vm440_vm3, %v409_v59, %v668_v20  ;;  %v657_v25 = vadd.f32 -1.0, %v717_v21  ;;  %v414_v26 = vpop.f32.mrf.mxu3 }
  0xe6   :  { %584 = vst.msk [vmem:[%s1085_s4 + $0xa0] sm:$0xff] %vm73_vm0, %v560_v24  ;;  %720 = vpow2.f32 %v488_v22  ;;  %v415_v27 = vadd.f32 %v414_v26, %v241_v23  ;;  %v208_v28 = vpop.f32.mrf.mxu0 }
  0xe7   :  { %v549_v29 = vsel %vm429_vm4, %v376_v0, %v657_v25  ;;  %v381_v30 = vpop.f32.mrf.mxu1 }
  0xe8   :  { %573 = vst.msk [vmem:[%s1085_s4 + $0x48] sm:$0xff] %vm73_vm0, %v549_v29  ;;  %v466_v31 = vmin.f32 %v415_v27, 0.0  ;;  %v382_v32 = vadd.f32 %v381_v30, %v208_v28  ;;  %vm442_vm7 = vcmp.gt.f32.partialorder %v415_v27, 0.0 }
  0xea   :  { %v719_v33 = vpop.eup %718  ;;  %v512_v34 = vmul.f32 1.442695, %v466_v31  ;;  %v455_v35 = vmin.f32 %v382_v32, 0.0  ;;  %vm431_vm8 = vcmp.gt.f32.partialorder %v382_v32, 0.0 }
  0xeb   :  { %v669_v36 = vadd.f32 -1.0, %v719_v33 }
  0xec   :  { %v721_v37 = vpop.eup %720  ;;  %722 = vpow2.f32 %v512_v34  ;;  %v490_v38 = vmul.f32 1.442695, %v455_v35  ;;  %v244_v39 = vpop.f32.mrf.mxu2 }
  0xed   :  { %v561_v40 = vsel %vm441_vm5, %v412_v11, %v669_v36  ;;  %v658_v41 = vadd.f32 -1.0, %v721_v37  ;;  %v417_v42 = vpop.f32.mrf.mxu3 }
  0xee   :  { %585 = vst.msk [vmem:[%s1085_s4 + $0xa8] sm:$0xff] %vm73_vm0, %v561_v40  ;;  %724 = vpow2.f32 %v490_v38  ;;  %v418_v43 = vadd.f32 %v417_v42, %v244_v39 }
  0xef   :  { %v550_v44 = vsel %vm430_vm6, %v379_v16, %v658_v41 }
  0xf0   :  { %574 = vst.msk [vmem:[%s1085_s4 + $0x50] sm:$0xff] %vm73_vm0, %v550_v44  ;;  %v467_v45 = vmin.f32 %v418_v43, 0.0  ;;  %vm443_vm9 = vcmp.gt.f32.partialorder %v418_v43, 0.0 }
  0xf2   :  { %v723_v46 = vpop.eup %722  ;;  %v514_v47 = vmul.f32 1.442695, %v467_v45 }
  0xf3   :  { %v670_v48 = vadd.f32 -1.0, %v723_v46 }
  0xf4   :  { %v725_v49 = vpop.eup %724  ;;  %726 = vpow2.f32 %v514_v47 }
  0xf5   :  { %v562_v50 = vsel %vm442_vm7, %v415_v27, %v670_v48  ;;  %v659_v51 = vadd.f32 -1.0, %v725_v49 }
  0xf6   :  { %586 = vst.msk [vmem:[%s1085_s4 + $0xb0] sm:$0xff] %vm73_vm0, %v562_v50 }
  0xf7   :  { %v551_v52 = vsel %vm431_vm8, %v382_v32, %v659_v51 }
  0xf8   :  { %575 = vst.msk [vmem:[%s1085_s4 + $0x58] sm:$0xff] %vm73_vm0, %v551_v52 }
  0xfa   :  { %v727_v53 = vpop.eup %726 }
  0xfb   :  { %v671_v54 = vadd.f32 -1.0, %v727_v53 }
  0xfd   :  { %v563_v55 = vsel %vm443_vm9, %v418_v43, %v671_v54 }
  0xfe   :  { %587 = vst.msk [vmem:[%s1085_s4 + $0xb8] sm:$0xff] %vm73_vm0, %v563_v55 }

// kernel: forward.10
= control target key start
LH: loop header
LB: loop body
LE: loop exit
PB: predicated region body
PF: predicated region fallthrough
CT: control target
= control target key end

     0   :  { %vm49_vm0 = vcmask 261120   ;;  %vm347_vm1 = vcmask 7168   ;;  %s1010_s1 = inlined_call_operand.vmem [shape: f32[32,32], index: 1, kind: input, shape index: {}]   ;;  %s1011_s2 = inlined_call_operand.vmem [shape: f32[1,32], index: 2, kind: input, shape index: {}]   ;;  %s1012_s0 = inlined_call_operand.vmem [shape: f32[192,32], index: 0, kind: input, shape index: {}]   ;;  %s1013_s3 = inlined_call_operand.vmem [shape: f32[1,32], index: 3, kind: input, shape index: {}]   ;;  %s1014_s4 = inlined_call_operand.vmem [shape: f32[64,32], index: 4, kind: output, shape index: {}]  }
   0x1   :  { %v44_v0 = vld [vmem:[%s1010_s1 + $0x18] sm:$0xff]  ;;  %v43_v1 = vld [vmem:[%s1010_s1 + $0x10] sm:$0xff]  ;;  %v42_v2 = vld [vmem:[%s1010_s1 + $0x8] sm:$0xff] }
   0x2   :  { %516 = vmatpush.xpose.msk.msra.mxu0 %vm49_vm0, %v44_v0  ;;  %544 = vmatpush.xpose.msk.msra.mxu1 %vm49_vm0, %v44_v0  ;;  %v41_v3 = vld [vmem:[%s1010_s1] sm:$0xff]  ;;  %v683_v5 = vld [vmem:[%s1012_s0 + $0x30] sm:$0xff]  ;;  %v708_v8 = vld [vmem:[%s1012_s0 + $0x8] sm:$0xff] }
   0x3   :  { %545 = vmatpush.xpose.msk.msra.mxu2 %vm49_vm0, %v44_v0  ;;  %546 = vmatpush.xpose.msk.msra.mxu3 %vm49_vm0, %v44_v0  ;;  %v678_v4 = vld [vmem:[%s1012_s0] sm:$0xff]  ;;  %v695_v7 = vld [vmem:[%s1012_s0 + $0x90] sm:$0xff]  ;;  %v713_v9 = vld [vmem:[%s1012_s0 + $0x38] sm:$0xff] }
   0x4   :  { %v690_v6 = vld [vmem:[%s1012_s0 + $0x60] sm:$0xff]  ;;  %v718_v10 = vld [vmem:[%s1012_s0 + $0x68] sm:$0xff]  ;;  %v723_v11 = vld [vmem:[%s1012_s0 + $0x98] sm:$0xff] }
   0x5   :  { %v736_v12 = vld [vmem:[%s1012_s0 + $0x10] sm:$0xff]  ;;  %v741_v13 = vld [vmem:[%s1012_s0 + $0x40] sm:$0xff]  ;;  %v764_v16 = vld [vmem:[%s1012_s0 + $0x18] sm:$0xff] }
   0x6   :  { %517 = vmatpush.xpose.msk.msra.mxu0 %vm49_vm0, %v43_v1  ;;  %547 = vmatpush.xpose.msk.msra.mxu1 %vm49_vm0, %v43_v1  ;;  %v746_v14 = vld [vmem:[%s1012_s0 + $0x70] sm:$0xff]  ;;  %v751_v15 = vld [vmem:[%s1012_s0 + $0xa0] sm:$0xff]  ;;  %v769_v17 = vld [vmem:[%s1012_s0 + $0x48] sm:$0xff] }
   0x7   :  { %548 = vmatpush.xpose.msk.msra.mxu2 %vm49_vm0, %v43_v1  ;;  %549 = vmatpush.xpose.msk.msra.mxu3 %vm49_vm0, %v43_v1  ;;  %v774_v18 = vld [vmem:[%s1012_s0 + $0x78] sm:$0xff]  ;;  %v779_v19 = vld [vmem:[%s1012_s0 + $0xa8] sm:$0xff]  ;;  %v792_v20 = vld [vmem:[%s1012_s0 + $0x50] sm:$0xff] }
   0x8   :  { %v797_v21 = vld [vmem:[%s1012_s0 + $0x20] sm:$0xff]  ;;  %v807_v23 = vld [vmem:[%s1012_s0 + $0xb0] sm:$0xff]  ;;  %v820_v24 = vld [vmem:[%s1012_s0 + $0x28] sm:$0xff] }
   0x9   :  { %v802_v22 = vld [vmem:[%s1012_s0 + $0x80] sm:$0xff]  ;;  %v825_v25 = vld [vmem:[%s1012_s0 + $0x58] sm:$0xff]  ;;  %v830_v26 = vld [vmem:[%s1012_s0 + $0x88] sm:$0xff] }
   0xa   :  { %518 = vmatpush.xpose.msk.msra.mxu0 %vm49_vm0, %v42_v2  ;;  %550 = vmatpush.xpose.msk.msra.mxu1 %vm49_vm0, %v42_v2  ;;  %v835_v27 = vld [vmem:[%s1012_s0 + $0xb8] sm:$0xff]  ;;  %v848_v28 = vld [vmem:[%s1011_s2] ss:$0 sm:$0xff] }
   0xb   :  { %551 = vmatpush.xpose.msk.msra.mxu2 %vm49_vm0, %v42_v2  ;;  %552 = vmatpush.xpose.msk.msra.mxu3 %vm49_vm0, %v42_v2  ;;  %v855_v33 = vld [vmem:[%s1013_s3] ss:$0 sm:$0xff] }
   0xe   :  { %519 = vmatpush.xpose.msk.msra.mxu0 %vm49_vm0, %v41_v3  ;;  %553 = vmatpush.xpose.msk.msra.mxu1 %vm49_vm0, %v41_v3 }
   0xf   :  { %554 = vmatpush.xpose.msk.msra.mxu2 %vm49_vm0, %v41_v3  ;;  %555 = vmatpush.xpose.msk.msra.mxu3 %vm49_vm0, %v41_v3 }
  0x11   :  { %520 = vmatmul.msk.f32.vlgmr.msra.gmra.mxu0 %vm49_vm0, %v678_v4  ;;  %526 = vmatmul.msk.f32.vlgmr.msra.gmra.mxu1 %vm49_vm0, %v683_v5 }
  0x12   :  { %532 = vmatmul.msk.f32.vlgmr.msra.gmra.mxu2 %vm49_vm0, %v690_v6  ;;  %538 = vmatmul.msk.f32.vlgmr.msra.gmra.mxu3 %vm49_vm0, %v695_v7 }
  0x19   :  { %521 = vmatmul.msk.f32.gmra.mxu0 %vm49_vm0, %v708_v8  ;;  %527 = vmatmul.msk.f32.gmra.mxu1 %vm49_vm0, %v713_v9 }
  0x1a   :  { %533 = vmatmul.msk.f32.gmra.mxu2 %vm49_vm0, %v718_v10  ;;  %539 = vmatmul.msk.f32.gmra.mxu3 %vm49_vm0, %v723_v11 }
  0x21   :  { %522 = vmatmul.msk.f32.gmra.mxu0 %vm49_vm0, %v736_v12  ;;  %528 = vmatmul.msk.f32.gmra.mxu1 %vm49_vm0, %v741_v13 }
  0x22   :  { %534 = vmatmul.msk.f32.gmra.mxu2 %vm49_vm0, %v746_v14  ;;  %540 = vmatmul.msk.f32.gmra.mxu3 %vm49_vm0, %v751_v15 }
  0x29   :  { %523 = vmatmul.msk.f32.gmra.mxu0 %vm49_vm0, %v764_v16  ;;  %529 = vmatmul.msk.f32.gmra.mxu1 %vm49_vm0, %v769_v17 }
  0x2a   :  { %535 = vmatmul.msk.f32.gmra.mxu2 %vm49_vm0, %v774_v18  ;;  %541 = vmatmul.msk.f32.gmra.mxu3 %vm49_vm0, %v779_v19 }
  0x31   :  { %530 = vmatmul.msk.f32.gmra.mxu1 %vm49_vm0, %v792_v20  ;;  %524 = vmatmul.msk.f32.gmra.mxu0 %vm49_vm0, %v797_v21 }
  0x32   :  { %536 = vmatmul.msk.f32.gmra.mxu2 %vm49_vm0, %v802_v22  ;;  %542 = vmatmul.msk.f32.gmra.mxu3 %vm49_vm0, %v807_v23 }
  0x39   :  { %525 = vmatmul.msk.f32.gmra.mxu0 %vm49_vm0, %v820_v24  ;;  %531 = vmatmul.msk.f32.gmra.mxu1 %vm49_vm0, %v825_v25 }
  0x3a   :  { %537 = vmatmul.msk.f32.gmra.mxu2 %vm49_vm0, %v830_v26  ;;  %543 = vmatmul.msk.f32.gmra.mxu3 %vm49_vm0, %v835_v27 }
  0x8e   :  { %v151_v29 = vpop.f32.mrf.mxu0  ;;  %v169_v30 = vpop.f32.mrf.mxu1 }
  0x8f   :  { %v152_v31 = vadd.f32 %v848_v28, %v151_v29  ;;  %v170_v32 = vadd.f32 %v848_v28, %v169_v30 }
  0x91   :  { %565 = vtanh.f32 %v152_v31 }
  0x92   :  { %567 = vtanh.f32 %v170_v32 }
  0x95   :  { %v187_v34 = vpop.f32.mrf.mxu2  ;;  %v205_v35 = vpop.f32.mrf.mxu3 }
  0x96   :  { %v188_v36 = vadd.f32 %v848_v28, %v187_v34  ;;  %v206_v37 = vadd.f32 %v848_v28, %v205_v35  ;;  %v154_v38 = vpop.f32.mrf.mxu0  ;;  %v859_v39 = vpop.f32.mrf.mxu1 }
  0x97   :  { %v566_v40 = vpop.eup %565  ;;  %v155_v43 = vadd.f32 %v848_v28, %v154_v38 }
  0x98   :  { %v568_v41 = vpop.eup %567  ;;  %569 = vtanh.f32 %v188_v36  ;;  %v251_v42 = vmul.f32 %v566_v40, %v855_v33 }
  0x99   :  { %571 = vtanh.f32 %v206_v37  ;;  %v257_v44 = vmul.f32 %v568_v41, %v855_v33 }
  0x9a   :  { %v275_v45 = vsel %vm49_vm0, %v251_v42, 0.0  ;;  %573 = vtanh.f32 %v155_v43 }
  0x9b   :  { %v293_v46 = vsel %vm49_vm0, %v257_v44, 0.0  ;;  %276 = vadd.xlane.f32.xlu0 %v275_v45 }
  0x9c   :  { %294 = vadd.xlane.f32.xlu2 %v293_v46 }
  0x9d   :  { %v190_v47 = vpop.f32.mrf.mxu2  ;;  %v208_v48 = vpop.f32.mrf.mxu3 }
  0x9e   :  { %v570_v49 = vpop.eup %569  ;;  %v209_v50 = vadd.f32 %v848_v28, %v208_v48  ;;  %v157_v51 = vpop.f32.mrf.mxu0  ;;  %v191_v56 = vadd.f32 %v848_v28, %v190_v47 }
  0x9f   :  { %v175_v52 = vpop.f32.mrf.mxu1  ;;  %v572_v53 = vpop.eup %571  ;;  %v158_v54 = vadd.f32 %v848_v28, %v157_v51  ;;  %v263_v55 = vmul.f32 %v570_v49, %v855_v33 }
  0xa0   :  { %v269_v57 = vmul.f32 %v572_v53, %v855_v33  ;;  %575 = vtanh.f32 %v209_v50  ;;  %v176_v58 = vadd.f32 %v848_v28, %v175_v52  ;;  %v574_v61 = vpop.eup %573 }
  0xa1   :  { %577 = vtanh.f32 %v158_v54  ;;  %v311_v60 = vsel %vm49_vm0, %v263_v55, 0.0  ;;  %v252_v2 = vmul.f32 %v574_v61, %v855_v33 }
  0xa2   :  { %v329_v59 = vsel %vm49_vm0, %v269_v57, 0.0  ;;  %579 = vtanh.f32 %v191_v56 }
  0xa3   :  { %330 = vadd.xlane.f32.xlu1 %v329_v59  ;;  %312 = vadd.xlane.f32.xlu0 %v311_v60  ;;  %581 = vtanh.f32 %v176_v58  ;;  %v278_v38 = vsel %vm49_vm0, %v252_v2, 0.0 }
  0xa5   :  { %v193_v62 = vpop.f32.mrf.mxu2  ;;  %v211_v63 = vpop.f32.mrf.mxu3 }
  0xa6   :  { %v160_v0 = vpop.f32.mrf.mxu0  ;;  %v576_v3 = vpop.eup %575  ;;  %v212_v30 = vadd.f32 %v848_v28, %v211_v63  ;;  %v194_v34 = vadd.f32 %v848_v28, %v193_v62 }
  0xa7   :  { %v178_v1 = vpop.f32.mrf.mxu1  ;;  %v161_v29 = vadd.f32 %v848_v28, %v160_v0  ;;  %v578_v31 = vpop.eup %577  ;;  %v270_v32 = vmul.f32 %v576_v3, %v855_v33 }
  0xa8   :  { %v253_v35 = vmul.f32 %v578_v31, %v855_v33  ;;  %v580_v36 = vpop.eup %579  ;;  %v179_v53 = vadd.f32 %v848_v28, %v178_v1 }
  0xa9   :  { %583 = vtanh.f32 %v161_v29  ;;  %v332_v37 = vsel %vm49_vm0, %v270_v32, 0.0  ;;  %v582_v40 = vpop.eup %581  ;;  %v264_v46 = vmul.f32 %v580_v36, %v855_v33 }
  0xaa   :  { %v281_v41 = vsel %vm49_vm0, %v253_v35, 0.0  ;;  %585 = vtanh.f32 %v212_v30  ;;  %v259_v45 = vmul.f32 %v582_v40, %v855_v33 }
  0xab   :  { %333 = vadd.xlane.f32.xlu1 %v332_v37  ;;  %279 = vadd.xlane.f32.xlu0 %v278_v38  ;;  %587 = vtanh.f32 %v194_v34  ;;  %v314_v56 = vsel %vm49_vm0, %v264_v46, 0.0 }
  0xac   :  { %282 = vadd.xlane.f32.xlu2 %v281_v41  ;;  %v299_v54 = vsel %vm49_vm0, %v259_v45, 0.0 }
  0xad   :  { %v196_v42 = vpop.f32.mrf.mxu2  ;;  %v214_v43 = vpop.f32.mrf.mxu3 }
  0xae   :  { %v163_v47 = vpop.f32.mrf.mxu0 }
  0xaf   :  { %v181_v44 = vpop.f32.mrf.mxu1  ;;  %v584_v48 = vpop.eup %583  ;;  %v164_v51 = vadd.f32 %v848_v28, %v163_v47 }
  0xb0   :  { %v182_v49 = vadd.f32 %v848_v28, %v181_v44  ;;  %v254_v50 = vmul.f32 %v584_v48, %v855_v33  ;;  %v586_v52 = vpop.eup %585 }
  0xb1   :  { %v588_v57 = vpop.eup %587  ;;  %v271_v58 = vmul.f32 %v586_v52, %v855_v33 }
  0xb2   :  { %589 = vtanh.f32 %v182_v49  ;;  %v284_v55 = vsel %vm49_vm0, %v254_v50, 0.0  ;;  %v265_v62 = vmul.f32 %v588_v57, %v855_v33  ;;  %v197_v49 = vadd.f32 %v848_v28, %v196_v42 }
  0xb3   :  { %300 = vadd.xlane.f32.xlu1 %v299_v54  ;;  %315 = vadd.xlane.f32.xlu0 %v314_v56  ;;  %591 = vtanh.f32 %v164_v51  ;;  %v335_v29 = vsel %vm49_vm0, %v271_v58, 0.0  ;;  %v215_v51 = vadd.f32 %v848_v28, %v214_v43  ;;  %v173_v54 = vadd.f32 %v848_v28, %v859_v39 }
  0xb4   :  { %285 = vadd.xlane.f32.xlu2 %v284_v55  ;;  %593 = vtanh.f32 %v179_v53  ;;  %v317_v35 = vsel %vm49_vm0, %v265_v62, 0.0 }
  0xb5   :  { %v199_v59 = vpop.f32.mrf.mxu2  ;;  %v217_v60 = vpop.f32.mrf.mxu3 }
  0xb6   :  { %v200_v61 = vadd.f32 %v848_v28, %v199_v59  ;;  %v166_v63 = vpop.f32.mrf.mxu0  ;;  %v218_v3 = vadd.f32 %v848_v28, %v217_v60 }
  0xb7   :  { %v184_v0 = vpop.f32.mrf.mxu1  ;;  %v167_v31 = vadd.f32 %v848_v28, %v166_v63 }
  0xb8   :  { %v590_v1 = vpop.eup %589  ;;  %v185_v2 = vadd.f32 %v848_v28, %v184_v0  ;;  %595 = vtanh.f32 %v200_v61 }
  0xb9   :  { %v261_v30 = vmul.f32 %v590_v1, %v855_v33  ;;  %v592_v32 = vpop.eup %591 }
  0xba   :  { %597 = vtanh.f32 %v185_v2  ;;  %v594_v36 = vpop.eup %593  ;;  %v255_v38 = vmul.f32 %v592_v32, %v855_v33 }
  0xbb   :  { %v305_v34 = vsel %vm49_vm0, %v261_v30, 0.0  ;;  %336 = vadd.xlane.f32.xlu1 %v335_v29  ;;  %318 = vadd.xlane.f32.xlu0 %v317_v35  ;;  %599 = vtanh.f32 %v218_v3  ;;  %v260_v45 = vmul.f32 %v594_v36, %v855_v33 }
  0xbc   :  { %306 = vadd.xlane.f32.xlu2 %v305_v34  ;;  %601 = vtanh.f32 %v167_v31  ;;  %v287_v52 = vsel %vm49_vm0, %v255_v38, 0.0 }
  0xbd   :  { %v202_v37 = vpop.f32.mrf.mxu2  ;;  %v220_v40 = vpop.f32.mrf.mxu3  ;;  %v302_v55 = vsel %vm49_vm0, %v260_v45, 0.0 }
  0xbe   :  { %v596_v41 = vpop.eup %595  ;;  %v203_v44 = vadd.f32 %v848_v28, %v202_v37  ;;  %v221_v46 = vadd.f32 %v848_v28, %v220_v40 }
  0xbf   :  { %v267_v47 = vmul.f32 %v596_v41, %v855_v33 }
  0xc0   :  { %v598_v48 = vpop.eup %597  ;;  %603 = vtanh.f32 %v203_v44 }
  0xc1   :  { %v600_v50 = vpop.eup %599  ;;  %605 = vtanh.f32 %v221_v46  ;;  %v323_v56 = vsel %vm49_vm0, %v267_v47, 0.0  ;;  %v262_v42 = vmul.f32 %v598_v48, %v855_v33 }
  0xc2   :  { %v602_v53 = vpop.eup %601  ;;  %v273_v57 = vmul.f32 %v600_v50, %v855_v33  ;;  %607 = vtanh.f32 %v197_v49 }
  0xc3   :  { %303 = vadd.xlane.f32.xlu1 %v302_v55  ;;  %324 = vadd.xlane.f32.xlu0 %v323_v56  ;;  %609 = vtanh.f32 %v215_v51  ;;  %v256_v43 = vmul.f32 %v602_v53, %v855_v33  ;;  %v308_v39 = vsel %vm49_vm0, %v262_v42, 0.0 }
  0xc4   :  { %288 = vadd.xlane.f32.xlu2 %v287_v52  ;;  %611 = vtanh.f32 %v173_v54  ;;  %v341_v35 = vsel %vm49_vm0, %v273_v57, 0.0 }
  0xc5   :  { %v290_v62 = vsel %vm49_vm0, %v256_v43, 0.0 }
  0xc6   :  { %v604_v58 = vpop.eup %603 }
  0xc7   :  { %v606_v59 = vpop.eup %605  ;;  %v268_v28 = vmul.f32 %v604_v58, %v855_v33 }
  0xc8   :  { %v274_v60 = vmul.f32 %v606_v59, %v855_v33  ;;  %v608_v63 = vpop.eup %607 }
  0xc9   :  { %v326_v61 = vsel %vm49_vm0, %v268_v28, 0.0  ;;  %v610_v0 = vpop.eup %609  ;;  %v266_v3 = vmul.f32 %v608_v63, %v855_v33 }
  0xca   :  { %v612_v1 = vpop.eup %611  ;;  %v272_v2 = vmul.f32 %v610_v0, %v855_v33  ;;  %v344_v34 = vsel %vm49_vm0, %v274_v60, 0.0 }
  0xcb   :  { %327 = vadd.xlane.f32.xlu1 %v326_v61  ;;  %309 = vadd.xlane.f32.xlu0 %v308_v39  ;;  %v258_v29 = vmul.f32 %v612_v1, %v855_v33  ;;  %v320_v31 = vsel %vm49_vm0, %v266_v3, 0.0 }
  0xcc   :  { %291 = vadd.xlane.f32.xlu2 %v290_v62  ;;  %v338_v30 = vsel %vm49_vm0, %v272_v2, 0.0 }
  0xcd   :  { %v296_v32 = vsel %vm49_vm0, %v258_v29, 0.0 }
  0xd3   :  { %339 = vadd.xlane.f32.xlu1 %v338_v30  ;;  %321 = vadd.xlane.f32.xlu0 %v320_v31 }
  0xd4   :  { %297 = vadd.xlane.f32.xlu2 %v296_v32 }
  0xdb   :  { %342 = vadd.xlane.f32.xlu1 %v341_v35 }
  0xdc   :  { %345 = vadd.xlane.f32.xlu2 %v344_v34 }
 0x10e   :  { %v277_v36 = vpop.xlane.xlu0 %276 }
 0x10f   :  { %v295_v40 = vpop.xlane.xlu2 %294  ;;  %v348_v56 = vsel %vm347_vm1, %v277_v36, 0.0 }
 0x116   :  { %v331_v37 = vpop.xlane.xlu1 %330  ;;  %v313_v38 = vpop.xlane.xlu0 %312 }
 0x117   :  { %v410_v34 = vsel %vm347_vm1, %v331_v37, 0.0  ;;  %v388_v35 = vsel %vm347_vm1, %v313_v38, 0.0 }
 0x11e   :  { %v334_v33 = vpop.xlane.xlu1 %333  ;;  %v280_v41 = vpop.xlane.xlu0 %279 }
 0x11f   :  { %v283_v44 = vpop.xlane.xlu2 %282  ;;  %v349_v51 = vsel %vm347_vm1, %v280_v41, 0.0 }
 0x120   :  { %v350_v57 = vadd.f32 %v349_v51, %v348_v56  ;;  %v351_v58 = vsel %vm347_vm1, %v283_v44, 0.0  ;;  %v412_v51 = vsel %vm347_vm1, %v334_v33, 0.0 }
 0x122   :  { %v352_v28 = vadd.f32 %v351_v58, %v350_v57 }
 0x126   :  { %v301_v45 = vpop.xlane.xlu1 %300  ;;  %v316_v46 = vpop.xlane.xlu0 %315 }
 0x127   :  { %v286_v47 = vpop.xlane.xlu2 %285  ;;  %v381_v42 = vsel %vm347_vm1, %v301_v45, 0.0  ;;  %v390_v45 = vsel %vm347_vm1, %v316_v46, 0.0 }
 0x128   :  { %v353_v59 = vsel %vm347_vm1, %v286_v47, 0.0 }
 0x129   :  { %v354_v0 = vadd.f32 %v353_v59, %v352_v28 }
 0x12e   :  { %v337_v48 = vpop.xlane.xlu1 %336  ;;  %v319_v49 = vpop.xlane.xlu0 %318 }
 0x12f   :  { %v307_v50 = vpop.xlane.xlu2 %306  ;;  %v414_v46 = vsel %vm347_vm1, %v337_v48, 0.0 }
 0x130   :  { %v384_v39 = vsel %vm347_vm1, %v307_v50, 0.0 }
 0x136   :  { %v304_v52 = vpop.xlane.xlu1 %303  ;;  %v325_v53 = vpop.xlane.xlu0 %324 }
 0x137   :  { %v382_v54 = vsel %vm347_vm1, %v304_v52, 0.0  ;;  %v289_v55 = vpop.xlane.xlu2 %288  ;;  %v407_v1 = vsel %vm347_vm1, %v325_v53, 0.0  ;;  %v392_v52 = vsel %vm347_vm1, %v319_v49, 0.0  ;;  %v359_v53 = vsel %vm347_vm1, %v295_v40, 0.0 }
 0x138   :  { %v383_v43 = vadd.f32 %v382_v54, %v381_v42  ;;  %v355_v60 = vsel %vm347_vm1, %v289_v55, 0.0 }
 0x139   :  { %v356_v36 = vadd.f32 %v355_v60, %v354_v0 }
 0x13a   :  { %v385_v62 = vadd.f32 %v384_v39, %v383_v43 }
 0x13e   :  { %v328_v61 = vpop.xlane.xlu1 %327  ;;  %v310_v63 = vpop.xlane.xlu0 %309 }
 0x13f   :  { %v408_v2 = vsel %vm347_vm1, %v328_v61, 0.0  ;;  %v292_v3 = vpop.xlane.xlu2 %291  ;;  %v386_v29 = vsel %vm347_vm1, %v310_v63, 0.0 }
 0x140   :  { %v409_v30 = vadd.f32 %v408_v2, %v407_v1  ;;  %v357_v31 = vsel %vm347_vm1, %v292_v3, 0.0  ;;  %v387_v32 = vadd.f32 %v386_v29, %v385_v62 }
 0x141   :  { %v358_v47 = vadd.f32 %v357_v31, %v356_v36 }
 0x142   :  { %v411_v41 = vadd.f32 %v410_v34, %v409_v30  ;;  %v389_v44 = vadd.f32 %v388_v35, %v387_v32 }
 0x143   :  { %v360_v42 = vadd.f32 %v359_v53, %v358_v47 }
 0x144   :  { %v391_v50 = vadd.f32 %v390_v45, %v389_v44  ;;  %v413_v55 = vadd.f32 %v412_v51, %v411_v41 }
 0x146   :  { %v340_v54 = vpop.xlane.xlu1 %339  ;;  %v322_v56 = vpop.xlane.xlu0 %321  ;;  %v393_v57 = vadd.f32 %v392_v52, %v391_v50  ;;  %v415_v28 = vadd.f32 %v414_v46, %v413_v55  ;;  %v623_v55 = vmov 64.0  }
 0x147   :  { %v298_v37 = vpop.xlane.xlu2 %297  ;;  %v394_v38 = vsel %vm347_vm1, %v322_v56, 0.0  ;;  %v416_v33 = vsel %vm347_vm1, %v340_v54, 0.0  ;;  %613 = vrcp.f32 %v623_v55 }
 0x148   :  { %v361_v43 = vsel %vm347_vm1, %v298_v37, 0.0  ;;  %v395_v58 = vadd.f32 %v394_v38, %v393_v57  ;;  %v417_v40 = vadd.f32 %v416_v33, %v415_v28 }
 0x149   :  { %v362_v59 = vadd.f32 %v361_v43, %v360_v42 }
 0x14a   :  { %396 = vadd.xlane.f32.xlu1 %v395_v58 }
 0x14b   :  { %363 = vadd.xlane.f32.xlu0 %v362_v59 }
 0x14d   :  { %v614_v56 = vpop.eup %613 }
 0x14e   :  { %v343_v49 = vpop.xlane.xlu1 %342  ;;  %v374_v57 = vmul.f32 64.0, %v614_v56  ;;  %vm378_vm2 = vweird.f32 %v614_v56 }
 0x14f   :  { %v418_v39 = vsel %vm347_vm1, %v343_v49, 0.0  ;;  %v346_v60 = vpop.xlane.xlu2 %345 }
 0x150   :  { %v419_v61 = vadd.f32 %v418_v39, %v417_v40  ;;  %v420_v62 = vsel %vm347_vm1, %v346_v60, 0.0  ;;  %v375_v37 = vsub.f32 1.0, %v374_v57 }
 0x152   :  { %v421_v63 = vadd.f32 %v420_v62, %v419_v61  ;;  %v376_v38 = vmul.f32 %v614_v56, %v375_v37 }
 0x154   :  { %422 = vadd.xlane.f32.xlu2 %v421_v63  ;;  %v377_v42 = vadd.f32 %v614_v56, %v376_v38 }
 0x156   :  { %v379_v58 = vsel %vm378_vm2, %v614_v56, %v377_v42 }
 0x1bd   :  { %v397_v0 = vpop.xlane.xlu1 %396 }
 0x1be   :  { %v398_v1 = vrot.slane %v397_v0, 4  ;;  %v364_v2 = vpop.xlane.xlu0 %363 }
 0x1bf   :  { %v365_v48 = vrot.slane %v364_v2, 4 }
 0x1c0   :  { %v399_v3 = vadd.f32 %v398_v1, %v397_v0 }
 0x1c1   :  { %v366_v29 = vadd.f32 %v365_v48, %v364_v2 }
 0x1c2   :  { %v400_v30 = vrot.slane %v399_v3, 2 }
 0x1c3   :  { %v367_v31 = vrot.slane %v366_v29, 2 }
 0x1c4   :  { %v401_v32 = vadd.f32 %v400_v30, %v399_v3 }
 0x1c5   :  { %v368_v34 = vadd.f32 %v367_v31, %v366_v29 }
 0x1c6   :  { %v402_v35 = vrot.slane %v401_v32, 1 }
 0x1c7   :  { %v423_v36 = vpop.xlane.xlu2 %422  ;;  %v369_v41 = vrot.slane %v368_v34, 1 }
 0x1c8   :  { %v424_v44 = vrot.slane %v423_v36, 4  ;;  %v403_v45 = vadd.f32 %v402_v35, %v401_v32 }
 0x1c9   :  { %v370_v47 = vadd.f32 %v369_v41, %v368_v34 }
 0x1ca   :  { %v425_v50 = vadd.f32 %v424_v44, %v423_v36 }
 0x1cb   :  { %556 = vpush %v370_v47 }
 0x1cc   :  { %v426_v51 = vrot.slane %v425_v50, 2  ;;  %558 = vpush %v403_v45 }
 0x1ce   :  { %v427_v52 = vadd.f32 %v426_v51, %v425_v50 }
 0x1d0   :  { %v428_v53 = vrot.slane %v427_v52, 1 }
 0x1d2   :  { %v429_v54 = vadd.f32 %v428_v53, %v427_v52 }
 0x1d4   :  { %560 = vpush %v429_v54 }
 0x1fc   :  { %s557_s2 = spop %556 }
 0x1fd   :  { %s559_s3 = spop %558  ;;  %v372_v43 = vstv %s557_s2 }
 0x1fe   :  { %v405_v46 = vstv %s559_s3  ;;  %v380_v59 = vmul.f32 %v379_v58, %v372_v43 }
 0x1ff   :  { %v406_v28 = vmul.f32 %v405_v46, %v379_v58 }
 0x201   :  { %v433_v40 = vmax.f32 %v380_v59, %v406_v28 }
 0x205   :  { %s561_s20 = spop %560 }
 0x206   :  { %v431_v33 = vstv %s561_s20 }
 0x207   :  { %v432_v49 = vmul.f32 %v431_v33, %v379_v58 }
 0x209   :  { %v434_v39 = vmax.f32 %v433_v40, %v432_v49 }
 0x20b   :  { %v435_v60 = vsub.f32 %v380_v59, %v434_v39  ;;  %v438_v61 = vsub.f32 %v406_v28, %v434_v39  ;;  %v441_v62 = vsub.f32 %v432_v49, %v434_v39 }
 0x20d   :  { %v436_v63 = vmul.f32 1.442695, %v435_v60  ;;  %v439_v0 = vmul.f32 1.442695, %v438_v61  ;;  %v442_v1 = vmul.f32 1.442695, %v441_v62 }
 0x20f   :  { %615 = vpow2.f32 %v436_v63 }
 0x210   :  { %617 = vpow2.f32 %v439_v0 }
 0x211   :  { %619 = vpow2.f32 %v442_v1 }
 0x215   :  { %v616_v2 = vpop.eup %615 }
 0x216   :  { %v618_v48 = vpop.eup %617 }
 0x217   :  { %v444_v3 = vadd.f32 %v618_v48, %v616_v2  ;;  %v620_v29 = vpop.eup %619 }
 0x219   :  { %v445_v30 = vadd.f32 %v620_v29, %v444_v3 }
 0x21b   :  { %621 = vrcp.f32 %v445_v30  ;;  %v457_v35 = vand.u32 2147483648, %v445_v30  ;;  %v455_v41 = vand.u32 2147483647, %v445_v30  ;;  %vm451_vm4 = vweird.f32 %v445_v30 }
 0x21d   :  { %v458_v45 = vor.u32 1.1754944e-38, %v457_v35  ;;  %vm456_vm6 = vcmp.eq.f32.partialorder %v455_v41, 8.507059e+37 }
 0x221   :  { %v622_v31 = vpop.eup %621 }
 0x222   :  { %v447_v32 = vmul.f32 %v622_v31, %v445_v30  ;;  %vm452_vm3 = vweird.f32 %v622_v31 }
 0x223   :  { %vm453_vm5 = vmor %vm451_vm4, %vm452_vm3 }
 0x224   :  { %v448_v34 = vsub.f32 1.0, %v447_v32 }
 0x226   :  { %v449_v36 = vmul.f32 %v622_v31, %v448_v34 }
 0x228   :  { %v450_v44 = vadd.f32 %v622_v31, %v449_v36 }
 0x22a   :  { %v454_v47 = vsel %vm453_vm5, %v622_v31, %v450_v44 }
 0x22b   :  { %v459_v50 = vsel %vm456_vm6, %v458_v45, %v454_v47 }
 0x22c   :  { %v461_v51 = vmul.f32 %v616_v2, %v459_v50  ;;  %v470_v52 = vmul.f32 %v618_v48, %v459_v50  ;;  %v487_v38 = vmul.f32 %v620_v29, %v459_v50 }
 0x22e   :  { %v462_v53 = vmul.f32 %v461_v51, %v678_v4  ;;  %v463_v54 = vmul.f32 %v461_v51, %v708_v8  ;;  %v464_v55 = vmul.f32 %v461_v51, %v736_v12  ;;  %v465_v56 = vmul.f32 %v461_v51, %v764_v16 }
 0x22f   :  { %v466_v57 = vmul.f32 %v461_v51, %v797_v21  ;;  %v467_v37 = vmul.f32 %v461_v51, %v820_v24  ;;  %v471_v42 = vmul.f32 %v470_v52, %v741_v13  ;;  %v472_v43 = vmul.f32 %v470_v52, %v769_v17 }
 0x230   :  { %v473_v58 = vmul.f32 %v470_v52, %v792_v20  ;;  %v474_v46 = vmul.f32 %v470_v52, %v825_v25  ;;  %v468_v4 = vmul.f32 %v461_v51, %v683_v5  ;;  %v475_v8 = vmul.f32 %v470_v52, %v690_v6 }
 0x231   :  { %v476_v12 = vmul.f32 %v470_v52, %v718_v10  ;;  %v477_v16 = vmul.f32 %v470_v52, %v746_v14  ;;  %v479_v21 = vadd.f32 %v471_v42, %v462_v53  ;;  %v480_v59 = vadd.f32 %v472_v43, %v463_v54 }
 0x232   :  { %v481_v24 = vadd.f32 %v473_v58, %v464_v55  ;;  %v469_v28 = vmul.f32 %v461_v51, %v713_v9  ;;  %v478_v13 = vmul.f32 %v470_v52, %v774_v18  ;;  %v482_v17 = vadd.f32 %v474_v46, %v465_v56 }
 0x233   :  { %v483_v33 = vadd.f32 %v475_v8, %v466_v57  ;;  %v488_v20 = vmul.f32 %v487_v38, %v802_v22  ;;  %v489_v25 = vmul.f32 %v487_v38, %v830_v26  ;;  %v490_v5 = vmul.f32 %v487_v38, %v695_v7 }
 0x234   :  { %v484_v6 = vadd.f32 %v476_v12, %v467_v37  ;;  %v485_v40 = vadd.f32 %v477_v16, %v468_v4  ;;  %v491_v10 = vmul.f32 %v487_v38, %v723_v11  ;;  %v492_v14 = vmul.f32 %v487_v38, %v751_v15 }
 0x235   :  { %v496_v49 = vadd.f32 %v488_v20, %v479_v21  ;;  %v497_v39 = vadd.f32 %v489_v25, %v480_v59  ;;  %v498_v60 = vadd.f32 %v490_v5, %v481_v24  ;;  %v486_v9 = vadd.f32 %v478_v13, %v469_v28 }
 0x236   :  { %v493_v18 = vmul.f32 %v487_v38, %v779_v19  ;;  %v499_v61 = vadd.f32 %v491_v10, %v482_v17  ;;  %v494_v62 = vmul.f32 %v487_v38, %v807_v23  ;;  %v500_v22 = vadd.f32 %v492_v14, %v483_v33 }
 0x237   :  { %504 = vst.msk [vmem:[%s1014_s4] sm:$0xff] %vm49_vm0, %v496_v49  ;;  %v495_v7 = vmul.f32 %v487_v38, %v835_v27 }
 0x238   :  { %v501_v11 = vadd.f32 %v493_v18, %v484_v6  ;;  %505 = vst.msk [vmem:[%s1014_s4 + $0x8] sm:$0xff] %vm49_vm0, %v497_v39  ;;  %v502_v15 = vadd.f32 %v494_v62, %v485_v40 }
 0x239   :  { %506 = vst.msk [vmem:[%s1014_s4 + $0x10] sm:$0xff] %vm49_vm0, %v498_v60  ;;  %v503_v19 = vadd.f32 %v495_v7, %v486_v9 }
 0x23a   :  { %507 = vst.msk [vmem:[%s1014_s4 + $0x18] sm:$0xff] %vm49_vm0, %v499_v61 }
 0x23b   :  { %508 = vst.msk [vmem:[%s1014_s4 + $0x20] sm:$0xff] %vm49_vm0, %v500_v22 }
 0x23c   :  { %509 = vst.msk [vmem:[%s1014_s4 + $0x28] sm:$0xff] %vm49_vm0, %v501_v11 }
 0x23d   :  { %510 = vst.msk [vmem:[%s1014_s4 + $0x30] sm:$0xff] %vm49_vm0, %v502_v15 }
 0x23e   :  { %511 = vst.msk [vmem:[%s1014_s4 + $0x38] sm:$0xff] %vm49_vm0, %v503_v19 }

// kernel: forward.8
= control target key start
LH: loop header
LB: loop body
LE: loop exit
PB: predicated region body
PF: predicated region fallthrough
CT: control target
= control target key end

     0   :  { %vm62_vm0 = vcmask 261120   ;;  %vm587_vm2 = vcmask 523264   ;;  %s2016_s2 = inlined_call_operand.vmem [shape: f32[32,32], index: 2, kind: input, shape index: {}]   ;;  %s2017_s1 = inlined_call_operand.vmem [shape: f32[192,32], index: 1, kind: input, shape index: {}]   ;;  %s2018_s3 = inlined_call_operand.vmem [shape: f32[1,32], index: 3, kind: input, shape index: {}]   ;;  %s2019_s6 = inlined_call_operand.vmem [shape: f32[32,32], index: 6, kind: input, shape index: {}]   ;;  %s2020_s4 = inlined_call_operand.vmem [shape: f32[1,32], index: 4, kind: input, shape index: {}]   ;;  %s2021_s0 = inlined_call_operand.vmem [shape: f32[64,64], index: 0, kind: input, shape index: {}]   ;;  %s2022_s5 = inlined_call_operand.vmem [shape: f32[32,32], index: 5, kind: input, shape index: {}]   ;;  %s2023_s7 = inlined_call_operand.vmem [shape: f32[192,32], index: 7, kind: output, shape index: {}]  }
   0x1   :  { %v328_v0 = vld [vmem:[%s2016_s2 + $0x18] sm:$0xff]  ;;  %v327_v1 = vld [vmem:[%s2016_s2 + $0x10] sm:$0xff]  ;;  %v326_v2 = vld [vmem:[%s2016_s2 + $0x8] sm:$0xff] }
   0x2   :  { %1055 = vmatpush.xpose.msk.msra.mxu2 %vm62_vm0, %v328_v0  ;;  %v325_v3 = vld [vmem:[%s2016_s2] sm:$0xff]  ;;  %v1280_v5 = vld [vmem:[%s2017_s1 + $0x8] sm:$0xff]  ;;  %v1287_v6 = vld [vmem:[%s2017_s1 + $0x10] sm:$0xff] }
   0x3   :  { %v1273_v4 = vld [vmem:[%s2017_s1] sm:$0xff]  ;;  %v1294_v7 = vld [vmem:[%s2017_s1 + $0x18] sm:$0xff]  ;;  %v1308_v9 = vld [vmem:[%s2017_s1 + $0x28] sm:$0xff] }
   0x4   :  { %v1301_v8 = vld [vmem:[%s2017_s1 + $0x20] sm:$0xff]  ;;  %v1315_v10 = vld [vmem:[%s2017_s1 + $0x30] sm:$0xff]  ;;  %v1322_v11 = vld [vmem:[%s2017_s1 + $0x38] sm:$0xff] }
   0x5   :  { %v1329_v12 = vld [vmem:[%s2017_s1 + $0x40] sm:$0xff]  ;;  %v1336_v13 = vld [vmem:[%s2017_s1 + $0x48] sm:$0xff]  ;;  %v1343_v14 = vld [vmem:[%s2017_s1 + $0x50] sm:$0xff] }
   0x6   :  { %1056 = vmatpush.xpose.msk.msra.mxu2 %vm62_vm0, %v327_v1  ;;  %v1350_v15 = vld [vmem:[%s2017_s1 + $0x58] sm:$0xff]  ;;  %v1357_v16 = vld [vmem:[%s2017_s1 + $0x60] sm:$0xff]  ;;  %v1364_v17 = vld [vmem:[%s2017_s1 + $0x68] sm:$0xff] }
   0x7   :  { %v1371_v18 = vld [vmem:[%s2017_s1 + $0x70] sm:$0xff]  ;;  %v1378_v19 = vld [vmem:[%s2017_s1 + $0x78] sm:$0xff]  ;;  %v59_v25 = vld [vmem:[%s2019_s6 + $0x8] sm:$0xff] }
   0x8   :  { %v61_v22 = vld [vmem:[%s2019_s6 + $0x18] sm:$0xff]  ;;  %v60_v24 = vld [vmem:[%s2019_s6 + $0x10] sm:$0xff]  ;;  %v58_v27 = vld [vmem:[%s2019_s6] sm:$0xff] }
   0x9   :  { %1110 = vmatpush.xpose.msk.msra.mxu3 %vm62_vm0, %v61_v22  ;;  %1015 = vmatpush.xpose.msk.msra.mxu0 %vm62_vm0, %v61_v22  ;;  %v1407_v28 = vld [vmem:[%s2017_s1 + $0xa0] sm:$0xff]  ;;  %v1418_v30 = vld [vmem:[%s2017_s1 + $0xa8] sm:$0xff]  ;;  %v1427_v32 = vld [vmem:[%s2017_s1 + $0xb0] sm:$0xff] }
   0xa   :  { %1057 = vmatpush.xpose.msk.msra.mxu2 %vm62_vm0, %v326_v2  ;;  %1109 = vmatpush.xpose.msk.msra.mxu1 %vm62_vm0, %v61_v22  ;;  %v1436_v34 = vld [vmem:[%s2017_s1 + $0xb8] sm:$0xff]  ;;  %v1459_v40 = vld [vmem:[%s2018_s3] ss:$0 sm:$0xff] }
   0xb   :  { %v498_v62 = vld [vmem:[%s2020_s4] sm:$0x1] }
   0xd   :  { %1112 = vmatpush.xpose.msk.msra.mxu3 %vm62_vm0, %v60_v24  ;;  %1016 = vmatpush.xpose.msk.msra.mxu0 %vm62_vm0, %v60_v24 }
   0xe   :  { %1058 = vmatpush.xpose.msk.msra.mxu2 %vm62_vm0, %v325_v3  ;;  %1111 = vmatpush.xpose.msk.msra.mxu1 %vm62_vm0, %v60_v24 }
  0x11   :  { %1059 = vmatmul.msk.f32.vlgmr.msra.gmra.mxu2 %vm62_vm0, %v1273_v4  ;;  %1114 = vmatpush.xpose.msk.msra.mxu3 %vm62_vm0, %v59_v25 }
  0x12   :  { %1017 = vmatpush.xpose.msk.msra.mxu0 %vm62_vm0, %v59_v25  ;;  %1113 = vmatpush.xpose.msk.msra.mxu1 %vm62_vm0, %v59_v25 }
  0x15   :  { %1116 = vmatpush.xpose.msk.msra.mxu3 %vm62_vm0, %v58_v27 }
  0x16   :  { %1018 = vmatpush.xpose.msk.msra.mxu0 %vm62_vm0, %v58_v27  ;;  %1115 = vmatpush.xpose.msk.msra.mxu1 %vm62_vm0, %v58_v27 }
  0x18   :  { %1039 = vmatmul.msk.f32.vlgmr.msra.gmra.mxu3 %vm62_vm0, %v1407_v28 }
  0x19   :  { %1060 = vmatmul.msk.f32.gmra.mxu2 %vm62_vm0, %v1280_v5  ;;  %1019 = vmatmul.msk.f32.vlgmr.msra.gmra.mxu0 %vm62_vm0, %v1273_v4 }
  0x20   :  { %1040 = vmatmul.msk.f32.gmra.mxu3 %vm62_vm0, %v1418_v30 }
  0x21   :  { %1061 = vmatmul.msk.f32.gmra.mxu2 %vm62_vm0, %v1287_v6  ;;  %1020 = vmatmul.msk.f32.gmra.mxu0 %vm62_vm0, %v1280_v5 }
  0x28   :  { %1041 = vmatmul.msk.f32.gmra.mxu3 %vm62_vm0, %v1427_v32 }
  0x29   :  { %1062 = vmatmul.msk.f32.gmra.mxu2 %vm62_vm0, %v1294_v7  ;;  %1021 = vmatmul.msk.f32.gmra.mxu0 %vm62_vm0, %v1287_v6 }
  0x30   :  { %1042 = vmatmul.msk.f32.gmra.mxu3 %vm62_vm0, %v1436_v34 }
  0x31   :  { %1063 = vmatmul.msk.f32.gmra.mxu2 %vm62_vm0, %v1301_v8  ;;  %1022 = vmatmul.msk.f32.gmra.mxu0 %vm62_vm0, %v1294_v7 }
  0x39   :  { %1064 = vmatmul.msk.f32.gmra.mxu2 %vm62_vm0, %v1308_v9  ;;  %1023 = vmatmul.msk.f32.gmra.mxu0 %vm62_vm0, %v1301_v8 }
  0x41   :  { %1065 = vmatmul.msk.f32.gmra.mxu2 %vm62_vm0, %v1315_v10  ;;  %1024 = vmatmul.msk.f32.gmra.mxu0 %vm62_vm0, %v1308_v9 }
  0x49   :  { %1066 = vmatmul.msk.f32.gmra.mxu2 %vm62_vm0, %v1322_v11  ;;  %1025 = vmatmul.msk.f32.gmra.mxu0 %vm62_vm0, %v1315_v10 }
  0x51   :  { %1067 = vmatmul.msk.f32.gmra.mxu2 %vm62_vm0, %v1329_v12  ;;  %1026 = vmatmul.msk.f32.gmra.mxu0 %vm62_vm0, %v1322_v11 }
  0x59   :  { %1068 = vmatmul.msk.f32.gmra.mxu2 %vm62_vm0, %v1336_v13  ;;  %1027 = vmatmul.msk.f32.gmra.mxu0 %vm62_vm0, %v1329_v12 }
  0x61   :  { %1069 = vmatmul.msk.f32.gmra.mxu2 %vm62_vm0, %v1343_v14  ;;  %1028 = vmatmul.msk.f32.gmra.mxu0 %vm62_vm0, %v1336_v13 }
  0x69   :  { %1070 = vmatmul.msk.f32.gmra.mxu2 %vm62_vm0, %v1350_v15  ;;  %1029 = vmatmul.msk.f32.gmra.mxu0 %vm62_vm0, %v1343_v14 }
  0x71   :  { %1071 = vmatmul.msk.f32.gmra.mxu2 %vm62_vm0, %v1357_v16  ;;  %1030 = vmatmul.msk.f32.gmra.mxu0 %vm62_vm0, %v1350_v15 }
  0x79   :  { %1072 = vmatmul.msk.f32.gmra.mxu2 %vm62_vm0, %v1364_v17  ;;  %1031 = vmatmul.msk.f32.gmra.mxu0 %vm62_vm0, %v1357_v16 }
  0x81   :  { %1073 = vmatmul.msk.f32.gmra.mxu2 %vm62_vm0, %v1371_v18  ;;  %1032 = vmatmul.msk.f32.gmra.mxu0 %vm62_vm0, %v1364_v17 }
  0x89   :  { %1074 = vmatmul.msk.f32.gmra.mxu2 %vm62_vm0, %v1378_v19  ;;  %1033 = vmatmul.msk.f32.gmra.mxu0 %vm62_vm0, %v1371_v18 }
  0x91   :  { %1034 = vmatmul.msk.f32.gmra.mxu0 %vm62_vm0, %v1378_v19 }
  0x94   :  { %v358_v20 = vpop.f32.mrf.mxu2 }
  0x9c   :  { %v361_v21 = vpop.f32.mrf.mxu2 }
  0xa4   :  { %v364_v23 = vpop.f32.mrf.mxu2 }
  0xac   :  { %v367_v26 = vpop.f32.mrf.mxu2 }
  0xb4   :  { %v370_v29 = vpop.f32.mrf.mxu2 }
  0xbc   :  { %v373_v31 = vpop.f32.mrf.mxu2 }
  0xc4   :  { %v376_v33 = vpop.f32.mrf.mxu2 }
  0xcc   :  { %v379_v35 = vpop.f32.mrf.mxu2 }
  0xcd   :  { %1118 = vtanh.f32 %v379_v35 }
  0xce   :  { %1120 = vtanh.f32 %v376_v33 }
  0xcf   :  { %1122 = vtanh.f32 %v373_v31 }
  0xd3   :  { %v1444_v36 = vpop.eup %1118 }
  0xd4   :  { %v382_v37 = vpop.f32.mrf.mxu2  ;;  %1075 = vmatpush.xpose.msk.msrb.mxu3 %vm62_vm0, %v1444_v36  ;;  %v1448_v38 = vpop.eup %1120 }
  0xd5   :  { %1124 = vtanh.f32 %v382_v37  ;;  %v1454_v39 = vpop.eup %1122 }
  0xd6   :  { %1126 = vtanh.f32 %v358_v20  ;;  %v431_v33 = vmul.f32 %v1454_v39, %v1459_v40 }
  0xd7   :  { %1128 = vtanh.f32 %v370_v29 }
  0xd8   :  { %1076 = vmatpush.xpose.msk.msrb.mxu3 %vm62_vm0, %v1448_v38  ;;  %1130 = vtanh.f32 %v367_v26 }
  0xdb   :  { %v1461_v41 = vpop.eup %1124 }
  0xdc   :  { %v385_v42 = vpop.f32.mrf.mxu2  ;;  %1077 = vmatpush.xpose.msk.msrb.mxu3 %vm62_vm0, %v1454_v39  ;;  %v434_v43 = vmul.f32 %v1461_v41, %v1459_v40  ;;  %v1127_v44 = vpop.eup %1126 }
  0xdd   :  { %1132 = vtanh.f32 %v385_v42  ;;  %v1129_v46 = vpop.eup %1128  ;;  %v426_v48 = vmul.f32 %v1127_v44, %v1459_v40 }
  0xde   :  { %v466_v45 = vsel %vm62_vm0, %v434_v43, 0.0  ;;  %1134 = vtanh.f32 %v361_v21  ;;  %v1131_v47 = vpop.eup %1130  ;;  %v430_v24 = vmul.f32 %v1129_v46, %v1459_v40  ;;  %v457_v43 = vsel %vm62_vm0, %v431_v33, 0.0 }
  0xdf   :  { %467 = vadd.xlane.f32.xlu0 %v466_v45  ;;  %1136 = vtanh.f32 %v364_v23  ;;  %v442_v53 = vsel %vm62_vm0, %v426_v48, 0.0  ;;  %v429_v63 = vmul.f32 %v1131_v47, %v1459_v40 }
  0xe0   :  { %1078 = vmatpush.xpose.msk.msrb.mxu3 %vm62_vm0, %v1129_v46  ;;  %v454_v29 = vsel %vm62_vm0, %v430_v24, 0.0 }
  0xe1   :  { %v451_v20 = vsel %vm62_vm0, %v429_v63, 0.0 }
  0xe3   :  { %v1472_v49 = vpop.eup %1132 }
  0xe4   :  { %v388_v50 = vpop.f32.mrf.mxu2  ;;  %1079 = vmatpush.xpose.msk.msrb.mxu3 %vm62_vm0, %v1131_v47  ;;  %v435_v51 = vmul.f32 %v1472_v49, %v1459_v40  ;;  %v1135_v52 = vpop.eup %1134  ;;  %v432_v47 = vmul.f32 %v1448_v38, %v1459_v40 }
  0xe5   :  { %1138 = vtanh.f32 %v388_v50  ;;  %v1137_v55 = vpop.eup %1136  ;;  %v427_v56 = vmul.f32 %v1135_v52, %v1459_v40  ;;  %v1554_v38 = vpop.f32.mrf.mxu3 }
  0xe6   :  { %v469_v54 = vsel %vm62_vm0, %v435_v51, 0.0  ;;  %v428_v0 = vmul.f32 %v1137_v55, %v1459_v40  ;;  %v460_v50 = vsel %vm62_vm0, %v432_v47, 0.0 }
  0xe7   :  { %443 = vadd.xlane.f32.xlu0 %v442_v53  ;;  %470 = vadd.xlane.f32.xlu1 %v469_v54  ;;  %v445_v60 = vsel %vm62_vm0, %v427_v56, 0.0  ;;  %v27_v56 = vld [vmem:[%s2021_s0 + $0x8] sm:$0xff] }
  0xe8   :  { %1080 = vmatpush.xpose.msk.msrb.mxu3 %vm62_vm0, %v1137_v55  ;;  %v448_v21 = vsel %vm62_vm0, %v428_v0, 0.0  ;;  %v1571_v55 = vld [vmem:[%s2021_s0 + $0x10] sm:$0xff]  ;;  %vm491_vm3 = vcmp.gt.f32.partialorder %v27_v56, 0.0 }
  0xe9   :  { %vm492_vm1 = vcmp.gt.f32.partialorder %v1571_v55, 0.0 }
  0xeb   :  { %v1483_v57 = vpop.eup %1138 }
  0xec   :  { %v391_v58 = vpop.f32.mrf.mxu2  ;;  %1081 = vmatpush.xpose.msk.msrb.mxu3 %vm62_vm0, %v1135_v52  ;;  %v436_v59 = vmul.f32 %v1483_v57, %v1459_v40 }
  0xed   :  { %1140 = vtanh.f32 %v391_v58 }
  0xee   :  { %v472_v61 = vsel %vm62_vm0, %v436_v59, 0.0 }
  0xef   :  { %446 = vadd.xlane.f32.xlu1 %v445_v60  ;;  %473 = vadd.xlane.f32.xlu2 %v472_v61 }
  0xf0   :  { %1082 = vmatpush.xpose.msk.msrb.mxu3 %vm62_vm0, %v1127_v44 }
  0xf3   :  { %v1141_v1 = vpop.eup %1140  ;;  %1083 = vmatmul.msk.f32.vlgmr.msrb.gmra.mxu3 %vm62_vm0, %v498_v62 }
  0xf4   :  { %v394_v2 = vpop.f32.mrf.mxu2  ;;  %v437_v3 = vmul.f32 %v1141_v1, %v1459_v40 }
  0xf5   :  { %1142 = vtanh.f32 %v394_v2 }
  0xf6   :  { %v475_v22 = vsel %vm62_vm0, %v437_v3, 0.0 }
  0xf7   :  { %452 = vadd.xlane.f32.xlu1 %v451_v20  ;;  %449 = vadd.xlane.f32.xlu2 %v448_v21 }
  0xf8   :  { %476 = vadd.xlane.f32.xlu0 %v475_v22 }
  0xfb   :  { %v1143_v23 = vpop.eup %1142 }
  0xfc   :  { %v397_v25 = vpop.f32.mrf.mxu2  ;;  %v438_v26 = vmul.f32 %v1143_v23, %v1459_v40 }
  0xfd   :  { %1144 = vtanh.f32 %v397_v25 }
  0xfe   :  { %v478_v27 = vsel %vm62_vm0, %v438_v26, 0.0 }
  0xff   :  { %479 = vadd.xlane.f32.xlu2 %v478_v27 }
 0x100   :  { %455 = vadd.xlane.f32.xlu0 %v454_v29 }
 0x103   :  { %v1145_v31 = vpop.eup %1144 }
 0x104   :  { %v400_v35 = vpop.f32.mrf.mxu2  ;;  %v439_v37 = vmul.f32 %v1145_v31, %v1459_v40 }
 0x105   :  { %1146 = vtanh.f32 %v400_v35 }
 0x106   :  { %v481_v42 = vsel %vm62_vm0, %v439_v37, 0.0 }
 0x107   :  { %482 = vadd.xlane.f32.xlu1 %v481_v42 }
 0x108   :  { %458 = vadd.xlane.f32.xlu0 %v457_v43  ;;  %v1607_v43 = vld [vmem:[%s2021_s0 + $0x18] sm:$0xff] }
 0x109   :  { %vm493_vm11 = vcmp.gt.f32.partialorder %v1607_v43, 0.0 }
 0x10b   :  { %v1147_v44 = vpop.eup %1146 }
 0x10c   :  { %v403_v45 = vpop.f32.mrf.mxu2  ;;  %v440_v46 = vmul.f32 %v1147_v44, %v1459_v40 }
 0x10d   :  { %1148 = vtanh.f32 %v403_v45 }
 0x10e   :  { %v484_v39 = vsel %vm62_vm0, %v440_v46, 0.0 }
 0x10f   :  { %485 = vadd.xlane.f32.xlu1 %v484_v39 }
 0x113   :  { %v1524_v48 = vpop.eup %1148 }
 0x114   :  { %1084 = vmatpush.xpose.msk.msra.mxu3 %vm62_vm0, %v1524_v48 }
 0x117   :  { %461 = vadd.xlane.f32.xlu1 %v460_v50 }
 0x118   :  { %1085 = vmatpush.xpose.msk.msra.mxu3 %vm62_vm0, %v1147_v44 }
 0x11c   :  { %1086 = vmatpush.xpose.msk.msra.mxu3 %vm62_vm0, %v1145_v31 }
 0x120   :  { %1087 = vmatpush.xpose.msk.msra.mxu3 %vm62_vm0, %v1143_v23 }
 0x124   :  { %1088 = vmatpush.xpose.msk.msra.mxu3 %vm62_vm0, %v1141_v1 }
 0x128   :  { %1089 = vmatpush.xpose.msk.msra.mxu3 %vm62_vm0, %v1483_v57  ;;  %v26_v57 = vld [vmem:[%s2021_s0] sm:$0xff] }
 0x129   :  { %vm490_vm4 = vcmp.gt.f32.partialorder %v26_v57, 0.0 }
 0x12c   :  { %1090 = vmatpush.xpose.msk.msra.mxu3 %vm62_vm0, %v1472_v49 }
 0x130   :  { %1091 = vmatpush.xpose.msk.msra.mxu3 %vm62_vm0, %v1461_v41  ;;  %v1556_v41 = vpop.f32.mrf.mxu3 }
 0x133   :  { %1092 = vmatmul.msk.f32.vlgmr.msra.gmra.mxu3 %vm62_vm0, %v498_v62 }
 0x134   :  { %954 = vmatpush.msrb.mxu3 %v1378_v19 }
 0x136   :  { %955 = vmatpush.msrb.mxu3 %v1371_v18 }
 0x138   :  { %956 = vmatpush.msrb.mxu3 %v1364_v17  ;;  %v1558_v19 = vpop.f32.mrf.mxu3 }
 0x13a   :  { %957 = vmatpush.msrb.mxu3 %v1357_v16 }
 0x13c   :  { %958 = vmatpush.msrb.mxu3 %v1350_v15 }
 0x13e   :  { %959 = vmatpush.msrb.mxu3 %v1343_v14 }
 0x140   :  { %960 = vmatpush.msrb.mxu3 %v1336_v13  ;;  %v1560_v51 = vpop.f32.mrf.mxu3 }
 0x142   :  { %961 = vmatpush.msrb.mxu3 %v1329_v12 }
 0x152   :  { %v468_v18 = vpop.xlane.xlu0 %467 }
 0x15a   :  { %v471_v49 = vpop.xlane.xlu1 %470  ;;  %v444_v16 = vpop.xlane.xlu0 %443 }
 0x162   :  { %v447_v17 = vpop.xlane.xlu1 %446  ;;  %v474_v15 = vpop.xlane.xlu2 %473 }
 0x16a   :  { %v1564_v14 = vpop.xlane.xlu1 %452  ;;  %v450_v24 = vpop.xlane.xlu2 %449 }
 0x16b   :  { %v477_v13 = vpop.xlane.xlu0 %476 }
 0x173   :  { %v456_v37 = vpop.xlane.xlu0 %455 }
 0x176   :  { %v543_v52 = vpop.f32.mrf.mxu3 }
 0x177   :  { %v1562_v53 = vperm.slane %v543_v52, 0 }
 0x179   :  { %v548_v58 = vadd.f32 %v1562_v53, %v447_v17  ;;  %v547_v59 = vadd.f32 %v1562_v53, %v444_v16  ;;  %v551_v46 = vadd.f32 %v1562_v53, %v456_v37  ;;  %v549_v39 = vadd.f32 %v1562_v53, %v450_v24 }
 0x17a   :  { %v1586_v25 = vpop.xlane.xlu1 %482  ;;  %v433_v37 = vmul.f32 %v1444_v36, %v1459_v40 }
 0x17b   :  { %vm556_vm8 = vcmp.gt.f32.partialorder %v548_v58, 0.0  ;;  %v564_v3 = vmul.f32 0.05, %v548_v58  ;;  %v563_v23 = vmul.f32 0.05, %v547_v59  ;;  %vm555_vm10 = vcmp.gt.f32.partialorder %v547_v59, 0.0 }
 0x17c   :  { %v567_v16 = vmul.f32 0.05, %v551_v46  ;;  %v565_v52 = vmul.f32 0.05, %v549_v39  ;;  %vm559_vm12 = vcmp.gt.f32.partialorder %v551_v46, 0.0  ;;  %vm557_vm13 = vcmp.gt.f32.partialorder %v549_v39, 0.0 }
 0x17d   :  { %v572_v45 = vsel %vm556_vm8, %v548_v58, %v564_v3  ;;  %v571_v47 = vsel %vm555_vm10, %v547_v59, %v563_v23  ;;  %v459_v3 = vpop.xlane.xlu0 %458 }
 0x17e   :  { %v1624_v17 = vsel %vm490_vm4, %v571_v47, -9e+25  ;;  %v575_v57 = vsel %vm559_vm12, %v551_v46, %v567_v16  ;;  %v573_v59 = vsel %vm557_vm13, %v549_v39, %v565_v52  ;;  %v463_v47 = vsel %vm62_vm0, %v433_v37, 0.0 }
 0x17f   :  { %v588_v58 = vsel %vm587_vm2, %v1624_v17, -inf }
 0x182   :  { %v486_v56 = vpop.xlane.xlu1 %485 }
 0x1b6   :  { %v717_v12 = vpop.f32.mrf.mxu3 }
 0x1b7   :  { %v1566_v54 = vperm.slane %v717_v12, 0  ;;  %v480_v12 = vpop.xlane.xlu2 %479 }
 0x1b9   :  { %v723_v60 = vadd.f32 %v1566_v54, %v474_v15  ;;  %v722_v61 = vadd.f32 %v1566_v54, %v471_v49  ;;  %v721_v62 = vadd.f32 %v1566_v54, %v468_v18  ;;  %v724_v63 = vadd.f32 %v1566_v54, %v477_v13  ;;  %v30_v18 = vld [vmem:[%s2021_s0 + $0x20] sm:$0xff] }
 0x1ba   :  { %v1618_v49 = vsel %vm491_vm3, %v572_v45, -9e+25  ;;  %vm494_vm14 = vcmp.gt.f32.partialorder %v30_v18, 0.0  ;;  %v31_v45 = vld [vmem:[%s2021_s0 + $0x28] sm:$0xff]  ;;  %v726_v16 = vadd.f32 %v1566_v54, %v1586_v25 }
 0x1bb   :  { %vm731_vm5 = vcmp.gt.f32.partialorder %v723_v60, 0.0  ;;  %v739_v0 = vmul.f32 0.05, %v723_v60  ;;  %vm730_vm6 = vcmp.gt.f32.partialorder %v722_v61, 0.0  ;;  %v738_v1 = vmul.f32 0.05, %v722_v61 }
 0x1bc   :  { %vm729_vm7 = vcmp.gt.f32.partialorder %v721_v62, 0.0  ;;  %v737_v2 = vmul.f32 0.05, %v721_v62  ;;  %v740_v22 = vmul.f32 0.05, %v724_v63  ;;  %vm732_vm9 = vcmp.gt.f32.partialorder %v724_v63, 0.0 }
 0x1bd   :  { %v747_v20 = vsel %vm731_vm5, %v723_v60, %v739_v0  ;;  %v746_v21 = vsel %vm730_vm6, %v722_v61, %v738_v1  ;;  %v591_v13 = vsel %vm587_vm2, %v1618_v49, -inf  ;;  %v727_v60 = vadd.f32 %v1566_v54, %v486_v56 }
 0x1be   :  { %v1590_v26 = vsel %vm492_vm1, %v747_v20, -9e+25  ;;  %v1593_v27 = vsel %vm491_vm3, %v746_v21, -9e+25  ;;  %v745_v29 = vsel %vm729_vm7, %v721_v62, %v737_v2  ;;  %v748_v44 = vsel %vm732_vm9, %v724_v63, %v740_v22  ;;  %v32_v22 = vld [vmem:[%s2021_s0 + $0x30] sm:$0xff] }
 0x1bf   :  { %v767_v31 = vsel %vm587_vm2, %v1590_v26, -inf  ;;  %v764_v33 = vsel %vm587_vm2, %v1593_v27, -inf  ;;  %v1600_v35 = vsel %vm490_vm4, %v745_v29, -9e+25  ;;  %v1615_v50 = vsel %vm493_vm11, %v748_v44, -9e+25  ;;  %v462_v44 = vpop.xlane.xlu1 %461 }
 0x1c0   :  { %768 = vmax.xlane.f32.xlu1 %v767_v31  ;;  %765 = vmax.xlane.f32.xlu0 %v764_v33  ;;  %v761_v42 = vsel %vm587_vm2, %v1600_v35, -inf  ;;  %v770_v15 = vsel %vm587_vm2, %v1615_v50, -inf  ;;  %v725_v61 = vadd.f32 %v1566_v54, %v480_v12  ;;  %v1635_v62 = vsel %vm494_vm14, %v575_v57, -9e+25 }
 0x1c1   :  { %762 = vmax.xlane.f32.xlu2 %v761_v42  ;;  %v1639_v63 = vsel %vm492_vm1, %v573_v59, -9e+25  ;;  %v441_v0 = vmul.f32 %v1524_v48, %v1459_v40  ;;  %v743_v1 = vmul.f32 0.05, %v727_v60  ;;  %vm735_vm15 = vcmp.gt.f32.partialorder %v727_v60, 0.0 }
 0x1c2   :  { %v741_v2 = vmul.f32 0.05, %v725_v61  ;;  %vm733_vm3 = vcmp.gt.f32.partialorder %v725_v61, 0.0  ;;  %v600_v20 = vsel %vm587_vm2, %v1635_v62, -inf  ;;  %v594_v21 = vsel %vm587_vm2, %v1639_v63, -inf }
 0x1c3   :  { %v487_v55 = vsel %vm62_vm0, %v441_v0, 0.0  ;;  %v552_v48 = vadd.f32 %v1562_v53, %v459_v3  ;;  %v751_v23 = vsel %vm735_vm15, %v727_v60, %v743_v1  ;;  %v550_v29 = vadd.f32 %v1562_v53, %v1564_v14 }
 0x1c4   :  { %v749_v24 = vsel %vm733_vm3, %v725_v61, %v741_v2  ;;  %vm496_vm1 = vcmp.gt.f32.partialorder %v32_v22, 0.0  ;;  %v553_v36 = vadd.f32 %v1562_v53, %v462_v44  ;;  %vm495_vm6 = vcmp.gt.f32.partialorder %v31_v45, 0.0 }
 0x1c5   :  { %v1655_v31 = vsel %vm496_vm1, %v751_v23, -9e+25  ;;  %v1658_v33 = vsel %vm494_vm14, %v749_v24, -9e+25  ;;  %v568_v42 = vmul.f32 0.05, %v552_v48 }
 0x1c6   :  { %vm560_vm4 = vcmp.gt.f32.partialorder %v552_v48, 0.0  ;;  %v566_v46 = vmul.f32 0.05, %v550_v29  ;;  %v779_v14 = vsel %vm587_vm2, %v1655_v31, -inf  ;;  %v773_v39 = vsel %vm587_vm2, %v1658_v33, -inf }
 0x1c7   :  { %vm558_vm5 = vcmp.gt.f32.partialorder %v550_v29, 0.0  ;;  %v576_v40 = vsel %vm560_vm4, %v552_v48, %v568_v42  ;;  %vm561_vm7 = vcmp.gt.f32.partialorder %v553_v36, 0.0  ;;  %v742_v12 = vmul.f32 0.05, %v726_v16 }
 0x1c8   :  { %771 = vmax.xlane.f32.xlu1 %v770_v15  ;;  %592 = vmax.xlane.f32.xlu0 %v591_v13  ;;  %v574_v18 = vsel %vm558_vm5, %v550_v29, %v566_v46  ;;  %v1674_v52 = vsel %vm495_vm6, %v576_v40, -9e+25  ;;  %v569_v15 = vmul.f32 0.05, %v553_v36  ;;  %vm734_vm8 = vcmp.gt.f32.partialorder %v726_v16, 0.0 }
 0x1c9   :  { %589 = vmax.xlane.f32.xlu2 %v588_v58  ;;  %v1678_v13 = vsel %vm493_vm11, %v574_v18, -9e+25  ;;  %v603_v56 = vsel %vm587_vm2, %v1674_v52, -inf  ;;  %v750_v57 = vsel %vm734_vm8, %v726_v16, %v742_v12 }
 0x1ca   :  { %v597_v58 = vsel %vm587_vm2, %v1678_v13, -inf  ;;  %v577_v25 = vsel %vm561_vm7, %v553_v36, %v569_v15  ;;  %v1688_v43 = vsel %vm495_vm6, %v750_v57, -9e+25 }
 0x1cb   :  { %v1685_v59 = vsel %vm496_vm1, %v577_v25, -9e+25  ;;  %v776_v61 = vsel %vm587_vm2, %v1688_v43, -inf }
 0x1cc   :  { %v606_v60 = vsel %vm587_vm2, %v1685_v59, -inf }
 0x1d0   :  { %601 = vmax.xlane.f32.xlu1 %v600_v20  ;;  %595 = vmax.xlane.f32.xlu0 %v594_v21 }
 0x1d1   :  { %488 = vadd.xlane.f32.xlu2 %v487_v55 }
 0x1d8   :  { %780 = vmax.xlane.f32.xlu1 %v779_v14  ;;  %774 = vmax.xlane.f32.xlu0 %v773_v39  ;;  %v33_v39 = vld [vmem:[%s2021_s0 + $0x38] sm:$0xff] }
 0x1d9   :  { %464 = vadd.xlane.f32.xlu2 %v463_v47  ;;  %vm497_vm9 = vcmp.gt.f32.partialorder %v33_v39, 0.0  ;;  %v261_v39 = vld [vmem:[%s2022_s5 + $0x8] sm:$0xff] }
 0x1e0   :  { %604 = vmax.xlane.f32.xlu0 %v603_v56 }
 0x1e1   :  { %598 = vmax.xlane.f32.xlu2 %v597_v58 }
 0x1e8   :  { %607 = vmax.xlane.f32.xlu0 %v606_v60 }
 0x1e9   :  { %777 = vmax.xlane.f32.xlu2 %v776_v61 }
 0x233   :  { %v766_v0 = vpop.xlane.xlu0 %765  ;;  %v769_v1 = vpop.xlane.xlu1 %768 }
 0x234   :  { %v786_v2 = vsub.f32 %v1593_v27, %v766_v0  ;;  %v763_v3 = vpop.xlane.xlu2 %762  ;;  %v787_v55 = vsub.f32 %v1590_v26, %v769_v1 }
 0x235   :  { %v785_v20 = vsub.f32 %v1600_v35, %v763_v3 }
 0x236   :  { %v795_v21 = vmul.f32 1.442695, %v786_v2  ;;  %v797_v48 = vmul.f32 1.442695, %v787_v55 }
 0x237   :  { %v793_v22 = vmul.f32 1.442695, %v785_v20 }
 0x238   :  { %1150 = vpow2.f32 %v795_v21  ;;  %v1735_v21 = vld [vmem:[%s2017_s1 + $0x90] sm:$0xff] }
 0x239   :  { %1152 = vpow2.f32 %v793_v22  ;;  %1037 = vmatmul.msk.f32.vlgmr.msra.gmra.mxu1 %vm62_vm0, %v1735_v21 }
 0x23a   :  { %1154 = vpow2.f32 %v797_v48 }
 0x23b   :  { %v593_v23 = vpop.xlane.xlu0 %592  ;;  %v772_v26 = vpop.xlane.xlu1 %771 }
 0x23c   :  { %v590_v24 = vpop.xlane.xlu2 %589  ;;  %v613_v27 = vsub.f32 %v1618_v49, %v593_v23  ;;  %v788_v18 = vsub.f32 %v1615_v50, %v772_v26  ;;  %v50_v23 = vld [vmem:[%s2017_s1 + $0x80] sm:$0xff] }
 0x23d   :  { %v612_v29 = vsub.f32 %v1624_v17, %v590_v24  ;;  %1035 = vmatmul.msk.f32.gmra.mxu0 %vm62_vm0, %v50_v23 }
 0x23e   :  { %v1698_v37 = vpop.eup %1150  ;;  %v622_v17 = vmul.f32 1.442695, %v613_v27  ;;  %v799_v57 = vmul.f32 1.442695, %v788_v18 }
 0x23f   :  { %v620_v42 = vmul.f32 1.442695, %v612_v29  ;;  %v1700_v44 = vpop.eup %1152  ;;  %v812_v35 = vsel %vm587_vm2, %v1698_v37, 0.0  ;;  %v262_v29 = vld [vmem:[%s2022_s5 + $0x10] sm:$0xff] }
 0x240   :  { %813 = vadd.xlane.f32.xlu0 %v812_v35  ;;  %v809_v45 = vsel %vm587_vm2, %v1700_v44, 0.0  ;;  %v1710_v47 = vpop.eup %1154 }
 0x241   :  { %1156 = vpow2.f32 %v620_v42  ;;  %810 = vadd.xlane.f32.xlu2 %v809_v45  ;;  %v815_v16 = vsel %vm587_vm2, %v1710_v47, 0.0 }
 0x242   :  { %1158 = vpow2.f32 %v622_v17 }
 0x243   :  { %v596_v46 = vpop.xlane.xlu0 %595  ;;  %v602_v58 = vpop.xlane.xlu1 %601  ;;  %1160 = vpow2.f32 %v799_v57 }
 0x244   :  { %v489_v14 = vpop.xlane.xlu2 %488  ;;  %v614_v56 = vsub.f32 %v1639_v63, %v596_v46  ;;  %v616_v63 = vsub.f32 %v1635_v62, %v602_v58  ;;  %v53_v46 = vld [vmem:[%s2017_s1 + $0x98] sm:$0xff] }
 0x245   :  { %v728_v49 = vadd.f32 %v1566_v54, %v489_v14  ;;  %1038 = vmatmul.msk.f32.gmra.mxu1 %vm62_vm0, %v53_v46 }
 0x246   :  { %v624_v1 = vmul.f32 1.442695, %v614_v56  ;;  %v628_v24 = vmul.f32 1.442695, %v616_v63 }
 0x247   :  { %v744_v36 = vmul.f32 0.05, %v728_v49  ;;  %vm736_vm10 = vcmp.gt.f32.partialorder %v728_v49, 0.0  ;;  %v1713_v40 = vpop.eup %1156 }
 0x248   :  { %816 = vadd.xlane.f32.xlu0 %v815_v16  ;;  %v636_v15 = vsel %vm587_vm2, %v1713_v40, 0.0  ;;  %v1727_v0 = vpop.eup %1158  ;;  %1162 = vpow2.f32 %v624_v1 }
 0x249   :  { %v752_v12 = vsel %vm736_vm10, %v728_v49, %v744_v36  ;;  %637 = vadd.xlane.f32.xlu2 %v636_v15  ;;  %v639_v3 = vsel %vm587_vm2, %v1727_v0, 0.0  ;;  %v1757_v35 = vpop.eup %1160  ;;  %1164 = vpow2.f32 %v628_v24 }
 0x24a   :  { %v1722_v54 = vsel %vm497_vm9, %v752_v12, -9e+25 }
 0x24b   :  { %v775_v25 = vpop.xlane.xlu0 %774  ;;  %v782_v50 = vsel %vm587_vm2, %v1722_v54, -inf  ;;  %v781_v42 = vpop.xlane.xlu1 %780 }
 0x24c   :  { %783 = vmax.xlane.f32.xlu1 %v782_v50  ;;  %v465_v60 = vpop.xlane.xlu2 %464  ;;  %v789_v55 = vsub.f32 %v1658_v33, %v775_v25  ;;  %v791_v14 = vsub.f32 %v1655_v31, %v781_v42  ;;  %v51_v31 = vld [vmem:[%s2017_s1 + $0x88] sm:$0xff] }
 0x24d   :  { %v554_v61 = vadd.f32 %v1562_v53, %v465_v60  ;;  %v263_v53 = vld [vmem:[%s2022_s5 + $0x18] sm:$0xff]  ;;  %1036 = vmatmul.msk.f32.gmra.mxu0 %vm62_vm0, %v51_v31 }
 0x24e   :  { %1043 = vmatpush.xpose.msk.msrb.mxu1 %vm62_vm0, %v263_v53  ;;  %v801_v26 = vmul.f32 1.442695, %v789_v55  ;;  %v1763_v17 = vpop.eup %1162  ;;  %v805_v18 = vmul.f32 1.442695, %v791_v14 }
 0x24f   :  { %v570_v2 = vmul.f32 0.05, %v554_v61  ;;  %vm562_vm11 = vcmp.gt.f32.partialorder %v554_v61, 0.0  ;;  %v642_v36 = vsel %vm587_vm2, %v1763_v17, 0.0  ;;  %v1784_v56 = vpop.eup %1164 }
 0x251   :  { %v578_v20 = vsel %vm562_vm11, %v554_v61, %v570_v2  ;;  %640 = vadd.xlane.f32.xlu2 %v639_v3 }
 0x252   :  { %v1742_v22 = vsel %vm497_vm9, %v578_v20, -9e+25  ;;  %1044 = vmatpush.xpose.msk.msrb.mxu1 %vm62_vm0, %v262_v29 }
 0x253   :  { %v605_v62 = vpop.xlane.xlu0 %604  ;;  %v609_v48 = vsel %vm587_vm2, %v1742_v22, -inf }
 0x254   :  { %610 = vmax.xlane.f32.xlu1 %v609_v48  ;;  %v599_v33 = vpop.xlane.xlu2 %598  ;;  %v617_v49 = vsub.f32 %v1674_v52, %v605_v62  ;;  %v260_v52 = vld [vmem:[%s2022_s5] sm:$0xff] }
 0x255   :  { %v615_v27 = vsub.f32 %v1678_v13, %v599_v33  ;;  %v818_v13 = vsel %vm587_vm2, %v1757_v35, 0.0 }
 0x256   :  { %1045 = vmatpush.xpose.msk.msrb.mxu1 %vm62_vm0, %v261_v39  ;;  %v630_v58 = vmul.f32 1.442695, %v617_v49 }
 0x257   :  { %v626_v45 = vmul.f32 1.442695, %v615_v27 }
 0x259   :  { %1166 = vpow2.f32 %v626_v45  ;;  %819 = vadd.xlane.f32.xlu2 %v818_v13 }
 0x25a   :  { %1168 = vpow2.f32 %v801_v26  ;;  %1046 = vmatpush.xpose.msk.msrb.mxu1 %vm62_vm0, %v260_v52 }
 0x25b   :  { %v608_v16 = vpop.xlane.xlu0 %607  ;;  %1170 = vpow2.f32 %v805_v18 }
 0x25c   :  { %643 = vadd.xlane.f32.xlu1 %v642_v36  ;;  %v778_v15 = vpop.xlane.xlu2 %777  ;;  %v618_v50 = vsub.f32 %v1685_v59, %v608_v16 }
 0x25d   :  { %v790_v12 = vsub.f32 %v1688_v43, %v778_v15  ;;  %v648_v43 = vsel %vm587_vm2, %v1784_v56, 0.0  ;;  %1047 = vmatmul.msk.f32.vlgmr.msrb.gmra.mxu1 %vm62_vm0, %v50_v23 }
 0x25e   :  { %881 = vmatpush.msra.mxu1 %v1322_v11  ;;  %v632_v59 = vmul.f32 1.442695, %v618_v50 }
 0x25f   :  { %v1786_v25 = vpop.eup %1166  ;;  %v803_v57 = vmul.f32 1.442695, %v790_v12 }
 0x260   :  { %v1790_v60 = vpop.eup %1168  ;;  %v645_v61 = vsel %vm587_vm2, %v1786_v25, 0.0  ;;  %882 = vmatpush.msra.mxu1 %v1315_v10 }
 0x261   :  { %1172 = vpow2.f32 %v803_v57  ;;  %646 = vadd.xlane.f32.xlu0 %v645_v61  ;;  %649 = vadd.xlane.f32.xlu2 %v648_v43  ;;  %v821_v1 = vsel %vm587_vm2, %v1790_v60, 0.0  ;;  %v1802_v2 = vpop.eup %1170 }
 0x262   :  { %1174 = vpow2.f32 %v630_v58  ;;  %883 = vmatpush.msra.mxu1 %v1308_v9  ;;  %v827_v20 = vsel %vm587_vm2, %v1802_v2, 0.0 }
 0x263   :  { %1176 = vpow2.f32 %v632_v59 }
 0x264   :  { %822 = vadd.xlane.f32.xlu1 %v821_v1  ;;  %884 = vmatpush.msra.mxu1 %v1301_v8 }
 0x265   :  { %1048 = vmatmul.msk.f32.gmra.mxu1 %vm62_vm0, %v51_v31 }
 0x266   :  { %885 = vmatpush.msra.mxu1 %v1294_v7 }
 0x267   :  { %v1804_v11 = vpop.eup %1172 }
 0x268   :  { %v1807_v63 = vpop.eup %1174  ;;  %v824_v3 = vsel %vm587_vm2, %v1804_v11, 0.0  ;;  %886 = vmatpush.msra.mxu1 %v1287_v6 }
 0x269   :  { %825 = vadd.xlane.f32.xlu0 %v824_v3  ;;  %828 = vadd.xlane.f32.xlu2 %v827_v20  ;;  %v651_v9 = vsel %vm587_vm2, %v1807_v63, 0.0  ;;  %v1818_v8 = vpop.eup %1176 }
 0x26a   :  { %887 = vmatpush.msra.mxu1 %v1280_v5  ;;  %v654_v10 = vsel %vm587_vm2, %v1818_v8, 0.0 }
 0x26c   :  { %652 = vadd.xlane.f32.xlu1 %v651_v9  ;;  %888 = vmatpush.msra.mxu1 %v1273_v4  ;;  %v1835_v4 = vpop.f32.mrf.mxu0 }
 0x26d   :  { %1049 = vmatmul.msk.f32.gmra.mxu1 %vm62_vm0, %v1735_v21 }
 0x271   :  { %655 = vadd.xlane.f32.xlu0 %v654_v10 }
 0x274   :  { %v1837_v5 = vpop.f32.mrf.mxu0 }
 0x275   :  { %1050 = vmatmul.msk.f32.gmra.mxu1 %vm62_vm0, %v53_v46 }
 0x27c   :  { %v1839_v7 = vpop.f32.mrf.mxu0 }
 0x27d   :  { %1051 = vmatmul.msk.f32.gmra.mxu1 %vm62_vm0, %v1407_v28 }
 0x284   :  { %v1842_v55 = vpop.f32.mrf.mxu0 }
 0x285   :  { %1052 = vmatmul.msk.f32.gmra.mxu1 %vm62_vm0, %v1418_v30 }
 0x28c   :  { %v1848_v42 = vpop.f32.mrf.mxu0 }
 0x28d   :  { %1053 = vmatmul.msk.f32.gmra.mxu1 %vm62_vm0, %v1427_v32 }
 0x294   :  { %v1859_v49 = vpop.f32.mrf.mxu0 }
 0x295   :  { %1054 = vmatmul.msk.f32.gmra.mxu1 %vm62_vm0, %v1436_v34 }
 0x29c   :  { %v1872_v50 = vpop.f32.mrf.mxu0 }
 0x2a4   :  { %v1881_v20 = vpop.f32.mrf.mxu0 }
 0x2b3   :  { %v814_v21 = vpop.xlane.xlu0 %813 }
 0x2b4   :  { %v811_v6 = vpop.xlane.xlu2 %810 }
 0x2b5   :  { %1178 = vrcp.f32 %v811_v6 }
 0x2b6   :  { %1180 = vrcp.f32 %v814_v21  ;;  %v1863_v36 = vpop.f32.mrf.mxu1 }
 0x2bb   :  { %v1179_v53 = vpop.eup %1178  ;;  %v817_v34 = vpop.xlane.xlu0 %816 }
 0x2bc   :  { %v841_v28 = vmul.f32 %v1179_v53, %v1700_v44  ;;  %v638_v30 = vpop.xlane.xlu2 %637  ;;  %v1181_v48 = vpop.eup %1180 }
 0x2bd   :  { %1182 = vrcp.f32 %v638_v30  ;;  %v842_v44 = vmul.f32 %v1181_v48, %v1698_v37 }
 0x2be   :  { %1101 = vmatmul.msk.f32.vlgmr.msrb.gmra.mxu3 %vm587_vm2, %v841_v28  ;;  %1184 = vrcp.f32 %v817_v34 }
 0x2bf   :  { %v784_v32 = vpop.xlane.xlu1 %783 }
 0x2c0   :  { %v792_v62 = vsub.f32 %v1722_v54, %v784_v32 }
 0x2c2   :  { %v807_v23 = vmul.f32 1.442695, %v792_v62  ;;  %v1875_v57 = vpop.f32.mrf.mxu1  ;;  %v188_v62 = vpop.f32.mrf.mxu0 }
 0x2c3   :  { %v1183_v24 = vpop.eup %1182 }
 0x2c4   :  { %1186 = vpow2.f32 %v807_v23  ;;  %v668_v33 = vmul.f32 %v1183_v24, %v1713_v40  ;;  %v641_v29 = vpop.xlane.xlu2 %640  ;;  %v1185_v26 = vpop.eup %1184 }
 0x2c5   :  { %1188 = vrcp.f32 %v641_v29  ;;  %v843_v13 = vmul.f32 %v1185_v26, %v1710_v47 }
 0x2c6   :  { %1093 = vmatmul.msk.f32.vlgmr.msra.gmra.mxu1 %vm587_vm2, %v668_v33  ;;  %1102 = vmatmul.msk.f32.gmra.mxu3 %vm587_vm2, %v842_v44 }
 0x2c7   :  { %v611_v27 = vpop.xlane.xlu1 %610 }
 0x2c8   :  { %v619_v54 = vsub.f32 %v1742_v22, %v611_v27 }
 0x2ca   :  { %v1853_v45 = vpop.eup %1186  ;;  %v634_v46 = vmul.f32 1.442695, %v619_v54  ;;  %v191_v33 = vpop.f32.mrf.mxu0 }
 0x2cb   :  { %v830_v40 = vsel %vm587_vm2, %v1853_v45, 0.0  ;;  %v1189_v14 = vpop.eup %1188 }
 0x2cc   :  { %1190 = vpow2.f32 %v634_v46  ;;  %831 = vadd.xlane.f32.xlu1 %v830_v40  ;;  %v820_v37 = vpop.xlane.xlu2 %819  ;;  %v669_v39 = vmul.f32 %v1189_v14, %v1727_v0 }
 0x2cd   :  { %1192 = vrcp.f32 %v820_v37 }
 0x2ce   :  { %1094 = vmatmul.msk.f32.gmra.mxu1 %vm587_vm2, %v669_v39  ;;  %1103 = vmatmul.msk.f32.gmra.mxu3 %vm587_vm2, %v843_v13 }
 0x2cf   :  { %v644_v22 = vpop.xlane.xlu1 %643 }
 0x2d0   :  { %1194 = vrcp.f32 %v644_v22 }
 0x2d2   :  { %v1865_v31 = vpop.eup %1190 }
 0x2d3   :  { %v657_v18 = vsel %vm587_vm2, %v1865_v31, 0.0  ;;  %v1193_v16 = vpop.eup %1192 }
 0x2d4   :  { %658 = vadd.xlane.f32.xlu2 %v657_v18  ;;  %v647_v0 = vpop.xlane.xlu0 %646  ;;  %v844_v47 = vmul.f32 %v1193_v16, %v1757_v35  ;;  %v650_v58 = vpop.xlane.xlu2 %649 }
 0x2d5   :  { %1196 = vrcp.f32 %v647_v0 }
 0x2d6   :  { %v1195_v15 = vpop.eup %1194  ;;  %1104 = vmatmul.msk.f32.gmra.mxu3 %vm587_vm2, %v844_v47  ;;  %v244_v47 = vmul.f32 0.2, %v188_v62  ;;  %v254_v62 = vmul.f32 0.2, %v1863_v36  ;;  %v255_v36 = vmul.f32 0.2, %v1875_v57 }
 0x2d7   :  { %v823_v52 = vpop.xlane.xlu1 %822  ;;  %v670_v12 = vmul.f32 %v1195_v15, %v1763_v17  ;;  %v256_v57 = vmul.f32 0.2, %v1554_v38  ;;  %v257_v38 = vmul.f32 0.2, %v1556_v41  ;;  %v258_v41 = vmul.f32 0.2, %v1558_v19 }
 0x2d8   :  { %1198 = vrcp.f32 %v823_v52  ;;  %v236_v52 = vmul.f32 0.2, %v1835_v4  ;;  %v237_v4 = vmul.f32 0.2, %v1837_v5  ;;  %v243_v19 = vmul.f32 0.2, %v1881_v20 }
 0x2d9   :  { %1095 = vmatmul.msk.f32.gmra.mxu1 %vm587_vm2, %v670_v12  ;;  %1200 = vrcp.f32 %v650_v58 }
 0x2da   :  { %v293_v17 = vpop.f32.mrf.mxu1 }
 0x2db   :  { %v1197_v61 = vpop.eup %1196  ;;  %v317_v9 = vmax.f32 %v293_v17, 0.0 }
 0x2dc   :  { %v826_v43 = vpop.xlane.xlu0 %825  ;;  %v671_v35 = vmul.f32 %v1197_v61, %v1786_v25  ;;  %v829_v3 = vpop.xlane.xlu2 %828 }
 0x2dd   :  { %1202 = vrcp.f32 %v826_v43  ;;  %1003 = vst.msk [vmem:[%s2023_s7 + $0x80] sm:$0xff] %vm62_vm0, %v317_v9 }
 0x2de   :  { %v1199_v59 = vpop.eup %1198  ;;  %1204 = vrcp.f32 %v829_v3  ;;  %v245_v3 = vmul.f32 0.2, %v191_v33 }
 0x2df   :  { %v845_v1 = vmul.f32 %v1199_v59, %v1790_v60  ;;  %v1201_v10 = vpop.eup %1200  ;;  %v653_v6 = vpop.xlane.xlu1 %652 }
 0x2e0   :  { %1206 = vrcp.f32 %v653_v6  ;;  %v672_v25 = vmul.f32 %v1201_v10, %v1784_v56 }
 0x2e1   :  { %1096 = vmatmul.msk.f32.gmra.mxu1 %vm587_vm2, %v671_v35  ;;  %1105 = vmatmul.msk.f32.gmra.mxu3 %vm587_vm2, %v845_v1 }
 0x2e2   :  { %v296_v53 = vpop.f32.mrf.mxu1 }
 0x2e3   :  { %v1203_v21 = vpop.eup %1202  ;;  %v318_v28 = vmax.f32 %v296_v53, 0.0 }
 0x2e4   :  { %v846_v60 = vmul.f32 %v1203_v21, %v1804_v11  ;;  %v1205_v30 = vpop.eup %1204  ;;  %v656_v32 = vpop.xlane.xlu0 %655 }
 0x2e5   :  { %1004 = vst.msk [vmem:[%s2023_s7 + $0x88] sm:$0xff] %vm62_vm0, %v318_v28  ;;  %1208 = vrcp.f32 %v656_v32  ;;  %v847_v11 = vmul.f32 %v1205_v30, %v1802_v2  ;;  %v194_v2 = vpop.f32.mrf.mxu0 }
 0x2e6   :  { %v1207_v34 = vpop.eup %1206  ;;  %v246_v32 = vmul.f32 0.2, %v194_v2 }
 0x2e7   :  { %v673_v56 = vmul.f32 %v1207_v34, %v1807_v63  ;;  %v238_v34 = vmul.f32 0.2, %v1839_v7  ;;  %v239_v7 = vmul.f32 0.2, %v1842_v55 }
 0x2e9   :  { %1097 = vmatmul.msk.f32.gmra.mxu1 %vm587_vm2, %v672_v25  ;;  %1106 = vmatmul.msk.f32.gmra.mxu3 %vm587_vm2, %v846_v60 }
 0x2ea   :  { %v299_v48 = vpop.f32.mrf.mxu1 }
 0x2eb   :  { %v319_v23 = vmax.f32 %v299_v48, 0.0  ;;  %v1209_v24 = vpop.eup %1208 }
 0x2ec   :  { %v674_v29 = vmul.f32 %v1209_v24, %v1818_v8 }
 0x2ed   :  { %1005 = vst.msk [vmem:[%s2023_s7 + $0x90] sm:$0xff] %vm62_vm0, %v319_v23  ;;  %v197_v46 = vpop.f32.mrf.mxu0 }
 0x2ee   :  { %v247_v23 = vmul.f32 0.2, %v197_v46 }
 0x2f1   :  { %1098 = vmatmul.msk.f32.gmra.mxu1 %vm587_vm2, %v673_v56  ;;  %1107 = vmatmul.msk.f32.gmra.mxu3 %vm587_vm2, %v847_v11 }
 0x2f2   :  { %v302_v63 = vpop.f32.mrf.mxu1 }
 0x2f3   :  { %v320_v44 = vmax.f32 %v302_v63, 0.0 }
 0x2f5   :  { %1006 = vst.msk [vmem:[%s2023_s7 + $0x98] sm:$0xff] %vm62_vm0, %v320_v44  ;;  %v200_v37 = vpop.f32.mrf.mxu0 }
 0x2f6   :  { %v248_v2 = vmul.f32 0.2, %v200_v37 }
 0x2f9   :  { %1099 = vmatmul.msk.f32.gmra.mxu1 %vm587_vm2, %v674_v29 }
 0x2fa   :  { %v305_v27 = vpop.f32.mrf.mxu1 }
 0x2fb   :  { %v321_v54 = vmax.f32 %v305_v27, 0.0  ;;  %v240_v27 = vmul.f32 0.2, %v1848_v42  ;;  %v241_v42 = vmul.f32 0.2, %v1859_v49 }
 0x2fc   :  { %v242_v49 = vmul.f32 0.2, %v1872_v50 }
 0x2fd   :  { %1007 = vst.msk [vmem:[%s2023_s7 + $0xa0] sm:$0xff] %vm62_vm0, %v321_v54  ;;  %v1925_v22 = vpop.f32.mrf.mxu0 }
 0x302   :  { %v308_v26 = vpop.f32.mrf.mxu1 }
 0x303   :  { %v322_v8 = vmax.f32 %v308_v26, 0.0 }
 0x305   :  { %1008 = vst.msk [vmem:[%s2023_s7 + $0xa8] sm:$0xff] %vm62_vm0, %v322_v8  ;;  %v1927_v18 = vpop.f32.mrf.mxu0 }
 0x30a   :  { %v311_v40 = vpop.f32.mrf.mxu1 }
 0x30b   :  { %v323_v14 = vmax.f32 %v311_v40, 0.0  ;;  %v249_v40 = vmul.f32 0.2, %v1925_v22  ;;  %v250_v22 = vmul.f32 0.2, %v1927_v18 }
 0x30d   :  { %1009 = vst.msk [vmem:[%s2023_s7 + $0xb0] sm:$0xff] %vm62_vm0, %v323_v14  ;;  %v1929_v16 = vpop.f32.mrf.mxu0 }
 0x30e   :  { %v251_v18 = vmul.f32 0.2, %v1929_v16 }
 0x312   :  { %v314_v39 = vpop.f32.mrf.mxu1 }
 0x313   :  { %v324_v13 = vmax.f32 %v314_v39, 0.0 }
 0x315   :  { %1010 = vst.msk [vmem:[%s2023_s7 + $0xb8] sm:$0xff] %vm62_vm0, %v324_v13  ;;  %v212_v0 = vpop.f32.mrf.mxu0 }
 0x316   :  { %v252_v12 = vmul.f32 0.2, %v212_v0 }
 0x31d   :  { %v215_v17 = vpop.f32.mrf.mxu0 }
 0x31e   :  { %v253_v6 = vmul.f32 0.2, %v215_v17 }
 0x33f   :  { %v832_v15 = vpop.xlane.xlu1 %831 }
 0x340   :  { %1210 = vrcp.f32 %v832_v15 }
 0x341   :  { %v963_v58 = vpop.f32.mrf.mxu3 }
 0x342   :  { %v964_v61 = vadd.f32 %v963_v58, %v244_v47 }
 0x343   :  { %v890_v43 = vpop.f32.mrf.mxu1 }
 0x344   :  { %v987_v59 = vadd.f32 %v964_v61, %v252_v12  ;;  %v891_v35 = vadd.f32 %v890_v43, %v236_v52  ;;  %v259_v61 = vmul.f32 0.2, %v1560_v51 }
 0x346   :  { %v1211_v1 = vpop.eup %1210  ;;  %995 = vst.msk [vmem:[%s2023_s7 + $0x40] sm:$0xff] %vm62_vm0, %v987_v59 }
 0x347   :  { %v659_v9 = vpop.xlane.xlu2 %658  ;;  %v848_v10 = vmul.f32 %v1211_v1, %v1853_v45  ;;  %914 = vst.msk [vmem:[%s2023_s7] sm:$0xff] %vm62_vm0, %v891_v35 }
 0x348   :  { %1212 = vrcp.f32 %v659_v9 }
 0x349   :  { %1108 = vmatmul.msk.f32.gmra.mxu3 %vm587_vm2, %v848_v10  ;;  %v966_v21 = vpop.f32.mrf.mxu3 }
 0x34a   :  { %v967_v25 = vadd.f32 %v966_v21, %v245_v3 }
 0x34b   :  { %v893_v60 = vpop.f32.mrf.mxu1 }
 0x34c   :  { %v988_v53 = vadd.f32 %v967_v25, %v253_v6  ;;  %v894_v28 = vadd.f32 %v893_v60, %v237_v4 }
 0x34e   :  { %v1213_v30 = vpop.eup %1212  ;;  %996 = vst.msk [vmem:[%s2023_s7 + $0x48] sm:$0xff] %vm62_vm0, %v988_v53 }
 0x34f   :  { %v675_v45 = vmul.f32 %v1213_v30, %v1865_v31  ;;  %915 = vst.msk [vmem:[%s2023_s7 + $0x8] sm:$0xff] %vm62_vm0, %v894_v28 }
 0x351   :  { %1100 = vmatmul.msk.f32.gmra.mxu1 %vm587_vm2, %v675_v45  ;;  %v969_v5 = vpop.f32.mrf.mxu3 }
 0x352   :  { %v970_v56 = vadd.f32 %v969_v5, %v246_v32 }
 0x354   :  { %v989_v11 = vadd.f32 %v970_v56, %v254_v62 }
 0x356   :  { %v896_v48 = vpop.f32.mrf.mxu1  ;;  %997 = vst.msk [vmem:[%s2023_s7 + $0x50] sm:$0xff] %vm62_vm0, %v989_v11 }
 0x357   :  { %v897_v31 = vadd.f32 %v896_v48, %v238_v34 }
 0x359   :  { %916 = vst.msk [vmem:[%s2023_s7 + $0x10] sm:$0xff] %vm62_vm0, %v897_v31  ;;  %v972_v24 = vpop.f32.mrf.mxu3 }
 0x35a   :  { %v973_v33 = vadd.f32 %v972_v24, %v247_v23 }
 0x35c   :  { %v990_v29 = vadd.f32 %v973_v33, %v255_v36 }
 0x35e   :  { %v899_v63 = vpop.f32.mrf.mxu1  ;;  %998 = vst.msk [vmem:[%s2023_s7 + $0x58] sm:$0xff] %vm62_vm0, %v990_v29 }
 0x35f   :  { %v900_v44 = vadd.f32 %v899_v63, %v239_v7 }
 0x361   :  { %917 = vst.msk [vmem:[%s2023_s7 + $0x18] sm:$0xff] %vm62_vm0, %v900_v44 }
 0x364   :  { %v975_v55 = vpop.f32.mrf.mxu3 }
 0x365   :  { %v976_v54 = vadd.f32 %v975_v55, %v248_v2 }
 0x366   :  { %v902_v26 = vpop.f32.mrf.mxu1 }
 0x367   :  { %v991_v46 = vadd.f32 %v976_v54, %v256_v57  ;;  %v903_v8 = vadd.f32 %v902_v26, %v240_v27 }
 0x369   :  { %999 = vst.msk [vmem:[%s2023_s7 + $0x60] sm:$0xff] %vm62_vm0, %v991_v46 }
 0x36a   :  { %918 = vst.msk [vmem:[%s2023_s7 + $0x20] sm:$0xff] %vm62_vm0, %v903_v8 }
 0x36c   :  { %v978_v14 = vpop.f32.mrf.mxu3 }
 0x36d   :  { %v979_v37 = vadd.f32 %v978_v14, %v249_v40 }
 0x36e   :  { %v905_v39 = vpop.f32.mrf.mxu1 }
 0x36f   :  { %v992_v13 = vadd.f32 %v979_v37, %v257_v38  ;;  %v906_v0 = vadd.f32 %v905_v39, %v241_v42 }
 0x371   :  { %1000 = vst.msk [vmem:[%s2023_s7 + $0x68] sm:$0xff] %vm62_vm0, %v992_v13 }
 0x372   :  { %919 = vst.msk [vmem:[%s2023_s7 + $0x28] sm:$0xff] %vm62_vm0, %v906_v0 }
 0x374   :  { %v981_v47 = vpop.f32.mrf.mxu3 }
 0x375   :  { %v982_v15 = vadd.f32 %v981_v47, %v250_v22 }
 0x376   :  { %v908_v52 = vpop.f32.mrf.mxu1 }
 0x377   :  { %v993_v12 = vadd.f32 %v982_v15, %v258_v41  ;;  %v909_v58 = vadd.f32 %v908_v52, %v242_v49 }
 0x379   :  { %1001 = vst.msk [vmem:[%s2023_s7 + $0x70] sm:$0xff] %vm62_vm0, %v993_v12 }
 0x37a   :  { %920 = vst.msk [vmem:[%s2023_s7 + $0x30] sm:$0xff] %vm62_vm0, %v909_v58 }
 0x3cc   :  { %v984_v50 = vpop.f32.mrf.mxu3 }
 0x3cd   :  { %v985_v43 = vadd.f32 %v984_v50, %v251_v18 }
 0x3ce   :  { %v911_v59 = vpop.f32.mrf.mxu1 }
 0x3cf   :  { %v994_v35 = vadd.f32 %v985_v43, %v259_v61  ;;  %v912_v1 = vadd.f32 %v911_v59, %v243_v19 }
 0x3d1   :  { %1002 = vst.msk [vmem:[%s2023_s7 + $0x78] sm:$0xff] %vm62_vm0, %v994_v35 }
 0x3d2   :  { %921 = vst.msk [vmem:[%s2023_s7 + $0x38] sm:$0xff] %vm62_vm0, %v912_v1 }

// kernel: forward.12
= control target key start
LH: loop header
LB: loop body
LE: loop exit
PB: predicated region body
PF: predicated region fallthrough
CT: control target
= control target key end

     0   :  { %vm44_vm0 = vcmask 261120   ;;  %s755_s1 = inlined_call_operand.vmem [shape: f32[32,32], index: 1, kind: input, shape index: {}]   ;;  %s756_s2 = inlined_call_operand.vmem [shape: f32[1,32], index: 2, kind: input, shape index: {}]   ;;  %s757_s0 = inlined_call_operand.vmem [shape: f32[128,32], index: 0, kind: input, shape index: {}]   ;;  %s758_s4 = inlined_call_operand.vmem [shape: f32[1,32], index: 4, kind: input, shape index: {}]   ;;  %s759_s3 = inlined_call_operand.vmem [shape: f32[32,32], index: 3, kind: input, shape index: {}]   ;;  %s760_s5 = inlined_call_operand.vmem [shape: f32[128,32], index: 5, kind: output, shape index: {}]  }
   0x1   :  { %v39_v0 = vld [vmem:[%s755_s1 + $0x18] sm:$0xff]  ;;  %v38_v1 = vld [vmem:[%s755_s1 + $0x10] sm:$0xff]  ;;  %v37_v2 = vld [vmem:[%s755_s1 + $0x8] sm:$0xff] }
   0x2   :  { %419 = vmatpush.xpose.msk.msra.mxu0 %vm44_vm0, %v39_v0  ;;  %475 = vmatpush.xpose.msk.msra.mxu2 %vm44_vm0, %v39_v0  ;;  %v36_v3 = vld [vmem:[%s755_s1] sm:$0xff]  ;;  %v21_v6 = vld [vmem:[%s757_s0 + $0x8] sm:$0xff]  ;;  %v22_v8 = vld [vmem:[%s757_s0 + $0x10] sm:$0xff] }
   0x3   :  { %v20_v4 = vld [vmem:[%s757_s0] sm:$0xff]  ;;  %v29_v7 = vld [vmem:[%s757_s0 + $0x48] sm:$0xff]  ;;  %v30_v9 = vld [vmem:[%s757_s0 + $0x50] sm:$0xff] }
   0x4   :  { %v28_v5 = vld [vmem:[%s757_s0 + $0x40] sm:$0xff]  ;;  %v23_v10 = vld [vmem:[%s757_s0 + $0x18] sm:$0xff]  ;;  %v25_v14 = vld [vmem:[%s757_s0 + $0x28] sm:$0xff] }
   0x5   :  { %v31_v11 = vld [vmem:[%s757_s0 + $0x58] sm:$0xff]  ;;  %v24_v12 = vld [vmem:[%s757_s0 + $0x20] sm:$0xff]  ;;  %v33_v15 = vld [vmem:[%s757_s0 + $0x68] sm:$0xff] }
   0x6   :  { %420 = vmatpush.xpose.msk.msra.mxu0 %vm44_vm0, %v38_v1  ;;  %476 = vmatpush.xpose.msk.msra.mxu2 %vm44_vm0, %v38_v1  ;;  %v32_v13 = vld [vmem:[%s757_s0 + $0x60] sm:$0xff]  ;;  %v26_v16 = vld [vmem:[%s757_s0 + $0x30] sm:$0xff]  ;;  %v27_v18 = vld [vmem:[%s757_s0 + $0x38] sm:$0xff] }
   0x7   :  { %v34_v17 = vld [vmem:[%s757_s0 + $0x70] sm:$0xff]  ;;  %v35_v19 = vld [vmem:[%s757_s0 + $0x78] sm:$0xff]  ;;  %v267_v22 = vld [vmem:[%s759_s3 + $0x8] sm:$0xff] }
   0x8   :  { %v269_v20 = vld [vmem:[%s759_s3 + $0x18] sm:$0xff]  ;;  %v268_v21 = vld [vmem:[%s759_s3 + $0x10] sm:$0xff]  ;;  %v266_v23 = vld [vmem:[%s759_s3] sm:$0xff] }
   0x9   :  { %455 = vmatpush.xpose.msk.msra.mxu1 %vm44_vm0, %v269_v20  ;;  %479 = vmatpush.xpose.msk.msra.mxu3 %vm44_vm0, %v269_v20  ;;  %v654_v24 = vld [vmem:[%s756_s2] ss:$0 sm:$0xff] }
   0xa   :  { %421 = vmatpush.xpose.msk.msra.mxu0 %vm44_vm0, %v37_v2  ;;  %477 = vmatpush.xpose.msk.msra.mxu2 %vm44_vm0, %v37_v2 }
   0xd   :  { %456 = vmatpush.xpose.msk.msra.mxu1 %vm44_vm0, %v268_v21  ;;  %480 = vmatpush.xpose.msk.msra.mxu3 %vm44_vm0, %v268_v21 }
   0xe   :  { %422 = vmatpush.xpose.msk.msra.mxu0 %vm44_vm0, %v36_v3  ;;  %478 = vmatpush.xpose.msk.msra.mxu2 %vm44_vm0, %v36_v3 }
  0x11   :  { %423 = vmatmul.msk.f32.vlgmr.msra.gmra.mxu0 %vm44_vm0, %v20_v4  ;;  %431 = vmatmul.msk.f32.vlgmr.msra.gmra.mxu2 %vm44_vm0, %v28_v5 }
  0x12   :  { %457 = vmatpush.xpose.msk.msra.mxu1 %vm44_vm0, %v267_v22  ;;  %481 = vmatpush.xpose.msk.msra.mxu3 %vm44_vm0, %v267_v22 }
  0x16   :  { %458 = vmatpush.xpose.msk.msra.mxu1 %vm44_vm0, %v266_v23  ;;  %482 = vmatpush.xpose.msk.msra.mxu3 %vm44_vm0, %v266_v23 }
  0x19   :  { %424 = vmatmul.msk.f32.gmra.mxu0 %vm44_vm0, %v21_v6  ;;  %432 = vmatmul.msk.f32.gmra.mxu2 %vm44_vm0, %v29_v7 }
  0x21   :  { %425 = vmatmul.msk.f32.gmra.mxu0 %vm44_vm0, %v22_v8  ;;  %433 = vmatmul.msk.f32.gmra.mxu2 %vm44_vm0, %v30_v9 }
  0x29   :  { %426 = vmatmul.msk.f32.gmra.mxu0 %vm44_vm0, %v23_v10  ;;  %434 = vmatmul.msk.f32.gmra.mxu2 %vm44_vm0, %v31_v11 }
  0x31   :  { %427 = vmatmul.msk.f32.gmra.mxu0 %vm44_vm0, %v24_v12  ;;  %435 = vmatmul.msk.f32.gmra.mxu2 %vm44_vm0, %v32_v13 }
  0x39   :  { %428 = vmatmul.msk.f32.gmra.mxu0 %vm44_vm0, %v25_v14  ;;  %436 = vmatmul.msk.f32.gmra.mxu2 %vm44_vm0, %v33_v15 }
  0x41   :  { %429 = vmatmul.msk.f32.gmra.mxu0 %vm44_vm0, %v26_v16  ;;  %437 = vmatmul.msk.f32.gmra.mxu2 %vm44_vm0, %v34_v17 }
  0x49   :  { %430 = vmatmul.msk.f32.gmra.mxu0 %vm44_vm0, %v27_v18  ;;  %438 = vmatmul.msk.f32.gmra.mxu2 %vm44_vm0, %v35_v19 }
  0x8e   :  { %v122_v25 = vpop.f32.mrf.mxu0 }
  0x8f   :  { %v123_v26 = vadd.f32 %v654_v24, %v122_v25 }
  0x91   :  { %v186_v27 = vmin.f32 %v123_v26, 0.0  ;;  %vm170_vm1 = vcmp.gt.f32.partialorder %v123_v26, 0.0 }
  0x93   :  { %v202_v28 = vmul.f32 1.442695, %v186_v27 }
  0x94   :  { %v146_v29 = vpop.f32.mrf.mxu2 }
  0x95   :  { %485 = vpow2.f32 %v202_v28  ;;  %v147_v30 = vadd.f32 %v654_v24, %v146_v29 }
  0x96   :  { %v125_v31 = vpop.f32.mrf.mxu0 }
  0x97   :  { %v194_v32 = vmin.f32 %v147_v30, 0.0  ;;  %v126_v33 = vadd.f32 %v654_v24, %v125_v31  ;;  %vm178_vm2 = vcmp.gt.f32.partialorder %v147_v30, 0.0 }
  0x99   :  { %v218_v34 = vmul.f32 1.442695, %v194_v32  ;;  %v187_v35 = vmin.f32 %v126_v33, 0.0  ;;  %vm171_vm3 = vcmp.gt.f32.partialorder %v126_v33, 0.0 }
  0x9b   :  { %v486_v36 = vpop.eup %485  ;;  %487 = vpow2.f32 %v218_v34  ;;  %v204_v37 = vmul.f32 1.442695, %v187_v35 }
  0x9c   :  { %v149_v38 = vpop.f32.mrf.mxu2  ;;  %v439_v39 = vadd.f32 -1.0, %v486_v36 }
  0x9d   :  { %489 = vpow2.f32 %v204_v37  ;;  %v150_v40 = vadd.f32 %v654_v24, %v149_v38 }
  0x9e   :  { %v128_v41 = vpop.f32.mrf.mxu0  ;;  %v250_v42 = vsel %vm170_vm1, %v123_v26, %v439_v39 }
  0x9f   :  { %v195_v43 = vmin.f32 %v150_v40, 0.0  ;;  %v129_v44 = vadd.f32 %v654_v24, %v128_v41  ;;  %459 = vmatmul.msk.f32.vlgmr.msra.gmra.mxu1 %vm44_vm0, %v250_v42  ;;  %vm179_vm4 = vcmp.gt.f32.partialorder %v150_v40, 0.0 }
  0xa1   :  { %v488_v45 = vpop.eup %487  ;;  %v220_v46 = vmul.f32 1.442695, %v195_v43  ;;  %v188_v47 = vmin.f32 %v129_v44, 0.0  ;;  %vm172_vm5 = vcmp.gt.f32.partialorder %v129_v44, 0.0 }
  0xa2   :  { %v447_v48 = vadd.f32 -1.0, %v488_v45 }
  0xa3   :  { %v490_v49 = vpop.eup %489  ;;  %491 = vpow2.f32 %v220_v46  ;;  %v206_v50 = vmul.f32 1.442695, %v188_v47 }
  0xa4   :  { %v152_v51 = vpop.f32.mrf.mxu2  ;;  %v258_v52 = vsel %vm178_vm2, %v147_v30, %v447_v48  ;;  %v440_v53 = vadd.f32 -1.0, %v490_v49 }
  0xa5   :  { %493 = vpow2.f32 %v206_v50  ;;  %v153_v54 = vadd.f32 %v654_v24, %v152_v51  ;;  %467 = vmatmul.msk.f32.vlgmr.msra.gmra.mxu3 %vm44_vm0, %v258_v52 }
  0xa6   :  { %v131_v55 = vpop.f32.mrf.mxu0  ;;  %v251_v56 = vsel %vm171_vm3, %v126_v33, %v440_v53 }
  0xa7   :  { %v196_v57 = vmin.f32 %v153_v54, 0.0  ;;  %v132_v58 = vadd.f32 %v654_v24, %v131_v55  ;;  %460 = vmatmul.msk.f32.gmra.mxu1 %vm44_vm0, %v251_v56  ;;  %vm180_vm6 = vcmp.gt.f32.partialorder %v153_v54, 0.0 }
  0xa9   :  { %v492_v59 = vpop.eup %491  ;;  %v222_v60 = vmul.f32 1.442695, %v196_v57  ;;  %v189_v61 = vmin.f32 %v132_v58, 0.0  ;;  %vm173_vm7 = vcmp.gt.f32.partialorder %v132_v58, 0.0 }
  0xaa   :  { %v448_v62 = vadd.f32 -1.0, %v492_v59 }
  0xab   :  { %v494_v63 = vpop.eup %493  ;;  %495 = vpow2.f32 %v222_v60  ;;  %v208_v0 = vmul.f32 1.442695, %v189_v61 }
  0xac   :  { %v155_v1 = vpop.f32.mrf.mxu2  ;;  %v259_v2 = vsel %vm179_vm4, %v150_v40, %v448_v62  ;;  %v441_v3 = vadd.f32 -1.0, %v494_v63 }
  0xad   :  { %497 = vpow2.f32 %v208_v0  ;;  %v156_v4 = vadd.f32 %v654_v24, %v155_v1  ;;  %468 = vmatmul.msk.f32.gmra.mxu3 %vm44_vm0, %v259_v2 }
  0xae   :  { %v134_v5 = vpop.f32.mrf.mxu0  ;;  %v252_v6 = vsel %vm172_vm5, %v129_v44, %v441_v3 }
  0xaf   :  { %v197_v7 = vmin.f32 %v156_v4, 0.0  ;;  %v135_v8 = vadd.f32 %v654_v24, %v134_v5  ;;  %461 = vmatmul.msk.f32.gmra.mxu1 %vm44_vm0, %v252_v6  ;;  %vm181_vm8 = vcmp.gt.f32.partialorder %v156_v4, 0.0 }
  0xb1   :  { %v496_v9 = vpop.eup %495  ;;  %v224_v10 = vmul.f32 1.442695, %v197_v7  ;;  %v190_v11 = vmin.f32 %v135_v8, 0.0  ;;  %vm174_vm9 = vcmp.gt.f32.partialorder %v135_v8, 0.0 }
  0xb2   :  { %v449_v12 = vadd.f32 -1.0, %v496_v9  ;;  %v484_v9 = vld [vmem:[%s758_s4] ss:$0 sm:$0xff] }
  0xb3   :  { %v498_v13 = vpop.eup %497  ;;  %499 = vpow2.f32 %v224_v10  ;;  %v210_v14 = vmul.f32 1.442695, %v190_v11 }
  0xb4   :  { %v158_v15 = vpop.f32.mrf.mxu2  ;;  %v260_v16 = vsel %vm180_vm6, %v153_v54, %v449_v12  ;;  %v442_v17 = vadd.f32 -1.0, %v498_v13 }
  0xb5   :  { %501 = vpow2.f32 %v210_v14  ;;  %v159_v18 = vadd.f32 %v654_v24, %v158_v15  ;;  %469 = vmatmul.msk.f32.gmra.mxu3 %vm44_vm0, %v260_v16 }
  0xb6   :  { %v137_v19 = vpop.f32.mrf.mxu0  ;;  %v253_v20 = vsel %vm173_vm7, %v132_v58, %v442_v17 }
  0xb7   :  { %v198_v21 = vmin.f32 %v159_v18, 0.0  ;;  %v138_v22 = vadd.f32 %v654_v24, %v137_v19  ;;  %462 = vmatmul.msk.f32.gmra.mxu1 %vm44_vm0, %v253_v20  ;;  %vm182_vm10 = vcmp.gt.f32.partialorder %v159_v18, 0.0 }
  0xb9   :  { %v500_v23 = vpop.eup %499  ;;  %v226_v25 = vmul.f32 1.442695, %v198_v21  ;;  %v191_v26 = vmin.f32 %v138_v22, 0.0  ;;  %vm175_vm11 = vcmp.gt.f32.partialorder %v138_v22, 0.0 }
  0xba   :  { %v450_v27 = vadd.f32 -1.0, %v500_v23 }
  0xbb   :  { %v502_v28 = vpop.eup %501  ;;  %503 = vpow2.f32 %v226_v25  ;;  %v212_v29 = vmul.f32 1.442695, %v191_v26 }
  0xbc   :  { %v161_v30 = vpop.f32.mrf.mxu2  ;;  %v261_v31 = vsel %vm181_vm8, %v156_v4, %v450_v27  ;;  %v443_v32 = vadd.f32 -1.0, %v502_v28 }
  0xbd   :  { %505 = vpow2.f32 %v212_v29  ;;  %v162_v33 = vadd.f32 %v654_v24, %v161_v30  ;;  %470 = vmatmul.msk.f32.gmra.mxu3 %vm44_vm0, %v261_v31 }
  0xbe   :  { %v140_v34 = vpop.f32.mrf.mxu0  ;;  %v254_v35 = vsel %vm174_vm9, %v135_v8, %v443_v32 }
  0xbf   :  { %v199_v36 = vmin.f32 %v162_v33, 0.0  ;;  %v141_v37 = vadd.f32 %v654_v24, %v140_v34  ;;  %463 = vmatmul.msk.f32.gmra.mxu1 %vm44_vm0, %v254_v35  ;;  %vm183_vm12 = vcmp.gt.f32.partialorder %v162_v33, 0.0 }
  0xc1   :  { %v504_v38 = vpop.eup %503  ;;  %v228_v39 = vmul.f32 1.442695, %v199_v36  ;;  %v192_v40 = vmin.f32 %v141_v37, 0.0  ;;  %vm176_vm13 = vcmp.gt.f32.partialorder %v141_v37, 0.0 }
  0xc2   :  { %v451_v41 = vadd.f32 -1.0, %v504_v38 }
  0xc3   :  { %v506_v42 = vpop.eup %505  ;;  %507 = vpow2.f32 %v228_v39  ;;  %v214_v43 = vmul.f32 1.442695, %v192_v40 }
  0xc4   :  { %v164_v44 = vpop.f32.mrf.mxu2  ;;  %v262_v45 = vsel %vm182_vm10, %v159_v18, %v451_v41  ;;  %v444_v46 = vadd.f32 -1.0, %v506_v42 }
  0xc5   :  { %509 = vpow2.f32 %v214_v43  ;;  %v165_v47 = vadd.f32 %v654_v24, %v164_v44  ;;  %471 = vmatmul.msk.f32.gmra.mxu3 %vm44_vm0, %v262_v45 }
  0xc6   :  { %v143_v48 = vpop.f32.mrf.mxu0  ;;  %v255_v49 = vsel %vm175_vm11, %v138_v22, %v444_v46 }
  0xc7   :  { %v200_v50 = vmin.f32 %v165_v47, 0.0  ;;  %v144_v51 = vadd.f32 %v654_v24, %v143_v48  ;;  %464 = vmatmul.msk.f32.gmra.mxu1 %vm44_vm0, %v255_v49  ;;  %vm184_vm14 = vcmp.gt.f32.partialorder %v165_v47, 0.0 }
  0xc9   :  { %v508_v52 = vpop.eup %507  ;;  %v230_v53 = vmul.f32 1.442695, %v200_v50  ;;  %v193_v54 = vmin.f32 %v144_v51, 0.0  ;;  %vm177_vm15 = vcmp.gt.f32.partialorder %v144_v51, 0.0 }
  0xca   :  { %v452_v55 = vadd.f32 -1.0, %v508_v52 }
  0xcb   :  { %v510_v56 = vpop.eup %509  ;;  %511 = vpow2.f32 %v230_v53  ;;  %v216_v57 = vmul.f32 1.442695, %v193_v54 }
  0xcc   :  { %v167_v58 = vpop.f32.mrf.mxu2  ;;  %v263_v59 = vsel %vm183_vm12, %v162_v33, %v452_v55  ;;  %v445_v60 = vadd.f32 -1.0, %v510_v56 }
  0xcd   :  { %513 = vpow2.f32 %v216_v57  ;;  %v168_v61 = vadd.f32 %v654_v24, %v167_v58  ;;  %472 = vmatmul.msk.f32.gmra.mxu3 %vm44_vm0, %v263_v59 }
  0xce   :  { %v256_v62 = vsel %vm176_vm13, %v141_v37, %v445_v60 }
  0xcf   :  { %v201_v63 = vmin.f32 %v168_v61, 0.0  ;;  %465 = vmatmul.msk.f32.gmra.mxu1 %vm44_vm0, %v256_v62  ;;  %vm185_vm1 = vcmp.gt.f32.partialorder %v168_v61, 0.0 }
  0xd1   :  { %v512_v0 = vpop.eup %511  ;;  %v232_v1 = vmul.f32 1.442695, %v201_v63 }
  0xd2   :  { %v453_v2 = vadd.f32 -1.0, %v512_v0 }
  0xd3   :  { %v514_v3 = vpop.eup %513  ;;  %515 = vpow2.f32 %v232_v1 }
  0xd4   :  { %v264_v4 = vsel %vm184_vm14, %v165_v47, %v453_v2  ;;  %v446_v5 = vadd.f32 -1.0, %v514_v3 }
  0xd5   :  { %473 = vmatmul.msk.f32.gmra.mxu3 %vm44_vm0, %v264_v4 }
  0xd6   :  { %v257_v6 = vsel %vm177_vm15, %v144_v51, %v446_v5 }
  0xd7   :  { %466 = vmatmul.msk.f32.gmra.mxu1 %vm44_vm0, %v257_v6 }
  0xd9   :  { %v516_v24 = vpop.eup %515 }
  0xda   :  { %v454_v7 = vadd.f32 -1.0, %v516_v24 }
  0xdc   :  { %v265_v8 = vsel %vm185_vm1, %v168_v61, %v454_v7 }
  0xdd   :  { %474 = vmatmul.msk.f32.gmra.mxu3 %vm44_vm0, %v265_v8 }
 0x11c   :  { %v351_v10 = vpop.f32.mrf.mxu1 }
 0x11d   :  { %v352_v11 = vadd.f32 %v484_v9, %v351_v10 }
 0x11f   :  { %399 = vst.msk [vmem:[%s760_s5] sm:$0xff] %vm44_vm0, %v352_v11 }
 0x124   :  { %v354_v12 = vpop.f32.mrf.mxu1 }
 0x125   :  { %v355_v13 = vadd.f32 %v484_v9, %v354_v12 }
 0x127   :  { %400 = vst.msk [vmem:[%s760_s5 + $0x8] sm:$0xff] %vm44_vm0, %v355_v13 }
 0x128   :  { %v375_v14 = vpop.f32.mrf.mxu3 }
 0x129   :  { %v376_v15 = vadd.f32 %v484_v9, %v375_v14 }
 0x12b   :  { %407 = vst.msk [vmem:[%s760_s5 + $0x40] sm:$0xff] %vm44_vm0, %v376_v15 }
 0x12c   :  { %v357_v16 = vpop.f32.mrf.mxu1 }
 0x12d   :  { %v358_v17 = vadd.f32 %v484_v9, %v357_v16 }
 0x12f   :  { %401 = vst.msk [vmem:[%s760_s5 + $0x10] sm:$0xff] %vm44_vm0, %v358_v17 }
 0x130   :  { %v378_v18 = vpop.f32.mrf.mxu3 }
 0x131   :  { %v379_v19 = vadd.f32 %v484_v9, %v378_v18 }
 0x133   :  { %408 = vst.msk [vmem:[%s760_s5 + $0x48] sm:$0xff] %vm44_vm0, %v379_v19 }
 0x134   :  { %v360_v20 = vpop.f32.mrf.mxu1 }
 0x135   :  { %v361_v21 = vadd.f32 %v484_v9, %v360_v20 }
 0x137   :  { %402 = vst.msk [vmem:[%s760_s5 + $0x18] sm:$0xff] %vm44_vm0, %v361_v21 }
 0x138   :  { %v381_v22 = vpop.f32.mrf.mxu3 }
 0x139   :  { %v382_v23 = vadd.f32 %v484_v9, %v381_v22 }
 0x13b   :  { %409 = vst.msk [vmem:[%s760_s5 + $0x50] sm:$0xff] %vm44_vm0, %v382_v23 }
 0x13c   :  { %v363_v25 = vpop.f32.mrf.mxu1 }
 0x13d   :  { %v364_v26 = vadd.f32 %v484_v9, %v363_v25 }
 0x13f   :  { %403 = vst.msk [vmem:[%s760_s5 + $0x20] sm:$0xff] %vm44_vm0, %v364_v26 }
 0x140   :  { %v384_v27 = vpop.f32.mrf.mxu3 }
 0x141   :  { %v385_v28 = vadd.f32 %v484_v9, %v384_v27 }
 0x143   :  { %410 = vst.msk [vmem:[%s760_s5 + $0x58] sm:$0xff] %vm44_vm0, %v385_v28 }
 0x144   :  { %v366_v29 = vpop.f32.mrf.mxu1 }
 0x145   :  { %v367_v30 = vadd.f32 %v484_v9, %v366_v29 }
 0x147   :  { %404 = vst.msk [vmem:[%s760_s5 + $0x28] sm:$0xff] %vm44_vm0, %v367_v30 }
 0x148   :  { %v387_v31 = vpop.f32.mrf.mxu3 }
 0x149   :  { %v388_v32 = vadd.f32 %v484_v9, %v387_v31 }
 0x14b   :  { %411 = vst.msk [vmem:[%s760_s5 + $0x60] sm:$0xff] %vm44_vm0, %v388_v32 }
 0x14c   :  { %v369_v33 = vpop.f32.mrf.mxu1 }
 0x14d   :  { %v370_v34 = vadd.f32 %v484_v9, %v369_v33 }
 0x14f   :  { %405 = vst.msk [vmem:[%s760_s5 + $0x30] sm:$0xff] %vm44_vm0, %v370_v34 }
 0x150   :  { %v390_v35 = vpop.f32.mrf.mxu3 }
 0x151   :  { %v391_v36 = vadd.f32 %v484_v9, %v390_v35 }
 0x153   :  { %412 = vst.msk [vmem:[%s760_s5 + $0x68] sm:$0xff] %vm44_vm0, %v391_v36 }
 0x154   :  { %v372_v37 = vpop.f32.mrf.mxu1 }
 0x155   :  { %v373_v38 = vadd.f32 %v484_v9, %v372_v37 }
 0x157   :  { %406 = vst.msk [vmem:[%s760_s5 + $0x38] sm:$0xff] %vm44_vm0, %v373_v38 }
 0x158   :  { %v393_v39 = vpop.f32.mrf.mxu3 }
 0x159   :  { %v394_v40 = vadd.f32 %v484_v9, %v393_v39 }
 0x15b   :  { %413 = vst.msk [vmem:[%s760_s5 + $0x70] sm:$0xff] %vm44_vm0, %v394_v40 }
 0x160   :  { %v396_v41 = vpop.f32.mrf.mxu3 }
 0x161   :  { %v397_v42 = vadd.f32 %v484_v9, %v396_v41 }
 0x163   :  { %414 = vst.msk [vmem:[%s760_s5 + $0x78] sm:$0xff] %vm44_vm0, %v397_v42 }

// kernel: forward.11
= control target key start
LH: loop header
LB: loop body
LE: loop exit
PB: predicated region body
PF: predicated region fallthrough
CT: control target
= control target key end

     0   :  { %vm52_vm0 = vcmask 261120   ;;  %s1061_s1 = inlined_call_operand.vmem [shape: f32[32,32], index: 1, kind: input, shape index: {}]   ;;  %s1062_s2 = inlined_call_operand.vmem [shape: f32[1,32], index: 2, kind: input, shape index: {}]   ;;  %s1063_s0 = inlined_call_operand.vmem [shape: f32[192,32], index: 0, kind: input, shape index: {}]   ;;  %s1064_s3 = inlined_call_operand.vmem [shape: f32[32,32], index: 3, kind: input, shape index: {}]   ;;  %s1065_s4 = inlined_call_operand.vmem [shape: f32[1,32], index: 4, kind: input, shape index: {}]   ;;  %s1066_s5 = inlined_call_operand.vmem [shape: f32[192,32], index: 5, kind: output, shape index: {}]  }
   0x1   :  { %v47_v0 = vld [vmem:[%s1061_s1 + $0x18] sm:$0xff]  ;;  %v46_v1 = vld [vmem:[%s1061_s1 + $0x10] sm:$0xff]  ;;  %v45_v2 = vld [vmem:[%s1061_s1 + $0x8] sm:$0xff] }
   0x2   :  { %579 = vmatpush.xpose.msk.msra.mxu0 %vm52_vm0, %v47_v0  ;;  %659 = vmatpush.xpose.msk.msra.mxu2 %vm52_vm0, %v47_v0  ;;  %v44_v3 = vld [vmem:[%s1061_s1] sm:$0xff]  ;;  %v21_v6 = vld [vmem:[%s1063_s0 + $0x8] sm:$0xff]  ;;  %v22_v8 = vld [vmem:[%s1063_s0 + $0x10] sm:$0xff] }
   0x3   :  { %v20_v4 = vld [vmem:[%s1063_s0] sm:$0xff]  ;;  %v33_v7 = vld [vmem:[%s1063_s0 + $0x68] sm:$0xff]  ;;  %v34_v9 = vld [vmem:[%s1063_s0 + $0x70] sm:$0xff] }
   0x4   :  { %v32_v5 = vld [vmem:[%s1063_s0 + $0x60] sm:$0xff]  ;;  %v23_v10 = vld [vmem:[%s1063_s0 + $0x18] sm:$0xff]  ;;  %v25_v14 = vld [vmem:[%s1063_s0 + $0x28] sm:$0xff] }
   0x5   :  { %v35_v11 = vld [vmem:[%s1063_s0 + $0x78] sm:$0xff]  ;;  %v24_v12 = vld [vmem:[%s1063_s0 + $0x20] sm:$0xff]  ;;  %v37_v15 = vld [vmem:[%s1063_s0 + $0x88] sm:$0xff] }
   0x6   :  { %580 = vmatpush.xpose.msk.msra.mxu0 %vm52_vm0, %v46_v1  ;;  %660 = vmatpush.xpose.msk.msra.mxu2 %vm52_vm0, %v46_v1  ;;  %v36_v13 = vld [vmem:[%s1063_s0 + $0x80] sm:$0xff]  ;;  %v26_v16 = vld [vmem:[%s1063_s0 + $0x30] sm:$0xff]  ;;  %v27_v18 = vld [vmem:[%s1063_s0 + $0x38] sm:$0xff] }
   0x7   :  { %v38_v17 = vld [vmem:[%s1063_s0 + $0x90] sm:$0xff]  ;;  %v39_v19 = vld [vmem:[%s1063_s0 + $0x98] sm:$0xff]  ;;  %v28_v20 = vld [vmem:[%s1063_s0 + $0x40] sm:$0xff] }
   0x8   :  { %v40_v21 = vld [vmem:[%s1063_s0 + $0xa0] sm:$0xff]  ;;  %v29_v22 = vld [vmem:[%s1063_s0 + $0x48] sm:$0xff]  ;;  %v30_v24 = vld [vmem:[%s1063_s0 + $0x50] sm:$0xff] }
   0x9   :  { %v41_v23 = vld [vmem:[%s1063_s0 + $0xa8] sm:$0xff]  ;;  %v42_v25 = vld [vmem:[%s1063_s0 + $0xb0] sm:$0xff]  ;;  %v31_v26 = vld [vmem:[%s1063_s0 + $0x58] sm:$0xff] }
   0xa   :  { %581 = vmatpush.xpose.msk.msra.mxu0 %vm52_vm0, %v45_v2  ;;  %661 = vmatpush.xpose.msk.msra.mxu2 %vm52_vm0, %v45_v2  ;;  %v43_v27 = vld [vmem:[%s1063_s0 + $0xb8] sm:$0xff]  ;;  %v372_v29 = vld [vmem:[%s1064_s3 + $0x10] sm:$0xff]  ;;  %v371_v30 = vld [vmem:[%s1064_s3 + $0x8] sm:$0xff] }
   0xb   :  { %v373_v28 = vld [vmem:[%s1064_s3 + $0x18] sm:$0xff]  ;;  %v370_v31 = vld [vmem:[%s1064_s3] sm:$0xff] }
   0xc   :  { %631 = vmatpush.xpose.msk.msra.mxu1 %vm52_vm0, %v373_v28  ;;  %663 = vmatpush.xpose.msk.msra.mxu3 %vm52_vm0, %v373_v28  ;;  %v886_v32 = vld [vmem:[%s1062_s2] ss:$0 sm:$0xff] }
   0xe   :  { %582 = vmatpush.xpose.msk.msra.mxu0 %vm52_vm0, %v44_v3  ;;  %662 = vmatpush.xpose.msk.msra.mxu2 %vm52_vm0, %v44_v3 }
  0x10   :  { %632 = vmatpush.xpose.msk.msra.mxu1 %vm52_vm0, %v372_v29  ;;  %664 = vmatpush.xpose.msk.msra.mxu3 %vm52_vm0, %v372_v29 }
  0x11   :  { %583 = vmatmul.msk.f32.vlgmr.msra.gmra.mxu0 %vm52_vm0, %v20_v4  ;;  %595 = vmatmul.msk.f32.vlgmr.msra.gmra.mxu2 %vm52_vm0, %v32_v5 }
  0x14   :  { %633 = vmatpush.xpose.msk.msra.mxu1 %vm52_vm0, %v371_v30  ;;  %665 = vmatpush.xpose.msk.msra.mxu3 %vm52_vm0, %v371_v30 }
  0x18   :  { %634 = vmatpush.xpose.msk.msra.mxu1 %vm52_vm0, %v370_v31  ;;  %666 = vmatpush.xpose.msk.msra.mxu3 %vm52_vm0, %v370_v31 }
  0x19   :  { %584 = vmatmul.msk.f32.gmra.mxu0 %vm52_vm0, %v21_v6  ;;  %596 = vmatmul.msk.f32.gmra.mxu2 %vm52_vm0, %v33_v7 }
  0x21   :  { %585 = vmatmul.msk.f32.gmra.mxu0 %vm52_vm0, %v22_v8  ;;  %597 = vmatmul.msk.f32.gmra.mxu2 %vm52_vm0, %v34_v9 }
  0x29   :  { %586 = vmatmul.msk.f32.gmra.mxu0 %vm52_vm0, %v23_v10  ;;  %598 = vmatmul.msk.f32.gmra.mxu2 %vm52_vm0, %v35_v11 }
  0x31   :  { %587 = vmatmul.msk.f32.gmra.mxu0 %vm52_vm0, %v24_v12  ;;  %599 = vmatmul.msk.f32.gmra.mxu2 %vm52_vm0, %v36_v13 }
  0x39   :  { %588 = vmatmul.msk.f32.gmra.mxu0 %vm52_vm0, %v25_v14  ;;  %600 = vmatmul.msk.f32.gmra.mxu2 %vm52_vm0, %v37_v15 }
  0x41   :  { %589 = vmatmul.msk.f32.gmra.mxu0 %vm52_vm0, %v26_v16  ;;  %601 = vmatmul.msk.f32.gmra.mxu2 %vm52_vm0, %v38_v17 }
  0x49   :  { %590 = vmatmul.msk.f32.gmra.mxu0 %vm52_vm0, %v27_v18  ;;  %602 = vmatmul.msk.f32.gmra.mxu2 %vm52_vm0, %v39_v19 }
  0x51   :  { %591 = vmatmul.msk.f32.gmra.mxu0 %vm52_vm0, %v28_v20  ;;  %603 = vmatmul.msk.f32.gmra.mxu2 %vm52_vm0, %v40_v21 }
  0x59   :  { %592 = vmatmul.msk.f32.gmra.mxu0 %vm52_vm0, %v29_v22  ;;  %604 = vmatmul.msk.f32.gmra.mxu2 %vm52_vm0, %v41_v23 }
  0x61   :  { %593 = vmatmul.msk.f32.gmra.mxu0 %vm52_vm0, %v30_v24  ;;  %605 = vmatmul.msk.f32.gmra.mxu2 %vm52_vm0, %v42_v25 }
  0x69   :  { %594 = vmatmul.msk.f32.gmra.mxu0 %vm52_vm0, %v31_v26  ;;  %606 = vmatmul.msk.f32.gmra.mxu2 %vm52_vm0, %v43_v27 }
  0x8e   :  { %v154_v33 = vpop.f32.mrf.mxu0 }
  0x8f   :  { %v155_v34 = vadd.f32 %v886_v32, %v154_v33 }
  0x91   :  { %v250_v35 = vmin.f32 %v155_v34, 0.0  ;;  %vm226_vm1 = vcmp.gt.f32.partialorder %v155_v34, 0.0 }
  0x93   :  { %v274_v36 = vmul.f32 1.442695, %v250_v35 }
  0x94   :  { %v190_v37 = vpop.f32.mrf.mxu2 }
  0x95   :  { %669 = vpow2.f32 %v274_v36  ;;  %v191_v38 = vadd.f32 %v886_v32, %v190_v37 }
  0x96   :  { %v157_v39 = vpop.f32.mrf.mxu0 }
  0x97   :  { %v262_v40 = vmin.f32 %v191_v38, 0.0  ;;  %v158_v41 = vadd.f32 %v886_v32, %v157_v39  ;;  %vm238_vm2 = vcmp.gt.f32.partialorder %v191_v38, 0.0 }
  0x99   :  { %v298_v42 = vmul.f32 1.442695, %v262_v40  ;;  %v251_v43 = vmin.f32 %v158_v41, 0.0  ;;  %vm227_vm3 = vcmp.gt.f32.partialorder %v158_v41, 0.0 }
  0x9b   :  { %v670_v44 = vpop.eup %669  ;;  %671 = vpow2.f32 %v298_v42  ;;  %v276_v45 = vmul.f32 1.442695, %v251_v43 }
  0x9c   :  { %v193_v46 = vpop.f32.mrf.mxu2  ;;  %v607_v47 = vadd.f32 -1.0, %v670_v44 }
  0x9d   :  { %673 = vpow2.f32 %v276_v45  ;;  %v194_v48 = vadd.f32 %v886_v32, %v193_v46 }
  0x9e   :  { %v160_v49 = vpop.f32.mrf.mxu0  ;;  %v346_v50 = vsel %vm226_vm1, %v155_v34, %v607_v47 }
  0x9f   :  { %v263_v51 = vmin.f32 %v194_v48, 0.0  ;;  %v161_v52 = vadd.f32 %v886_v32, %v160_v49  ;;  %635 = vmatmul.msk.f32.vlgmr.msra.gmra.mxu1 %vm52_vm0, %v346_v50  ;;  %vm239_vm4 = vcmp.gt.f32.partialorder %v194_v48, 0.0 }
  0xa1   :  { %v672_v53 = vpop.eup %671  ;;  %v300_v54 = vmul.f32 1.442695, %v263_v51  ;;  %v252_v55 = vmin.f32 %v161_v52, 0.0  ;;  %vm228_vm5 = vcmp.gt.f32.partialorder %v161_v52, 0.0 }
  0xa2   :  { %v619_v56 = vadd.f32 -1.0, %v672_v53 }
  0xa3   :  { %v674_v57 = vpop.eup %673  ;;  %675 = vpow2.f32 %v300_v54  ;;  %v278_v58 = vmul.f32 1.442695, %v252_v55 }
  0xa4   :  { %v196_v59 = vpop.f32.mrf.mxu2  ;;  %v358_v60 = vsel %vm238_vm2, %v191_v38, %v619_v56  ;;  %v608_v61 = vadd.f32 -1.0, %v674_v57 }
  0xa5   :  { %677 = vpow2.f32 %v278_v58  ;;  %v197_v62 = vadd.f32 %v886_v32, %v196_v59  ;;  %647 = vmatmul.msk.f32.vlgmr.msra.gmra.mxu3 %vm52_vm0, %v358_v60 }
  0xa6   :  { %v163_v63 = vpop.f32.mrf.mxu0  ;;  %v347_v0 = vsel %vm227_vm3, %v158_v41, %v608_v61 }
  0xa7   :  { %v264_v1 = vmin.f32 %v197_v62, 0.0  ;;  %v164_v2 = vadd.f32 %v886_v32, %v163_v63  ;;  %636 = vmatmul.msk.f32.gmra.mxu1 %vm52_vm0, %v347_v0  ;;  %vm240_vm6 = vcmp.gt.f32.partialorder %v197_v62, 0.0 }
  0xa9   :  { %v676_v3 = vpop.eup %675  ;;  %v302_v4 = vmul.f32 1.442695, %v264_v1  ;;  %v253_v5 = vmin.f32 %v164_v2, 0.0  ;;  %vm229_vm7 = vcmp.gt.f32.partialorder %v164_v2, 0.0 }
  0xaa   :  { %v620_v6 = vadd.f32 -1.0, %v676_v3 }
  0xab   :  { %v678_v7 = vpop.eup %677  ;;  %679 = vpow2.f32 %v302_v4  ;;  %v280_v8 = vmul.f32 1.442695, %v253_v5 }
  0xac   :  { %v199_v9 = vpop.f32.mrf.mxu2  ;;  %v359_v10 = vsel %vm239_vm4, %v194_v48, %v620_v6  ;;  %v609_v11 = vadd.f32 -1.0, %v678_v7 }
  0xad   :  { %681 = vpow2.f32 %v280_v8  ;;  %v200_v12 = vadd.f32 %v886_v32, %v199_v9  ;;  %648 = vmatmul.msk.f32.gmra.mxu3 %vm52_vm0, %v359_v10 }
  0xae   :  { %v166_v13 = vpop.f32.mrf.mxu0  ;;  %v348_v14 = vsel %vm228_vm5, %v161_v52, %v609_v11 }
  0xaf   :  { %v265_v15 = vmin.f32 %v200_v12, 0.0  ;;  %v167_v16 = vadd.f32 %v886_v32, %v166_v13  ;;  %637 = vmatmul.msk.f32.gmra.mxu1 %vm52_vm0, %v348_v14  ;;  %vm241_vm8 = vcmp.gt.f32.partialorder %v200_v12, 0.0 }
  0xb1   :  { %v680_v17 = vpop.eup %679  ;;  %v304_v18 = vmul.f32 1.442695, %v265_v15  ;;  %v254_v19 = vmin.f32 %v167_v16, 0.0  ;;  %vm230_vm9 = vcmp.gt.f32.partialorder %v167_v16, 0.0 }
  0xb2   :  { %v621_v20 = vadd.f32 -1.0, %v680_v17 }
  0xb3   :  { %v682_v21 = vpop.eup %681  ;;  %683 = vpow2.f32 %v304_v18  ;;  %v282_v22 = vmul.f32 1.442695, %v254_v19 }
  0xb4   :  { %v202_v23 = vpop.f32.mrf.mxu2  ;;  %v360_v24 = vsel %vm240_vm6, %v197_v62, %v621_v20  ;;  %v610_v25 = vadd.f32 -1.0, %v682_v21 }
  0xb5   :  { %685 = vpow2.f32 %v282_v22  ;;  %v203_v26 = vadd.f32 %v886_v32, %v202_v23  ;;  %649 = vmatmul.msk.f32.gmra.mxu3 %vm52_vm0, %v360_v24 }
  0xb6   :  { %v169_v27 = vpop.f32.mrf.mxu0  ;;  %v349_v28 = vsel %vm229_vm7, %v164_v2, %v610_v25 }
  0xb7   :  { %v266_v29 = vmin.f32 %v203_v26, 0.0  ;;  %v170_v30 = vadd.f32 %v886_v32, %v169_v27  ;;  %638 = vmatmul.msk.f32.gmra.mxu1 %vm52_vm0, %v349_v28  ;;  %vm242_vm10 = vcmp.gt.f32.partialorder %v203_v26, 0.0 }
  0xb9   :  { %v684_v31 = vpop.eup %683  ;;  %v306_v33 = vmul.f32 1.442695, %v266_v29  ;;  %v255_v34 = vmin.f32 %v170_v30, 0.0  ;;  %vm231_vm11 = vcmp.gt.f32.partialorder %v170_v30, 0.0 }
  0xba   :  { %v622_v35 = vadd.f32 -1.0, %v684_v31 }
  0xbb   :  { %v686_v36 = vpop.eup %685  ;;  %687 = vpow2.f32 %v306_v33  ;;  %v284_v37 = vmul.f32 1.442695, %v255_v34 }
  0xbc   :  { %v205_v38 = vpop.f32.mrf.mxu2  ;;  %v361_v39 = vsel %vm241_vm8, %v200_v12, %v622_v35  ;;  %v611_v40 = vadd.f32 -1.0, %v686_v36 }
  0xbd   :  { %689 = vpow2.f32 %v284_v37  ;;  %v206_v41 = vadd.f32 %v886_v32, %v205_v38  ;;  %650 = vmatmul.msk.f32.gmra.mxu3 %vm52_vm0, %v361_v39 }
  0xbe   :  { %v172_v42 = vpop.f32.mrf.mxu0  ;;  %v350_v43 = vsel %vm230_vm9, %v167_v16, %v611_v40 }
  0xbf   :  { %v267_v44 = vmin.f32 %v206_v41, 0.0  ;;  %v173_v45 = vadd.f32 %v886_v32, %v172_v42  ;;  %639 = vmatmul.msk.f32.gmra.mxu1 %vm52_vm0, %v350_v43  ;;  %vm243_vm12 = vcmp.gt.f32.partialorder %v206_v41, 0.0 }
  0xc1   :  { %v688_v46 = vpop.eup %687  ;;  %v308_v47 = vmul.f32 1.442695, %v267_v44  ;;  %v256_v48 = vmin.f32 %v173_v45, 0.0  ;;  %vm232_vm13 = vcmp.gt.f32.partialorder %v173_v45, 0.0 }
  0xc2   :  { %v623_v49 = vadd.f32 -1.0, %v688_v46 }
  0xc3   :  { %v690_v50 = vpop.eup %689  ;;  %691 = vpow2.f32 %v308_v47  ;;  %v286_v51 = vmul.f32 1.442695, %v256_v48 }
  0xc4   :  { %v208_v52 = vpop.f32.mrf.mxu2  ;;  %v362_v53 = vsel %vm242_vm10, %v203_v26, %v623_v49  ;;  %v612_v54 = vadd.f32 -1.0, %v690_v50 }
  0xc5   :  { %693 = vpow2.f32 %v286_v51  ;;  %v209_v55 = vadd.f32 %v886_v32, %v208_v52  ;;  %651 = vmatmul.msk.f32.gmra.mxu3 %vm52_vm0, %v362_v53 }
  0xc6   :  { %v175_v56 = vpop.f32.mrf.mxu0  ;;  %v351_v57 = vsel %vm231_vm11, %v170_v30, %v612_v54 }
  0xc7   :  { %v268_v58 = vmin.f32 %v209_v55, 0.0  ;;  %v176_v59 = vadd.f32 %v886_v32, %v175_v56  ;;  %640 = vmatmul.msk.f32.gmra.mxu1 %vm52_vm0, %v351_v57  ;;  %vm244_vm14 = vcmp.gt.f32.partialorder %v209_v55, 0.0 }
  0xc9   :  { %v692_v60 = vpop.eup %691  ;;  %v310_v61 = vmul.f32 1.442695, %v268_v58  ;;  %v257_v62 = vmin.f32 %v176_v59, 0.0  ;;  %vm233_vm15 = vcmp.gt.f32.partialorder %v176_v59, 0.0 }
  0xca   :  { %v624_v63 = vadd.f32 -1.0, %v692_v60 }
  0xcb   :  { %v694_v0 = vpop.eup %693  ;;  %695 = vpow2.f32 %v310_v61  ;;  %v288_v1 = vmul.f32 1.442695, %v257_v62 }
  0xcc   :  { %v211_v2 = vpop.f32.mrf.mxu2  ;;  %v363_v3 = vsel %vm243_vm12, %v206_v41, %v624_v63  ;;  %v613_v4 = vadd.f32 -1.0, %v694_v0 }
  0xcd   :  { %697 = vpow2.f32 %v288_v1  ;;  %v212_v5 = vadd.f32 %v886_v32, %v211_v2  ;;  %652 = vmatmul.msk.f32.gmra.mxu3 %vm52_vm0, %v363_v3 }
  0xce   :  { %v178_v6 = vpop.f32.mrf.mxu0  ;;  %v352_v7 = vsel %vm232_vm13, %v173_v45, %v613_v4 }
  0xcf   :  { %v269_v8 = vmin.f32 %v212_v5, 0.0  ;;  %v179_v9 = vadd.f32 %v886_v32, %v178_v6  ;;  %641 = vmatmul.msk.f32.gmra.mxu1 %vm52_vm0, %v352_v7  ;;  %vm245_vm1 = vcmp.gt.f32.partialorder %v212_v5, 0.0 }
  0xd1   :  { %v696_v10 = vpop.eup %695  ;;  %v312_v11 = vmul.f32 1.442695, %v269_v8  ;;  %v258_v12 = vmin.f32 %v179_v9, 0.0  ;;  %vm234_vm2 = vcmp.gt.f32.partialorder %v179_v9, 0.0 }
  0xd2   :  { %v625_v13 = vadd.f32 -1.0, %v696_v10  ;;  %v939_v10 = vld [vmem:[%s1065_s4] ss:$0 sm:$0xff] }
  0xd3   :  { %v698_v14 = vpop.eup %697  ;;  %699 = vpow2.f32 %v312_v11  ;;  %v290_v15 = vmul.f32 1.442695, %v258_v12 }
  0xd4   :  { %v214_v16 = vpop.f32.mrf.mxu2  ;;  %v364_v17 = vsel %vm244_vm14, %v209_v55, %v625_v13  ;;  %v614_v18 = vadd.f32 -1.0, %v698_v14 }
  0xd5   :  { %701 = vpow2.f32 %v290_v15  ;;  %v215_v19 = vadd.f32 %v886_v32, %v214_v16  ;;  %653 = vmatmul.msk.f32.gmra.mxu3 %vm52_vm0, %v364_v17 }
  0xd6   :  { %v181_v20 = vpop.f32.mrf.mxu0  ;;  %v353_v21 = vsel %vm233_vm15, %v176_v59, %v614_v18 }
  0xd7   :  { %v270_v22 = vmin.f32 %v215_v19, 0.0  ;;  %v182_v23 = vadd.f32 %v886_v32, %v181_v20  ;;  %642 = vmatmul.msk.f32.gmra.mxu1 %vm52_vm0, %v353_v21  ;;  %vm246_vm3 = vcmp.gt.f32.partialorder %v215_v19, 0.0 }
  0xd9   :  { %v700_v24 = vpop.eup %699  ;;  %v314_v25 = vmul.f32 1.442695, %v270_v22  ;;  %v259_v26 = vmin.f32 %v182_v23, 0.0  ;;  %vm235_vm4 = vcmp.gt.f32.partialorder %v182_v23, 0.0 }
  0xda   :  { %v626_v27 = vadd.f32 -1.0, %v700_v24 }
  0xdb   :  { %v702_v28 = vpop.eup %701  ;;  %703 = vpow2.f32 %v314_v25  ;;  %v292_v29 = vmul.f32 1.442695, %v259_v26 }
  0xdc   :  { %v217_v30 = vpop.f32.mrf.mxu2  ;;  %v365_v31 = vsel %vm245_vm1, %v212_v5, %v626_v27  ;;  %v615_v33 = vadd.f32 -1.0, %v702_v28 }
  0xdd   :  { %705 = vpow2.f32 %v292_v29  ;;  %v218_v34 = vadd.f32 %v886_v32, %v217_v30  ;;  %654 = vmatmul.msk.f32.gmra.mxu3 %vm52_vm0, %v365_v31 }
  0xde   :  { %v184_v35 = vpop.f32.mrf.mxu0  ;;  %v354_v36 = vsel %vm234_vm2, %v179_v9, %v615_v33 }
  0xdf   :  { %v271_v37 = vmin.f32 %v218_v34, 0.0  ;;  %v185_v38 = vadd.f32 %v886_v32, %v184_v35  ;;  %643 = vmatmul.msk.f32.gmra.mxu1 %vm52_vm0, %v354_v36  ;;  %vm247_vm5 = vcmp.gt.f32.partialorder %v218_v34, 0.0 }
  0xe1   :  { %v704_v39 = vpop.eup %703  ;;  %v316_v40 = vmul.f32 1.442695, %v271_v37  ;;  %v260_v41 = vmin.f32 %v185_v38, 0.0  ;;  %vm236_vm6 = vcmp.gt.f32.partialorder %v185_v38, 0.0 }
  0xe2   :  { %v627_v42 = vadd.f32 -1.0, %v704_v39 }
  0xe3   :  { %v706_v43 = vpop.eup %705  ;;  %707 = vpow2.f32 %v316_v40  ;;  %v294_v44 = vmul.f32 1.442695, %v260_v41 }
  0xe4   :  { %v220_v45 = vpop.f32.mrf.mxu2  ;;  %v366_v46 = vsel %vm246_vm3, %v215_v19, %v627_v42  ;;  %v616_v47 = vadd.f32 -1.0, %v706_v43 }
  0xe5   :  { %709 = vpow2.f32 %v294_v44  ;;  %v221_v48 = vadd.f32 %v886_v32, %v220_v45  ;;  %655 = vmatmul.msk.f32.gmra.mxu3 %vm52_vm0, %v366_v46 }
  0xe6   :  { %v187_v49 = vpop.f32.mrf.mxu0  ;;  %v355_v50 = vsel %vm235_vm4, %v182_v23, %v616_v47 }
  0xe7   :  { %v272_v51 = vmin.f32 %v221_v48, 0.0  ;;  %v188_v52 = vadd.f32 %v886_v32, %v187_v49  ;;  %644 = vmatmul.msk.f32.gmra.mxu1 %vm52_vm0, %v355_v50  ;;  %vm248_vm7 = vcmp.gt.f32.partialorder %v221_v48, 0.0 }
  0xe9   :  { %v708_v53 = vpop.eup %707  ;;  %v318_v54 = vmul.f32 1.442695, %v272_v51  ;;  %v261_v55 = vmin.f32 %v188_v52, 0.0  ;;  %vm237_vm8 = vcmp.gt.f32.partialorder %v188_v52, 0.0 }
  0xea   :  { %v628_v56 = vadd.f32 -1.0, %v708_v53 }
  0xeb   :  { %v710_v57 = vpop.eup %709  ;;  %711 = vpow2.f32 %v318_v54  ;;  %v296_v58 = vmul.f32 1.442695, %v261_v55 }
  0xec   :  { %v223_v59 = vpop.f32.mrf.mxu2  ;;  %v367_v60 = vsel %vm247_vm5, %v218_v34, %v628_v56  ;;  %v617_v61 = vadd.f32 -1.0, %v710_v57 }
  0xed   :  { %713 = vpow2.f32 %v296_v58  ;;  %v224_v62 = vadd.f32 %v886_v32, %v223_v59  ;;  %656 = vmatmul.msk.f32.gmra.mxu3 %vm52_vm0, %v367_v60 }
  0xee   :  { %v356_v63 = vsel %vm236_vm6, %v185_v38, %v617_v61 }
  0xef   :  { %v273_v0 = vmin.f32 %v224_v62, 0.0  ;;  %645 = vmatmul.msk.f32.gmra.mxu1 %vm52_vm0, %v356_v63  ;;  %vm249_vm9 = vcmp.gt.f32.partialorder %v224_v62, 0.0 }
  0xf1   :  { %v712_v1 = vpop.eup %711  ;;  %v320_v2 = vmul.f32 1.442695, %v273_v0 }
  0xf2   :  { %v629_v3 = vadd.f32 -1.0, %v712_v1 }
  0xf3   :  { %v714_v4 = vpop.eup %713  ;;  %715 = vpow2.f32 %v320_v2 }
  0xf4   :  { %v368_v5 = vsel %vm248_vm7, %v221_v48, %v629_v3  ;;  %v618_v6 = vadd.f32 -1.0, %v714_v4 }
  0xf5   :  { %657 = vmatmul.msk.f32.gmra.mxu3 %vm52_vm0, %v368_v5 }
  0xf6   :  { %v357_v7 = vsel %vm237_vm8, %v188_v52, %v618_v6 }
  0xf7   :  { %646 = vmatmul.msk.f32.gmra.mxu1 %vm52_vm0, %v357_v7 }
  0xf9   :  { %v716_v32 = vpop.eup %715 }
  0xfa   :  { %v630_v8 = vadd.f32 -1.0, %v716_v32 }
  0xfc   :  { %v369_v9 = vsel %vm249_vm9, %v224_v62, %v630_v8 }
  0xfd   :  { %658 = vmatmul.msk.f32.gmra.mxu3 %vm52_vm0, %v369_v9 }
 0x11c   :  { %v479_v11 = vpop.f32.mrf.mxu1 }
 0x11d   :  { %v480_v12 = vadd.f32 %v939_v10, %v479_v11 }
 0x11f   :  { %551 = vst.msk [vmem:[%s1066_s5] sm:$0xff] %vm52_vm0, %v480_v12 }
 0x124   :  { %v482_v13 = vpop.f32.mrf.mxu1 }
 0x125   :  { %v483_v14 = vadd.f32 %v939_v10, %v482_v13 }
 0x127   :  { %552 = vst.msk [vmem:[%s1066_s5 + $0x8] sm:$0xff] %vm52_vm0, %v483_v14 }
 0x128   :  { %v515_v15 = vpop.f32.mrf.mxu3 }
 0x129   :  { %v516_v16 = vadd.f32 %v939_v10, %v515_v15 }
 0x12b   :  { %563 = vst.msk [vmem:[%s1066_s5 + $0x60] sm:$0xff] %vm52_vm0, %v516_v16 }
 0x12c   :  { %v485_v17 = vpop.f32.mrf.mxu1 }
 0x12d   :  { %v486_v18 = vadd.f32 %v939_v10, %v485_v17 }
 0x12f   :  { %553 = vst.msk [vmem:[%s1066_s5 + $0x10] sm:$0xff] %vm52_vm0, %v486_v18 }
 0x130   :  { %v518_v19 = vpop.f32.mrf.mxu3 }
 0x131   :  { %v519_v20 = vadd.f32 %v939_v10, %v518_v19 }
 0x133   :  { %564 = vst.msk [vmem:[%s1066_s5 + $0x68] sm:$0xff] %vm52_vm0, %v519_v20 }
 0x134   :  { %v488_v21 = vpop.f32.mrf.mxu1 }
 0x135   :  { %v489_v22 = vadd.f32 %v939_v10, %v488_v21 }
 0x137   :  { %554 = vst.msk [vmem:[%s1066_s5 + $0x18] sm:$0xff] %vm52_vm0, %v489_v22 }
 0x138   :  { %v521_v23 = vpop.f32.mrf.mxu3 }
 0x139   :  { %v522_v24 = vadd.f32 %v939_v10, %v521_v23 }
 0x13b   :  { %565 = vst.msk [vmem:[%s1066_s5 + $0x70] sm:$0xff] %vm52_vm0, %v522_v24 }
 0x13c   :  { %v491_v25 = vpop.f32.mrf.mxu1 }
 0x13d   :  { %v492_v26 = vadd.f32 %v939_v10, %v491_v25 }
 0x13f   :  { %555 = vst.msk [vmem:[%s1066_s5 + $0x20] sm:$0xff] %vm52_vm0, %v492_v26 }
 0x140   :  { %v524_v27 = vpop.f32.mrf.mxu3 }
 0x141   :  { %v525_v28 = vadd.f32 %v939_v10, %v524_v27 }
 0x143   :  { %566 = vst.msk [vmem:[%s1066_s5 + $0x78] sm:$0xff] %vm52_vm0, %v525_v28 }
 0x144   :  { %v494_v29 = vpop.f32.mrf.mxu1 }
 0x145   :  { %v495_v30 = vadd.f32 %v939_v10, %v494_v29 }
 0x147   :  { %556 = vst.msk [vmem:[%s1066_s5 + $0x28] sm:$0xff] %vm52_vm0, %v495_v30 }
 0x148   :  { %v527_v31 = vpop.f32.mrf.mxu3 }
 0x149   :  { %v528_v33 = vadd.f32 %v939_v10, %v527_v31 }
 0x14b   :  { %567 = vst.msk [vmem:[%s1066_s5 + $0x80] sm:$0xff] %vm52_vm0, %v528_v33 }
 0x14c   :  { %v497_v34 = vpop.f32.mrf.mxu1 }
 0x14d   :  { %v498_v35 = vadd.f32 %v939_v10, %v497_v34 }
 0x14f   :  { %557 = vst.msk [vmem:[%s1066_s5 + $0x30] sm:$0xff] %vm52_vm0, %v498_v35 }
 0x150   :  { %v530_v36 = vpop.f32.mrf.mxu3 }
 0x151   :  { %v531_v37 = vadd.f32 %v939_v10, %v530_v36 }
 0x153   :  { %568 = vst.msk [vmem:[%s1066_s5 + $0x88] sm:$0xff] %vm52_vm0, %v531_v37 }
 0x154   :  { %v500_v38 = vpop.f32.mrf.mxu1 }
 0x155   :  { %v501_v39 = vadd.f32 %v939_v10, %v500_v38 }
 0x157   :  { %558 = vst.msk [vmem:[%s1066_s5 + $0x38] sm:$0xff] %vm52_vm0, %v501_v39 }
 0x158   :  { %v533_v40 = vpop.f32.mrf.mxu3 }
 0x159   :  { %v534_v41 = vadd.f32 %v939_v10, %v533_v40 }
 0x15b   :  { %569 = vst.msk [vmem:[%s1066_s5 + $0x90] sm:$0xff] %vm52_vm0, %v534_v41 }
 0x15c   :  { %v503_v42 = vpop.f32.mrf.mxu1 }
 0x15d   :  { %v504_v43 = vadd.f32 %v939_v10, %v503_v42 }
 0x15f   :  { %559 = vst.msk [vmem:[%s1066_s5 + $0x40] sm:$0xff] %vm52_vm0, %v504_v43 }
 0x160   :  { %v536_v44 = vpop.f32.mrf.mxu3 }
 0x161   :  { %v537_v45 = vadd.f32 %v939_v10, %v536_v44 }
 0x163   :  { %570 = vst.msk [vmem:[%s1066_s5 + $0x98] sm:$0xff] %vm52_vm0, %v537_v45 }
 0x164   :  { %v506_v46 = vpop.f32.mrf.mxu1 }
 0x165   :  { %v507_v47 = vadd.f32 %v939_v10, %v506_v46 }
 0x167   :  { %560 = vst.msk [vmem:[%s1066_s5 + $0x48] sm:$0xff] %vm52_vm0, %v507_v47 }
 0x168   :  { %v539_v48 = vpop.f32.mrf.mxu3 }
 0x169   :  { %v540_v49 = vadd.f32 %v939_v10, %v539_v48 }
 0x16b   :  { %571 = vst.msk [vmem:[%s1066_s5 + $0xa0] sm:$0xff] %vm52_vm0, %v540_v49 }
 0x16c   :  { %v509_v50 = vpop.f32.mrf.mxu1 }
 0x16d   :  { %v510_v51 = vadd.f32 %v939_v10, %v509_v50 }
 0x16f   :  { %561 = vst.msk [vmem:[%s1066_s5 + $0x50] sm:$0xff] %vm52_vm0, %v510_v51 }
 0x170   :  { %v542_v52 = vpop.f32.mrf.mxu3 }
 0x171   :  { %v543_v53 = vadd.f32 %v939_v10, %v542_v52 }
 0x173   :  { %572 = vst.msk [vmem:[%s1066_s5 + $0xa8] sm:$0xff] %vm52_vm0, %v543_v53 }
 0x174   :  { %v512_v54 = vpop.f32.mrf.mxu1 }
 0x175   :  { %v513_v55 = vadd.f32 %v939_v10, %v512_v54 }
 0x177   :  { %562 = vst.msk [vmem:[%s1066_s5 + $0x58] sm:$0xff] %vm52_vm0, %v513_v55 }
 0x178   :  { %v545_v56 = vpop.f32.mrf.mxu3 }
 0x179   :  { %v546_v57 = vadd.f32 %v939_v10, %v545_v56 }
 0x17b   :  { %573 = vst.msk [vmem:[%s1066_s5 + $0xb0] sm:$0xff] %vm52_vm0, %v546_v57 }
 0x180   :  { %v548_v58 = vpop.f32.mrf.mxu3 }
 0x181   :  { %v549_v59 = vadd.f32 %v939_v10, %v548_v58 }
 0x183   :  { %574 = vst.msk [vmem:[%s1066_s5 + $0xb8] sm:$0xff] %vm52_vm0, %v549_v59 }

// kernel: forward.13
= control target key start
LH: loop header
LB: loop body
LE: loop exit
PB: predicated region body
PF: predicated region fallthrough
CT: control target
= control target key end

     0   :  { %s1130_s30 = smov [#allocation3]   ;;  %s1131_s8 = smov [#allocation4]   ;;  %s1730_s0 = inlined_call_operand.vmem [shape: s32[3], index: 0, kind: input, shape index: {}]   ;;  %s1731_s2 = inlined_call_operand.vmem [shape: f32[5,64,32], index: 2, kind: input, shape index: {}, may-alias: {2,3}]   ;;  %s1732_s3 = inlined_call_operand.vmem [shape: f32[5,64,32], index: 3, kind: input, shape index: {}, may-alias: {2,3}]   ;;  %s1733_s4 = inlined_call_operand.vmem [shape: f32[64,64], index: 4, kind: input, shape index: {}]   ;;  %s1734_s5 = inlined_call_operand.vmem [shape: f32[64,64], index: 5, kind: input, shape index: {}]   ;;  %s1735_s6 = inlined_call_operand.vmem [shape: f32[3,1,128], index: 6, kind: output, shape index: {0}]   ;;  %s1736_s7 = inlined_call_operand.vmem [shape: f32[3,1,128], index: 7, kind: output, shape index: {1}]   ;;  %s1737_s1 = inlined_call_operand.vmem [shape: s32[3], index: 1, kind: input, shape index: {}]  }
   0x1   :  { %s14_s26 = sshll.u32 %s1730_s0, 4  ;;  %s19_s29 = sshll.u32 %s1737_s1, 4  ;;  %s15_s26 = int_to_ptr.vmem [resolvable:$true] %s14_s26  ;;  %s20_s29 = int_to_ptr.vmem [resolvable:$true] %s19_s29 }
   0x2   :  { %17 = dma.vmem_to_smem %s15_s26, 16, %s1130_s30, [#allocation2] }
   0x3   :  { %22 = dma.vmem_to_smem %s20_s29, 16, %s1131_s8, [#allocation2] }
   0x4   :  { %1124 = dma.done.wait [#allocation2], 32 }
   0x5   :  { %1125 = vsyncadd [#allocation2], 4294967264 }
   0x6   :  { %25 = sfence }
   0x7   :  { %s1179_s9 = smov 0  }
   0x8 LB: > { %s1185_s0 = sadd.s32 4294967295, %s1128_s9   ;;  %p946_p0 = scmp.ge.s32.totalorder %s1128_s9, 1  ;;  %s1128_s9 = sphi %s1179_s9, %s31_s9  }
   0x9   : > { %p223_p1 = scmp.lt.s32.totalorder %s1128_s9, 4 }
   0xb   : > { %p224_p2 = pnand %p946_p0, %p223_p1 }
   0xc   : > { %s266_s1 = sld [smem:[#allocation4 + %s1185_s0]] (!%p224_p2)  ;;  %p273_p5 = scmp.lt.s32.totalorder (!%p224_p2), %s1185_s0, 2 }
   0xd   : > { %227 = sbr.rel (%p224_p2) target bundleno = 692 (0x2b4), region = 36  ;;  %s259_s10 = sld [smem:[#allocation3 + %s1185_s0]] (!%p224_p2) }
  0x12   : > { %p267_p3 = scmp.lt.s32.totalorder %s266_s1, 4  ;;  %vm319_vm0 = vcmask 261120   ;;  %s1765_s0 = smov (!%p273_p5, %s1185_s0), 2 }
  0x13   : > { %p260_p4 = scmp.lt.s32.totalorder %s259_s10, 4  ;;  %s275_s8 = scalar_lea.vmem %s1735_s6, %s1765_s0 }
  0x14   : > { %s1761_s1 = smov (!%p267_p3, %s266_s1), 4  ;;  %s278_s12 = scalar_lea.vmem %s1736_s7, %s1765_s0 }
  0x15   : > { %s970_s11 = sshll.u32 %s1761_s1, 6  ;;  %s1763_s10 = smov (!%p260_p4, %s259_s10), 4 }
  0x16   : > { %s271_s14 = scalar_lea.vmem %s1732_s3, %s970_s11  ;;  %s969_s15 = sshll.u32 %s1763_s10, 6 }
  0x17   : > { %v1194_v0 = vld [vmem:[%s271_s14 + $0x38] sm:$0xff]  ;;  %v1196_v1 = vld [vmem:[%s271_s14 + $0x28] sm:$0xff]  ;;  %v1206_v6 = vld [vmem:[%s271_s14 + $0x30] sm:$0xff]  ;;  %s1224_s18 = scalar_lea.vmem %s1731_s2, %s969_s15 }
  0x18   : > { %v1198_v2 = vld [vmem:[%s271_s14 + $0x18] sm:$0xff]  ;;  %v439_v3 = vmul.f32 %v1194_v0, %v1194_v0  ;;  %v437_v4 = vmul.f32 %v1196_v1, %v1196_v1  ;;  %v1208_v7 = vld [vmem:[%s271_s14 + $0x20] sm:$0xff]  ;;  %v1213_v11 = vld [vmem:[%s271_s14 + $0x10] sm:$0xff]  ;;  %v438_v12 = vmul.f32 %v1206_v6, %v1206_v6 }
  0x19   : > { %v435_v5 = vmul.f32 %v1198_v2, %v1198_v2  ;;  %v436_v13 = vmul.f32 %v1208_v7, %v1208_v7  ;;  %v434_v14 = vmul.f32 %v1213_v11, %v1213_v11  ;;  %v1229_v18 = vld [vmem:[%s271_s14 + $0x8] sm:$0xff]  ;;  %v1231_v19 = vld [vmem:[%s271_s14] sm:$0xff]  ;;  %v1249_v28 = vld [vmem:[%s1224_s18 + $0x10] sm:$0xff] }
  0x1a   : > { %v461_v8 = vsel %vm319_vm0, %v439_v3, 0.0  ;;  %v455_v9 = vsel %vm319_vm0, %v437_v4, 0.0  ;;  %v458_v15 = vsel %vm319_vm0, %v438_v12, 0.0  ;;  %v1234_v20 = vld [vmem:[%s1224_s18] sm:$0xff]  ;;  %v433_v21 = vmul.f32 %v1229_v18, %v1229_v18  ;;  %v1252_v29 = vld [vmem:[%s1224_s18 + $0x30] sm:$0xff]  ;;  %v1264_v36 = vld [vmem:[%s1224_s18 + $0x8] sm:$0xff] }
  0x1b   : > { %v449_v10 = vsel %vm319_vm0, %v435_v5, 0.0  ;;  %462 = vadd.xlane.f32.xlu0 %v461_v8  ;;  %456 = vadd.xlane.f32.xlu1 %v455_v9  ;;  %v452_v16 = vsel %vm319_vm0, %v436_v13, 0.0  ;;  %v446_v17 = vsel %vm319_vm0, %v434_v14, 0.0  ;;  %v432_v22 = vmul.f32 %v1231_v19, %v1231_v19  ;;  %v1246_v27 = vld [vmem:[%s1224_s18 + $0x20] sm:$0xff]  ;;  %v1267_v37 = vld [vmem:[%s1224_s18 + $0x28] sm:$0xff]  ;;  %v1270_v38 = vld [vmem:[%s1224_s18 + $0x18] sm:$0xff] }
  0x1c   : > { %450 = vadd.xlane.f32.xlu2 %v449_v10  ;;  %v311_v23 = vmul.f32 %v1234_v20, %v1234_v20  ;;  %v443_v24 = vsel %vm319_vm0, %v433_v21, 0.0  ;;  %v315_v30 = vmul.f32 %v1246_v27, %v1246_v27  ;;  %v313_v31 = vmul.f32 %v1249_v28, %v1249_v28  ;;  %v1282_v45 = vld [vmem:[%s1224_s18 + $0x38] sm:$0xff] }
  0x1d   : > { %v440_v25 = vsel %vm319_vm0, %v432_v22, 0.0  ;;  %v317_v32 = vmul.f32 %v1252_v29, %v1252_v29  ;;  %v312_v39 = vmul.f32 %v1264_v36, %v1264_v36  ;;  %v316_v40 = vmul.f32 %v1267_v37, %v1267_v37 }
  0x1e   : > { %v320_v26 = vsel %vm319_vm0, %v311_v23, 0.0  ;;  %v332_v33 = vsel %vm319_vm0, %v315_v30, 0.0  ;;  %v326_v34 = vsel %vm319_vm0, %v313_v31, 0.0  ;;  %v314_v41 = vmul.f32 %v1270_v38, %v1270_v38 }
  0x1f   : > { %v338_v35 = vsel %vm319_vm0, %v317_v32, 0.0  ;;  %v323_v42 = vsel %vm319_vm0, %v312_v39, 0.0  ;;  %v335_v43 = vsel %vm319_vm0, %v316_v40, 0.0  ;;  %v318_v46 = vmul.f32 %v1282_v45, %v1282_v45 }
  0x20   : > { %v329_v44 = vsel %vm319_vm0, %v314_v41, 0.0 }
  0x21   : > { %v341_v47 = vsel %vm319_vm0, %v318_v46, 0.0 }
  0x23   : > { %459 = vadd.xlane.f32.xlu0 %v458_v15  ;;  %453 = vadd.xlane.f32.xlu1 %v452_v16 }
  0x24   : > { %447 = vadd.xlane.f32.xlu2 %v446_v17 }
  0x2b   : > { %444 = vadd.xlane.f32.xlu0 %v443_v24  ;;  %441 = vadd.xlane.f32.xlu1 %v440_v25 }
  0x2c   : > { %321 = vadd.xlane.f32.xlu2 %v320_v26 }
  0x33   : > { %333 = vadd.xlane.f32.xlu0 %v332_v33  ;;  %327 = vadd.xlane.f32.xlu1 %v326_v34 }
  0x34   : > { %339 = vadd.xlane.f32.xlu2 %v338_v35 }
  0x3b   : > { %324 = vadd.xlane.f32.xlu0 %v323_v42  ;;  %336 = vadd.xlane.f32.xlu1 %v335_v43 }
  0x3c   : > { %330 = vadd.xlane.f32.xlu2 %v329_v44 }
  0x43   : > { %342 = vadd.xlane.f32.xlu0 %v341_v47 }
  0x8e   : > { %v463_v48 = vpop.xlane.xlu0 %462  ;;  %v1287_v49 = vpop.xlane.xlu1 %456 }
  0x8f   : > { %1010 = vrsqrt.f32 %v463_v48  ;;  %v1289_v50 = vpop.xlane.xlu2 %450  ;;  %vm540_vm2 = vweird.f32 %v463_v48  ;;  %vm520_vm5 = vweird.f32 %v1287_v49 }
  0x90   : > { %1012 = vrsqrt.f32 %v1287_v49  ;;  %vm500_vm8 = vweird.f32 %v1289_v50 }
  0x91   : > { %1014 = vrsqrt.f32 %v1289_v50 }
  0x95   : > { %v1011_v51 = vpop.eup %1010 }
  0x96   : > { %v1293_v52 = vpop.eup %1012  ;;  %v535_v53 = vmul.f32 %v1011_v51, %v463_v48  ;;  %v460_v54 = vpop.xlane.xlu0 %459  ;;  %vm541_vm1 = vweird.f32 %v1011_v51 }
  0x97   : > { %v1295_v55 = vpop.xlane.xlu1 %453  ;;  %v515_v56 = vmul.f32 %v1293_v52, %v1287_v49  ;;  %1016 = vrsqrt.f32 %v460_v54  ;;  %v1299_v57 = vpop.xlane.xlu2 %447  ;;  %vm542_vm3 = vmor %vm540_vm2, %vm541_vm1  ;;  %vm521_vm6 = vweird.f32 %v1293_v52  ;;  %vm530_vm7 = vweird.f32 %v460_v54 }
  0x98   : > { %v536_v58 = vmul.f32 %v1011_v51, %v535_v53  ;;  %1018 = vrsqrt.f32 %v1295_v55  ;;  %v1302_v59 = vpop.eup %1014  ;;  %vm1359_vm11 = vmor %vm520_vm5, %vm521_vm6  ;;  %vm510_vm12 = vweird.f32 %v1295_v55  ;;  %vm490_vm1 = vweird.f32 %v1299_v57 }
  0x99   : > { %v516_v60 = vmul.f32 %v1293_v52, %v515_v56  ;;  %1020 = vrsqrt.f32 %v1299_v57  ;;  %v495_v63 = vmul.f32 %v1302_v59, %v1289_v50  ;;  %vm501_vm10 = vweird.f32 %v1302_v59 }
  0x9a   : > { %v537_v61 = vmul.f32 0.5, %v536_v58  ;;  %vm1381_vm14 = vmor %vm500_vm8, %vm501_vm10 }
  0x9b   : > { %v517_v4 = vmul.f32 0.5, %v516_v60  ;;  %v496_v17 = vmul.f32 %v1302_v59, %v495_v63 }
  0x9c   : > { %v538_v62 = vsub.f32 1.5, %v537_v61 }
  0x9d   : > { %v1017_v3 = vpop.eup %1016  ;;  %v518_v22 = vsub.f32 1.5, %v517_v4  ;;  %v497_v31 = vmul.f32 0.5, %v496_v17 }
  0x9e   : > { %v1308_v5 = vpop.eup %1018  ;;  %v539_v8 = vmul.f32 %v1011_v51, %v538_v62  ;;  %v525_v9 = vmul.f32 %v1017_v3, %v460_v54  ;;  %v1310_v10 = vpop.xlane.xlu0 %444  ;;  %vm531_vm4 = vweird.f32 %v1017_v3 }
  0x9f   : > { %v1312_v12 = vpop.xlane.xlu1 %441  ;;  %v1314_v13 = vpop.eup %1020  ;;  %v505_v14 = vmul.f32 %v1308_v5, %v1295_v55  ;;  %1022 = vrsqrt.f32 %v1310_v10  ;;  %v519_v34 = vmul.f32 %v1293_v52, %v518_v22  ;;  %vm532_vm9 = vmor %vm530_vm7, %vm531_vm4  ;;  %v498_v46 = vsub.f32 1.5, %v497_v31 }
  0xa0   : > { %v1319_v15 = vpop.xlane.xlu2 %321  ;;  %v543_v16 = vsel %vm542_vm3, %v1011_v51, %v539_v8  ;;  %v526_v21 = vmul.f32 %v1017_v3, %v525_v9  ;;  %v485_v25 = vmul.f32 %v1314_v13, %v1299_v57  ;;  %1024 = vrsqrt.f32 %v1312_v12 }
  0xa1   : > { %v506_v23 = vmul.f32 %v1308_v5, %v505_v14  ;;  %v551_v30 = vmul.f32 %v543_v16, %v1194_v0  ;;  %1026 = vrsqrt.f32 %v1319_v15  ;;  %vm511_vm13 = vweird.f32 %v1308_v5 }
  0xa2   : > { %v527_v24 = vmul.f32 0.5, %v526_v21  ;;  %v486_v39 = vmul.f32 %v1314_v13, %v485_v25  ;;  %v523_v56 = vsel %vm1359_vm11, %v1293_v52, %v519_v34  ;;  %v499_v61 = vmul.f32 %v1302_v59, %v498_v46  ;;  %vm1396_vm15 = vmor %vm510_vm12, %vm511_vm13 }
  0xa3   : > { %v507_v26 = vmul.f32 0.5, %v506_v23  ;;  %951 = vmatpush.xpose.msk.msra.mxu0 %vm319_vm0, %v551_v30  ;;  %971 = vmatpush.xpose.msk.msra.mxu1 %vm319_vm0, %v551_v30  ;;  %vm491_vm2 = vweird.f32 %v1314_v13  ;;  %vm480_vm4 = vweird.f32 %v1310_v10  ;;  %vm470_vm5 = vweird.f32 %v1312_v12 }
  0xa4   : > { %v528_v32 = vsub.f32 1.5, %v527_v24  ;;  %972 = vmatpush.xpose.msk.msra.mxu2 %vm319_vm0, %v551_v30  ;;  %973 = vmatpush.xpose.msk.msra.mxu3 %vm319_vm0, %v551_v30  ;;  %v487_v49 = vmul.f32 0.5, %v486_v39  ;;  %vm1438_vm3 = vmor %vm490_vm1, %vm491_vm2  ;;  %vm350_vm8 = vweird.f32 %v1319_v15 }
  0xa5   : > { %v1328_v33 = vpop.eup %1022  ;;  %v508_v0 = vsub.f32 1.5, %v507_v26 }
  0xa6   : > { %v529_v35 = vmul.f32 %v1017_v3, %v528_v32  ;;  %v475_v40 = vmul.f32 %v1328_v33, %v1310_v10  ;;  %v1340_v41 = vpop.xlane.xlu0 %333  ;;  %v1349_v44 = vpop.eup %1024  ;;  %v488_v9 = vsub.f32 1.5, %v487_v49  ;;  %vm481_vm6 = vweird.f32 %v1328_v33 }
  0xa7   : > { %v1342_v42 = vpop.xlane.xlu1 %327  ;;  %1028 = vrsqrt.f32 %v1340_v41  ;;  %v1353_v48 = vpop.eup %1026  ;;  %v465_v53 = vmul.f32 %v1349_v44, %v1312_v12  ;;  %v509_v58 = vmul.f32 %v1308_v5, %v508_v0  ;;  %vm471_vm7 = vweird.f32 %v1349_v44  ;;  %vm1474_vm10 = vmor %vm480_vm4, %vm481_vm6 }
  0xa8   : > { %v1347_v43 = vpop.xlane.xlu2 %339  ;;  %v533_v47 = vsel %vm532_vm9, %v1017_v3, %v529_v35  ;;  %1030 = vrsqrt.f32 %v1342_v42  ;;  %v476_v60 = vmul.f32 %v1328_v33, %v475_v40  ;;  %v345_v62 = vmul.f32 %v1353_v48, %v1319_v15  ;;  %vm1490_vm12 = vmor %vm470_vm5, %vm471_vm7 }
  0xa9   : > { %v550_v54 = vmul.f32 %v533_v47, %v1206_v6  ;;  %1032 = vrsqrt.f32 %v1347_v43  ;;  %v466_v52 = vmul.f32 %v1349_v44, %v465_v53  ;;  %v549_v3 = vmul.f32 %v523_v56, %v1196_v1 }
  0xaa   : > { %v513_v8 = vsel %vm1396_vm15, %v1308_v5, %v509_v58  ;;  %v477_v14 = vmul.f32 0.5, %v476_v60  ;;  %v503_v5 = vsel %vm1381_vm14, %v1302_v59, %v499_v61  ;;  %v346_v22 = vmul.f32 %v1353_v48, %v345_v62 }
  0xab   : > { %952 = vmatpush.xpose.msk.msra.mxu0 %vm319_vm0, %v550_v54  ;;  %974 = vmatpush.xpose.msk.msra.mxu1 %vm319_vm0, %v550_v54  ;;  %v467_v21 = vmul.f32 0.5, %v466_v52  ;;  %v548_v30 = vmul.f32 %v513_v8, %v1208_v7  ;;  %v489_v59 = vmul.f32 %v1314_v13, %v488_v9  ;;  %v547_v57 = vmul.f32 %v503_v5, %v1198_v2 }
  0xac   : > { %975 = vmatpush.xpose.msk.msra.mxu2 %vm319_vm0, %v550_v54  ;;  %976 = vmatpush.xpose.msk.msra.mxu3 %vm319_vm0, %v550_v54  ;;  %v478_v31 = vsub.f32 1.5, %v477_v14  ;;  %v347_v35 = vmul.f32 0.5, %v346_v22  ;;  %vm390_vm9 = vweird.f32 %v1340_v41  ;;  %vm351_vm11 = vweird.f32 %v1353_v48 }
  0xad   : > { %v1390_v63 = vpop.eup %1028  ;;  %v468_v7 = vsub.f32 1.5, %v467_v21  ;;  %v493_v47 = vsel %vm1438_vm3, %v1314_v13, %v489_v59  ;;  %vm370_vm14 = vweird.f32 %v1342_v42  ;;  %vm410_vm1 = vweird.f32 %v1347_v43  ;;  %vm1520_vm3 = vmor %vm350_vm8, %vm351_vm11 }
  0xae   : > { %v1401_v4 = vpop.eup %1030  ;;  %v385_v16 = vmul.f32 %v1390_v63, %v1340_v41  ;;  %v1408_v17 = vpop.xlane.xlu0 %324  ;;  %v479_v51 = vmul.f32 %v1328_v33, %v478_v31  ;;  %v348_v49 = vsub.f32 1.5, %v347_v35  ;;  %v546_v50 = vmul.f32 %v493_v47, %v1213_v11 }
  0xaf   : > { %v1410_v55 = vpop.xlane.xlu1 %336  ;;  %v365_v1 = vmul.f32 %v1401_v4, %v1342_v42  ;;  %953 = vmatpush.xpose.msk.msra.mxu0 %vm319_vm0, %v549_v3  ;;  %977 = vmatpush.xpose.msk.msra.mxu1 %vm319_vm0, %v549_v3  ;;  %1034 = vrsqrt.f32 %v1408_v17  ;;  %v1427_v24 = vpop.eup %1032  ;;  %v469_v58 = vmul.f32 %v1349_v44, %v468_v7  ;;  %vm391_vm13 = vweird.f32 %v1390_v63 }
  0xb0   : > { %978 = vmatpush.xpose.msk.msra.mxu2 %vm319_vm0, %v549_v3  ;;  %979 = vmatpush.xpose.msk.msra.mxu3 %vm319_vm0, %v549_v3  ;;  %v1425_v23 = vpop.xlane.xlu2 %330  ;;  %v386_v25 = vmul.f32 %v1390_v63, %v385_v16  ;;  %1036 = vrsqrt.f32 %v1410_v55  ;;  %v405_v32 = vmul.f32 %v1427_v24, %v1347_v43  ;;  %v483_v3 = vsel %vm1474_vm10, %v1328_v33, %v479_v51  ;;  %vm1553_vm7 = vmor %vm390_vm9, %vm391_vm13 }
  0xb1   : > { %v366_v26 = vmul.f32 %v1401_v4, %v365_v1  ;;  %1038 = vrsqrt.f32 %v1425_v23  ;;  %vm371_vm15 = vweird.f32 %v1401_v4  ;;  %v473_v11 = vsel %vm1490_vm12, %v1349_v44, %v469_v58 }
  0xb2   : > { %v406_v0 = vmul.f32 %v1427_v24, %v405_v32  ;;  %v387_v40 = vmul.f32 0.5, %v386_v25  ;;  %v349_v33 = vmul.f32 %v1353_v48, %v348_v49  ;;  %vm411_vm2 = vweird.f32 %v1427_v24  ;;  %vm1531_vm4 = vmor %vm370_vm14, %vm371_vm15 }
  0xb3   : > { %954 = vmatpush.xpose.msk.msra.mxu0 %vm319_vm0, %v548_v30  ;;  %980 = vmatpush.xpose.msk.msra.mxu1 %vm319_vm0, %v548_v30  ;;  %v367_v46 = vmul.f32 0.5, %v366_v26  ;;  %v545_v22 = vmul.f32 %v483_v3, %v1229_v18  ;;  %vm1541_vm5 = vmor %vm410_vm1, %vm411_vm2  ;;  %vm360_vm6 = vweird.f32 %v1408_v17  ;;  %v544_v42 = vmul.f32 %v473_v11, %v1231_v19 }
  0xb4   : > { %981 = vmatpush.xpose.msk.msra.mxu2 %vm319_vm0, %v548_v30  ;;  %982 = vmatpush.xpose.msk.msra.mxu3 %vm319_vm0, %v548_v30  ;;  %v407_v53 = vmul.f32 0.5, %v406_v0  ;;  %v388_v6 = vsub.f32 1.5, %v387_v40  ;;  %v353_v19 = vsel %vm1520_vm3, %v1353_v48, %v349_v33  ;;  %vm400_vm11 = vweird.f32 %v1410_v55 }
  0xb5   : > { %v1451_v39 = vpop.eup %1034  ;;  %v368_v52 = vsub.f32 1.5, %v367_v46  ;;  %vm380_vm12 = vweird.f32 %v1425_v23 }
  0xb6   : > { %v355_v54 = vmul.f32 %v1451_v39, %v1408_v17  ;;  %v1461_v56 = vpop.xlane.xlu0 %342  ;;  %v1463_v2 = vpop.eup %1036  ;;  %v408_v8 = vsub.f32 1.5, %v407_v53  ;;  %v389_v44 = vmul.f32 %v1390_v63, %v388_v6  ;;  %vm361_vm8 = vweird.f32 %v1451_v39 }
  0xb7   : > { %955 = vmatpush.xpose.msk.msra.mxu0 %vm319_vm0, %v547_v57  ;;  %983 = vmatpush.xpose.msk.msra.mxu1 %vm319_vm0, %v547_v57  ;;  %1040 = vrsqrt.f32 %v1461_v56  ;;  %v395_v60 = vmul.f32 %v1463_v2, %v1410_v55  ;;  %v1484_v61 = vpop.eup %1038  ;;  %v369_v5 = vmul.f32 %v1401_v4, %v368_v52  ;;  %vm420_vm10 = vweird.f32 %v1461_v56  ;;  %vm1582_vm14 = vmor %vm360_vm6, %vm361_vm8 }
  0xb8   : > { %984 = vmatpush.xpose.msk.msra.mxu2 %vm319_vm0, %v547_v57  ;;  %985 = vmatpush.xpose.msk.msra.mxu3 %vm319_vm0, %v547_v57  ;;  %v356_v62 = vmul.f32 %v1451_v39, %v355_v54  ;;  %v375_v12 = vmul.f32 %v1484_v61, %v1425_v23  ;;  %v409_v15 = vmul.f32 %v1427_v24, %v408_v8  ;;  %vm381_vm13 = vweird.f32 %v1484_v61 }
  0xb9   : > { %v396_v9 = vmul.f32 %v1463_v2, %v395_v60  ;;  %v373_v41 = vsel %vm1531_vm4, %v1401_v4, %v369_v5  ;;  %v393_v7 = vsel %vm1553_vm7, %v1390_v63, %v389_v44  ;;  %vm401_vm15 = vweird.f32 %v1463_v2  ;;  %vm382_vm2 = vmor %vm380_vm12, %vm381_vm13  ;;  %v303_v44 = vld [vmem:[%s1734_s5] sm:$0xff] }
  0xba   : > { %v376_v14 = vmul.f32 %v1484_v61, %v375_v12  ;;  %v357_v21 = vmul.f32 0.5, %v356_v62  ;;  %v413_v57 = vsel %vm1541_vm5, %v1427_v24, %v409_v15  ;;  %v424_v4 = vmul.f32 %v353_v19, %v1234_v20  ;;  %vm402_vm3 = vmor %vm400_vm11, %vm401_vm15  ;;  %v305_v15 = vld [vmem:[%s1734_s5 + $0x10] sm:$0xff]  ;;  %v306_v19 = vld [vmem:[%s1734_s5 + $0x18] sm:$0xff] }
  0xbb   : > { %956 = vmatpush.xpose.msk.msra.mxu0 %vm319_vm0, %v546_v50  ;;  %986 = vmatpush.xpose.msk.msra.mxu1 %vm319_vm0, %v546_v50  ;;  %v397_v26 = vmul.f32 0.5, %v396_v9  ;;  %v426_v24 = vmul.f32 %v373_v41, %v1249_v28  ;;  %v428_v17 = vmul.f32 %v393_v7, %v1246_v27  ;;  %v430_v47 = vmul.f32 %v413_v57, %v1252_v29  ;;  %v307_v57 = vld [vmem:[%s1734_s5 + $0x20] sm:$0xff] }
  0xbc   : > { %987 = vmatpush.xpose.msk.msra.mxu2 %vm319_vm0, %v546_v50  ;;  %988 = vmatpush.xpose.msk.msra.mxu3 %vm319_vm0, %v546_v50  ;;  %v377_v30 = vmul.f32 0.5, %v376_v14  ;;  %v358_v32 = vsub.f32 1.5, %v357_v21  ;;  %vm665_vm4 = vcmask 523264   ;;  %v295_v14 = vld [vmem:[%s1733_s4] sm:$0xff]  ;;  %vm762_vm5 = vcmask 7168  }
  0xbd   : > { %v1041_v16 = vpop.eup %1040  ;;  %v398_v35 = vsub.f32 1.5, %v397_v26  ;;  %v304_v26 = vld [vmem:[%s1734_s5 + $0x8] sm:$0xff] }
  0xbe   : > { %v415_v59 = vmul.f32 %v1041_v16, %v1461_v56  ;;  %v378_v34 = vsub.f32 1.5, %v377_v30  ;;  %vm421_vm9 = vweird.f32 %v1041_v16  ;;  %v359_v40 = vmul.f32 %v1451_v39, %v358_v32 }
  0xbf   : > { %957 = vmatpush.xpose.msk.msra.mxu0 %vm319_vm0, %v545_v22  ;;  %989 = vmatpush.xpose.msk.msra.mxu1 %vm319_vm0, %v545_v22  ;;  %vm422_vm1 = vmor %vm420_vm10, %vm421_vm9  ;;  %v399_v51 = vmul.f32 %v1463_v2, %v398_v35 }
  0xc0   : > { %v416_v43 = vmul.f32 %v1041_v16, %v415_v59  ;;  %990 = vmatpush.xpose.msk.msra.mxu2 %vm319_vm0, %v545_v22  ;;  %991 = vmatpush.xpose.msk.msra.mxu3 %vm319_vm0, %v545_v22  ;;  %v379_v46 = vmul.f32 %v1484_v61, %v378_v34  ;;  %v363_v28 = vsel %vm1582_vm14, %v1451_v39, %v359_v40 }
  0xc1   : > { %v403_v23 = vsel %vm402_vm3, %v1463_v2, %v399_v51  ;;  %v425_v54 = vmul.f32 %v363_v28, %v1264_v36  ;;  %v309_v28 = vld [vmem:[%s1734_s5 + $0x30] sm:$0xff] }
  0xc2   : > { %v417_v0 = vmul.f32 0.5, %v416_v43  ;;  %v383_v29 = vsel %vm382_vm2, %v1484_v61, %v379_v46  ;;  %v429_v56 = vmul.f32 %v403_v23, %v1267_v37  ;;  %v308_v46 = vld [vmem:[%s1734_s5 + $0x28] sm:$0xff] }
  0xc3   : > { %958 = vmatpush.xpose.msk.msra.mxu0 %vm319_vm0, %v544_v42  ;;  %992 = vmatpush.xpose.msk.msra.mxu1 %vm319_vm0, %v544_v42  ;;  %v427_v55 = vmul.f32 %v383_v29, %v1270_v38 }
  0xc4   : > { %v418_v63 = vsub.f32 1.5, %v417_v0  ;;  %993 = vmatpush.xpose.msk.msra.mxu2 %vm319_vm0, %v544_v42  ;;  %994 = vmatpush.xpose.msk.msra.mxu3 %vm319_vm0, %v544_v42 }
  0xc6   : > { %v419_v20 = vmul.f32 %v1041_v16, %v418_v63  ;;  %959 = vmatmul.msk.f32.vlgmr.msra.gmra.mxu0 %vm319_vm0, %v424_v4  ;;  %961 = vmatmul.msk.f32.vlgmr.msra.gmra.mxu1 %vm319_vm0, %v426_v24 }
  0xc7   : > { %963 = vmatmul.msk.f32.vlgmr.msra.gmra.mxu2 %vm319_vm0, %v428_v17  ;;  %965 = vmatmul.msk.f32.vlgmr.msra.gmra.mxu3 %vm319_vm0, %v430_v47 }
  0xc8   : > { %v423_v27 = vsel %vm422_vm1, %v1041_v16, %v419_v20 }
  0xc9   : > { %v431_v53 = vmul.f32 %v423_v27, %v1282_v45 }
  0xce   : > { %960 = vmatmul.msk.f32.gmra.mxu0 %vm319_vm0, %v425_v54  ;;  %962 = vmatmul.msk.f32.gmra.mxu1 %vm319_vm0, %v427_v55 }
  0xcf   : > { %964 = vmatmul.msk.f32.gmra.mxu2 %vm319_vm0, %v429_v56  ;;  %966 = vmatmul.msk.f32.gmra.mxu3 %vm319_vm0, %v431_v53  ;;  %vm843_vm0 = vcmask 516096  }
 0x143   : > { %v617_v39 = vpop.f32.mrf.mxu0  ;;  %v623_v13 = vpop.f32.mrf.mxu1 }
 0x144   : > { %v641_v58 = vmul.f32 1.25, %v617_v39  ;;  %v643_v2 = vmul.f32 1.25, %v623_v13  ;;  %v296_v13 = vld [vmem:[%s1733_s4 + $0x8] sm:$0xff] }
 0x146   : > { %v649_v49 = vmul.f32 1.442695, %v641_v58  ;;  %v653_v45 = vmul.f32 1.442695, %v643_v2  ;;  %v310_v58 = vld [vmem:[%s1734_s5 + $0x38] sm:$0xff] }
 0x148   : > { %1042 = vpow2.f32 %v649_v49 }
 0x149   : > { %1044 = vpow2.f32 %v653_v45 }
 0x14a   : > { %v629_v36 = vpop.f32.mrf.mxu2  ;;  %v635_v38 = vpop.f32.mrf.mxu3 }
 0x14b   : > { %v645_v60 = vmul.f32 1.25, %v629_v36  ;;  %v647_v37 = vmul.f32 1.25, %v635_v38  ;;  %v620_v61 = vpop.f32.mrf.mxu0  ;;  %v626_v10 = vpop.f32.mrf.mxu1  ;;  %v297_v36 = vld [vmem:[%s1733_s4 + $0x10] sm:$0xff]  ;;  %v298_v38 = vld [vmem:[%s1733_s4 + $0x18] sm:$0xff] }
 0x14c   : > { %v642_v6 = vmul.f32 1.25, %v620_v61  ;;  %v644_v52 = vmul.f32 1.25, %v626_v10 }
 0x14d   : > { %v657_v62 = vmul.f32 1.442695, %v645_v60  ;;  %v661_v50 = vmul.f32 1.442695, %v647_v37 }
 0x14e   : > { %v1043_v3 = vpop.eup %1042  ;;  %v651_v8 = vmul.f32 1.442695, %v642_v6  ;;  %v655_v9 = vmul.f32 1.442695, %v644_v52 }
 0x14f   : > { %v1624_v12 = vpop.eup %1044  ;;  %1046 = vpow2.f32 %v657_v62  ;;  %v666_v11 = vsel %vm665_vm4, %v1043_v3, 0.0  ;;  %v690_v22 = vmul.f32 %v1043_v3, %v295_v14  ;;  %v809_v42 = vmul.f32 %v1043_v3, %v303_v44 }
 0x150   : > { %1048 = vpow2.f32 %v661_v50  ;;  %v672_v33 = vsel %vm665_vm4, %v1624_v12, 0.0  ;;  %667 = vadd.xlane.f32.xlu1 %v666_v11  ;;  %v811_v41 = vmul.f32 %v1624_v12, %v305_v15  ;;  %v692_v52 = vmul.f32 %v1624_v12, %v297_v36  ;;  %v301_v15 = vld [vmem:[%s1733_s4 + $0x30] sm:$0xff] }
 0x151   : > { %1050 = vpow2.f32 %v651_v8  ;;  %673 = vadd.xlane.f32.xlu0 %v672_v33  ;;  %v698_v32 = vsel %vm665_vm4, %v690_v22, 0.0  ;;  %v817_v63 = vsel %vm665_vm4, %v809_v42, 0.0 }
 0x152   : > { %1052 = vpow2.f32 %v655_v9  ;;  %v632_v16 = vpop.f32.mrf.mxu2  ;;  %v638_v1 = vpop.f32.mrf.mxu3  ;;  %v820_v47 = vsel %vm665_vm4, %v811_v41, 0.0  ;;  %v300_v41 = vld [vmem:[%s1733_s4 + $0x28] sm:$0xff] }
 0x153   : > { %v646_v5 = vmul.f32 1.25, %v632_v16  ;;  %v648_v21 = vmul.f32 1.25, %v638_v1  ;;  %v704_v1 = vsel %vm665_vm4, %v692_v52, 0.0 }
 0x155   : > { %v1635_v25 = vpop.eup %1046  ;;  %v659_v30 = vmul.f32 1.442695, %v646_v5  ;;  %v663_v59 = vmul.f32 1.442695, %v648_v21  ;;  %v299_v21 = vld [vmem:[%s1733_s4 + $0x20] sm:$0xff] }
 0x156   : > { %v1643_v18 = vpop.eup %1048  ;;  %v678_v31 = vsel %vm665_vm4, %v1635_v25, 0.0  ;;  %v813_v51 = vmul.f32 %v1635_v25, %v307_v57 }
 0x157   : > { %v1051_v43 = vpop.eup %1050  ;;  %1054 = vpow2.f32 %v659_v30  ;;  %679 = vadd.xlane.f32.xlu2 %v678_v31  ;;  %v684_v35 = vsel %vm665_vm4, %v1643_v18, 0.0  ;;  %v815_v49 = vmul.f32 %v1643_v18, %v309_v28 }
 0x158   : > { %v1053_v34 = vpop.eup %1052  ;;  %v810_v7 = vmul.f32 %v1051_v43, %v304_v26  ;;  %699 = vadd.xlane.f32.xlu1 %v698_v32  ;;  %v669_v0 = vsel %vm665_vm4, %v1051_v43, 0.0  ;;  %1056 = vpow2.f32 %v663_v59  ;;  %v824_v2 = vsel %vm665_vm4, %v813_v51, 0.0 }
 0x159   : > { %685 = vadd.xlane.f32.xlu0 %v684_v35  ;;  %v796_v48 = vadd.f32 %v669_v0, %v666_v11  ;;  %v812_v24 = vmul.f32 %v1053_v34, %v306_v19  ;;  %v675_v20 = vsel %vm665_vm4, %v1053_v34, 0.0  ;;  %v691_v61 = vmul.f32 %v1051_v43, %v296_v13 }
 0x15a   : > { %v818_v4 = vsel %vm665_vm4, %v810_v7, 0.0  ;;  %v693_v3 = vmul.f32 %v1053_v34, %v298_v38  ;;  %v828_v9 = vsel %vm665_vm4, %v815_v49, 0.0  ;;  %v694_v59 = vmul.f32 %v1635_v25, %v299_v21  ;;  %v302_v25 = vld [vmem:[%s1733_s4 + $0x38] sm:$0xff] }
 0x15b   : > { %v819_v40 = vadd.f32 %v818_v4, %v817_v63  ;;  %v797_v17 = vadd.f32 %v796_v48, %v672_v33  ;;  %v822_v53 = vsel %vm665_vm4, %v812_v24, 0.0  ;;  %v701_v14 = vsel %vm665_vm4, %v691_v61, 0.0 }
 0x15c   : > { %v707_v12 = vsel %vm665_vm4, %v693_v3, 0.0  ;;  %v710_v34 = vsel %vm665_vm4, %v694_v59, 0.0 }
 0x15d   : > { %v1055_v27 = vpop.eup %1054  ;;  %v821_v29 = vadd.f32 %v820_v47, %v819_v40  ;;  %v798_v23 = vadd.f32 %v797_v17, %v675_v20 }
 0x15e   : > { %v814_v54 = vmul.f32 %v1055_v27, %v308_v46  ;;  %v1057_v55 = vpop.eup %1056  ;;  %v681_v45 = vsel %vm665_vm4, %v1055_v27, 0.0 }
 0x15f   : > { %v823_v56 = vadd.f32 %v822_v53, %v821_v29  ;;  %670 = vadd.xlane.f32.xlu2 %v669_v0  ;;  %v799_v39 = vadd.f32 %v798_v23, %v678_v31  ;;  %v816_v10 = vmul.f32 %v1057_v55, %v310_v58  ;;  %v687_v8 = vsel %vm665_vm4, %v1057_v55, 0.0 }
 0x160   : > { %676 = vadd.xlane.f32.xlu1 %v675_v20  ;;  %v826_v6 = vsel %vm665_vm4, %v814_v54, 0.0  ;;  %v696_v31 = vmul.f32 %v1643_v18, %v301_v15  ;;  %v695_v18 = vmul.f32 %v1055_v27, %v300_v41  ;;  %v697_v48 = vmul.f32 %v1057_v55, %v302_v25 }
 0x161   : > { %682 = vadd.xlane.f32.xlu0 %v681_v45  ;;  %v800_v60 = vadd.f32 %v799_v39, %v681_v45  ;;  %v825_v37 = vadd.f32 %v824_v2, %v823_v56  ;;  %v830_v16 = vsel %vm665_vm4, %v816_v10, 0.0 }
 0x162   : > { %v716_v7 = vsel %vm665_vm4, %v696_v31, 0.0  ;;  %v713_v63 = vsel %vm665_vm4, %v695_v18, 0.0  ;;  %v719_v24 = vsel %vm665_vm4, %v697_v48, 0.0 }
 0x163   : > { %v801_v62 = vadd.f32 %v800_v60, %v684_v35  ;;  %v827_v50 = vadd.f32 %v826_v6, %v825_v37 }
 0x165   : > { %v802_v11 = vadd.f32 %v801_v62, %v687_v8  ;;  %v829_v33 = vadd.f32 %v828_v9, %v827_v50 }
 0x167   : > { %702 = vadd.xlane.f32.xlu2 %v701_v14  ;;  %v803_v44 = vrot.slane %v802_v11, 4  ;;  %v831_v5 = vadd.f32 %v830_v16, %v829_v33 }
 0x168   : > { %705 = vadd.xlane.f32.xlu1 %v704_v1 }
 0x169   : > { %708 = vadd.xlane.f32.xlu0 %v707_v12  ;;  %v804_v22 = vadd.f32 %v803_v44, %v802_v11  ;;  %v832_v26 = vrot.slane %v831_v5, 4 }
 0x16b   : > { %v805_v30 = vrot.slane %v804_v22, 2  ;;  %v833_v42 = vadd.f32 %v832_v26, %v831_v5 }
 0x16d   : > { %v806_v43 = vadd.f32 %v805_v30, %v804_v22  ;;  %v834_v19 = vrot.slane %v833_v42, 2 }
 0x16f   : > { %688 = vadd.xlane.f32.xlu2 %v687_v8  ;;  %v807_v32 = vrot.slane %v806_v43, 1  ;;  %v835_v0 = vadd.f32 %v834_v19, %v833_v42 }
 0x170   : > { %711 = vadd.xlane.f32.xlu1 %v710_v34 }
 0x171   : > { %v808_v35 = vadd.f32 %v807_v32, %v806_v43  ;;  %717 = vadd.xlane.f32.xlu0 %v716_v7  ;;  %v836_v4 = vrot.slane %v835_v0, 1 }
 0x173   : > { %v838_v57 = vadd.f32 1e-08, %v808_v35  ;;  %v837_v40 = vadd.f32 %v836_v4, %v835_v0 }
 0x175   : > { %1058 = vrcp.f32 %v838_v57 }
 0x177   : > { %714 = vadd.xlane.f32.xlu2 %v713_v63 }
 0x178   : > { %720 = vadd.xlane.f32.xlu1 %v719_v24 }
 0x17b   : > { %v1059_v46 = vpop.eup %1058 }
 0x17c   : > { %v840_v17 = vmul.f32 %v1059_v46, %v837_v40 }
 0x17e   : > { %1060 = vlog2.f32 %v840_v17 }
 0x184   : > { %v1061_v47 = vpop.eup %1060 }
 0x185   : > { %v842_v51 = vmul.f32 0.6931472, %v1061_v47 }
 0x187   : > { %v844_v20 = vsel %vm843_vm0, %v842_v51, 0.0 }
 0x188   : > { %845 = vadd.xlane.f32.xlu0 %v844_v20 }
 0x1c3   : > { %v668_v27 = vpop.xlane.xlu1 %667 }
 0x1c4   : > { %v674_v28 = vpop.xlane.xlu0 %673  ;;  %v722_v53 = vadd.f32 1e-08, %v668_v27 }
 0x1c5   : > { %v724_v55 = vadd.f32 1e-08, %v674_v28 }
 0x1c6   : > { %1062 = vrcp.f32 %v722_v53 }
 0x1c7   : > { %1064 = vrcp.f32 %v724_v55 }
 0x1ca   : > { %v680_v29 = vpop.xlane.xlu2 %679 }
 0x1cb   : > { %v700_v23 = vpop.xlane.xlu1 %699  ;;  %v726_v45 = vadd.f32 1e-08, %v680_v29 }
 0x1cc   : > { %v686_v54 = vpop.xlane.xlu0 %685  ;;  %v1063_v49 = vpop.eup %1062 }
 0x1cd   : > { %v738_v36 = vmul.f32 %v1063_v49, %v700_v23  ;;  %v1065_v38 = vpop.eup %1064  ;;  %v728_v61 = vadd.f32 1e-08, %v686_v54 }
 0x1d2   : > { %v671_v56 = vpop.xlane.xlu2 %670 }
 0x1d3   : > { %v723_v39 = vadd.f32 1e-08, %v671_v56  ;;  %v677_v13 = vpop.xlane.xlu1 %676 }
 0x1d4   : > { %v683_v58 = vpop.xlane.xlu0 %682  ;;  %v725_v2 = vadd.f32 1e-08, %v677_v13 }
 0x1d5   : > { %1066 = vrcp.f32 %v723_v39  ;;  %v727_v3 = vadd.f32 1e-08, %v683_v58 }
 0x1d6   : > { %1068 = vrcp.f32 %v725_v2 }
 0x1d7   : > { %1070 = vrcp.f32 %v726_v45 }
 0x1d8   : > { %1072 = vlog2.f32 %v738_v36 }
 0x1da   : > { %v703_v60 = vpop.xlane.xlu2 %702 }
 0x1db   : > { %v1067_v37 = vpop.eup %1066  ;;  %v706_v10 = vpop.xlane.xlu1 %705 }
 0x1dc   : > { %v739_v6 = vmul.f32 %v1067_v37, %v703_v60  ;;  %v709_v52 = vpop.xlane.xlu0 %708  ;;  %v740_v62 = vmul.f32 %v1065_v38, %v706_v10  ;;  %v1069_v50 = vpop.eup %1068 }
 0x1dd   : > { %v741_v8 = vmul.f32 %v1069_v50, %v709_v52  ;;  %v1071_v9 = vpop.eup %1070  ;;  %v1132_v52 = vmov 64.0  }
 0x1de   : > { %1074 = vlog2.f32 %v739_v6  ;;  %v1073_v33 = vpop.eup %1072 }
 0x1df   : > { %1076 = vrcp.f32 %v728_v61  ;;  %v747_v15 = vmul.f32 0.6931472, %v1073_v33 }
 0x1e0   : > { %1078 = vlog2.f32 %v740_v62 }
 0x1e1   : > { %1080 = vrcp.f32 %v727_v3  ;;  %v763_v43 = vsel %vm762_vm5, %v747_v15, 0.0 }
 0x1e2   : > { %v689_v11 = vpop.xlane.xlu2 %688  ;;  %1082 = vlog2.f32 %v741_v8 }
 0x1e3   : > { %v729_v14 = vadd.f32 1e-08, %v689_v11  ;;  %v712_v16 = vpop.xlane.xlu1 %711 }
 0x1e4   : > { %v1075_v1 = vpop.eup %1074  ;;  %v718_v44 = vpop.xlane.xlu0 %717  ;;  %v742_v5 = vmul.f32 %v1071_v9, %v712_v16 }
 0x1e5   : > { %v1077_v12 = vpop.eup %1076  ;;  %v749_v21 = vmul.f32 0.6931472, %v1075_v1  ;;  %1084 = vrcp.f32 %v729_v14 }
 0x1e6   : > { %v1079_v22 = vpop.eup %1078  ;;  %1086 = vlog2.f32 %v742_v5  ;;  %v744_v26 = vmul.f32 %v1077_v12, %v718_v44 }
 0x1e7   : > { %v764_v30 = vsel %vm762_vm5, %v749_v21, 0.0  ;;  %v751_v59 = vmul.f32 0.6931472, %v1079_v22  ;;  %v1081_v42 = vpop.eup %1080 }
 0x1e8   : > { %v1083_v31 = vpop.eup %1082  ;;  %v765_v34 = vadd.f32 %v764_v30, %v763_v43  ;;  %1088 = vlog2.f32 %v744_v26 }
 0x1e9   : > { %v766_v35 = vsel %vm762_vm5, %v751_v59, 0.0  ;;  %v753_v0 = vmul.f32 0.6931472, %v1083_v31 }
 0x1ea   : > { %v715_v19 = vpop.xlane.xlu2 %714  ;;  %v767_v48 = vadd.f32 %v766_v35, %v765_v34 }
 0x1eb   : > { %v1085_v32 = vpop.eup %1084  ;;  %v743_v41 = vmul.f32 %v1081_v42, %v715_v19  ;;  %v721_v7 = vpop.xlane.xlu1 %720  ;;  %v768_v4 = vsel %vm762_vm5, %v753_v0, 0.0 }
 0x1ec   : > { %v1087_v25 = vpop.eup %1086  ;;  %v745_v18 = vmul.f32 %v1085_v32, %v721_v7  ;;  %v769_v46 = vadd.f32 %v768_v4, %v767_v48 }
 0x1ed   : > { %1090 = vlog2.f32 %v743_v41  ;;  %v755_v57 = vmul.f32 0.6931472, %v1087_v25 }
 0x1ee   : > { %1092 = vlog2.f32 %v745_v18  ;;  %v1089_v63 = vpop.eup %1088 }
 0x1ef   : > { %v770_v24 = vsel %vm762_vm5, %v755_v57, 0.0  ;;  %v759_v47 = vmul.f32 0.6931472, %v1089_v63  ;;  %1094 = vrcp.f32 %v1132_v52 }
 0x1f0   : > { %v771_v20 = vadd.f32 %v770_v24, %v769_v46 }
 0x1f1   : > { %v774_v23 = vsel %vm762_vm5, %v759_v47, 0.0 }
 0x1f3   : > { %v1091_v40 = vpop.eup %1090 }
 0x1f4   : > { %v1093_v17 = vpop.eup %1092  ;;  %v757_v51 = vmul.f32 0.6931472, %v1091_v40 }
 0x1f5   : > { %v761_v28 = vmul.f32 0.6931472, %v1093_v17  ;;  %v1095_v62 = vpop.eup %1094 }
 0x1f6   : > { %v772_v27 = vsel %vm762_vm5, %v757_v51, 0.0  ;;  %v789_v50 = vmul.f32 64.0, %v1095_v62  ;;  %vm793_vm6 = vweird.f32 %v1095_v62 }
 0x1f7   : > { %v773_v29 = vadd.f32 %v772_v27, %v771_v20  ;;  %v776_v54 = vsel %vm762_vm5, %v761_v28, 0.0 }
 0x1f8   : > { %v790_v3 = vsub.f32 1.0, %v789_v50 }
 0x1f9   : > { %v775_v53 = vadd.f32 %v774_v23, %v773_v29 }
 0x1fa   : > { %v791_v8 = vmul.f32 %v1095_v62, %v790_v3 }
 0x1fb   : > { %v777_v55 = vadd.f32 %v776_v54, %v775_v53  ;;  %v846_v56 = vpop.xlane.xlu0 %845 }
 0x1fc   : > { %v847_v39 = vrot.slane %v846_v56, 4  ;;  %v792_v9 = vadd.f32 %v1095_v62, %v791_v8 }
 0x1fd   : > { %778 = vadd.xlane.f32.xlu2 %v777_v55 }
 0x1fe   : > { %v848_v13 = vadd.f32 %v847_v39, %v846_v56  ;;  %v794_v11 = vsel %vm793_vm6, %v1095_v62, %v792_v9 }
 0x200   : > { %v849_v58 = vrot.slane %v848_v13, 2 }
 0x202   : > { %v850_v36 = vadd.f32 %v849_v58, %v848_v13 }
 0x204   : > { %v851_v37 = vrot.slane %v850_v36, 1 }
 0x206   : > { %v852_v6 = vadd.f32 %v851_v37, %v850_v36 }
 0x270   : > { %v779_v2 = vpop.xlane.xlu2 %778 }
 0x271   : > { %v780_v49 = vrot.slane %v779_v2, 4 }
 0x273   : > { %v781_v45 = vadd.f32 %v780_v49, %v779_v2 }
 0x275   : > { %v782_v38 = vrot.slane %v781_v45, 2 }
 0x277   : > { %v783_v60 = vadd.f32 %v782_v38, %v781_v45 }
 0x279   : > { %v784_v61 = vrot.slane %v783_v60, 1 }
 0x27b   : > { %v785_v10 = vadd.f32 %v784_v61, %v783_v60 }
 0x27d   : > { %995 = vpush %v785_v10 }
 0x27e   : > { %997 = vpush %v852_v6 }
 0x2ae   : > { %s996_s28 = spop %995 }
 0x2af   : > { %v787_v33 = vstv %s996_s28  ;;  %s998_s1 = spop %997 }
 0x2b0   : > { %v795_v14 = vmul.f32 %v794_v11, %v787_v33  ;;  %v854_v16 = vstv %s998_s1 }
 0x2b1   : > { %v855_v1 = vmul.f32 %v854_v16, %v794_v11 }
 0x2b2   : > { %856 = vst [vmem:[%s275_s8] sm:$0x1] %v795_v14 }
 0x2b3   : > { %857 = vst [vmem:[%s278_s12] sm:$0x1] %v855_v1 }
 0x2b4 PF: > { %s31_s9 = sadd.s32 1, %s1128_s9  }
 0x2b5   : > { %p28_p6 = scmp.ge.s32.totalorder %s31_s9, 5  }
 0x2b7   :  { %30 = sbr.rel (!%p28_p6) target bundleno = 8 (0x8), region = 81 }

</bundles_post_ra>
